<compile_context>
chip_gen: v7x
topology: tpu7x:2x2x1
jax: 0.10.0
libtpu: 0.0.40
codegen_flags: <defaults>
</compile_context>

<pallas_src>
import functools
import math

import jax
import jax.numpy as jnp
from jax.experimental import pallas as pl
from jax.experimental.pallas import tpu as pltpu


VMEM_LIMIT = 32 * 1024 * 1024  # explicit scoped-VMEM budget (safe on v5e/v6e/v7x)


def _pick_tile(dim, candidates=(512, 256, 128)):
    """Largest candidate tile that divides dim; else use the full dim."""
    for c in candidates:
        if c <= dim and dim % c == 0:
            return c
    return dim


# --------------------------------------------------------------------------
# Kernel 1: tiled matmul + bias (+ optional ReLU).  Used for the fused QKV
# projection.  grid = (M/tm, N/tn, K/tk), K last ("arbitrary"), f32 acc.
# --------------------------------------------------------------------------
def _matmul_bias_kernel(x_ref, w_ref, b_ref, o_ref, acc_ref, *, activation):
    k = pl.program_id(2)

    @pl.when(k == 0)
    def _():
        acc_ref[...] = jnp.zeros_like(acc_ref)

    acc_ref[...] += jnp.dot(x_ref[...], w_ref[...],
                            preferred_element_type=jnp.float32)

    @pl.when(k == pl.num_programs(2) - 1)
    def _():
        y = acc_ref[...] + b_ref[...]          # bias add in f32 (v5e-friendly)
        if activation == "relu":
            y = jnp.maximum(y, 0.0)
        o_ref[...] = y.astype(o_ref.dtype)


def linear(x, w, b, activation=None, out_dtype=jnp.bfloat16):
    """x: (M, K) bf16, w: (K, N) bf16, b: (N,) f32 -> (M, N) out_dtype."""
    M, K = x.shape
    _, Nd = w.shape
    tm = _pick_tile(M)
    tn = _pick_tile(Nd)
    tk = _pick_tile(K)
    grid = (M // tm, Nd // tn, K // tk)
    return pl.pallas_call(
        functools.partial(_matmul_bias_kernel, activation=activation),
        out_shape=jax.ShapeDtypeStruct((M, Nd), out_dtype),
        grid_spec=pltpu.PrefetchScalarGridSpec(
            num_scalar_prefetch=0,
            grid=grid,
            in_specs=[
                pl.BlockSpec((tm, tk), lambda i, j, k: (i, k)),
                pl.BlockSpec((tk, tn), lambda i, j, k: (k, j)),
                pl.BlockSpec((1, tn), lambda i, j, k: (0, j)),
            ],
            out_specs=pl.BlockSpec((tm, tn), lambda i, j, k: (i, j)),
            scratch_shapes=[pltpu.VMEM((tm, tn), jnp.float32)],
        ),
        compiler_params=pltpu.CompilerParams(
            dimension_semantics=("parallel", "parallel", "arbitrary"),
            vmem_limit_bytes=VMEM_LIMIT,
        ),
    )(x, w, b.reshape(1, Nd))


# --------------------------------------------------------------------------
# Kernel 2: per-(batch, head) self-attention, reading q/k/v head tiles
# directly from the (N*L, 3C) QKV slab via index_maps (no host-side
# split_heads/transpose), writing directly into an (N*L, C) output slab.
# --------------------------------------------------------------------------
def _attn_kernel(q_ref, k_ref, v_ref, o_ref, *, scale):
    q = q_ref[...]                                        # (L, Dh) bf16
    k = k_ref[...]
    v = v_ref[...]
    # contract last dims (no explicit XLU transpose of k)
    s = jax.lax.dot_general(q, k, (((1,), (1,)), ((), ())),
                            preferred_element_type=jnp.float32) * scale
    m = jnp.max(s, axis=-1, keepdims=True)
    p = jnp.exp(s - m)
    denom = jnp.sum(p, axis=-1, keepdims=True)
    p = p * pl.reciprocal(denom, approx=True)             # EUP slot, free-ish
    o_ref[...] = jnp.dot(p.astype(v.dtype), v,
                         preferred_element_type=jnp.float32).astype(o_ref.dtype)


def attention_from_qkv(qkv, N, L, H, Dh, scale):
    """qkv: (N*L, 3*H*Dh) bf16 with column layout [Q heads | K heads | V heads].
    Returns attention output as an (N*L, H*Dh) bf16 slab (already 'merged heads')."""
    C = H * Dh
    # TODO(synk): generalize for Dh not a multiple of 128 (pad heads or batch
    # several heads per block) and add a flash-style online-softmax KV loop
    # for long sequences; full (L, L) scores are fine at this demo L.
    assert Dh % 128 == 0 and L % 16 == 0, "demo attention tiling needs Dh%128==0, L%16==0"
    return pl.pallas_call(
        functools.partial(_attn_kernel, scale=scale),
        out_shape=jax.ShapeDtypeStruct((N * L, C), qkv.dtype),
        grid=(N, H),
        in_specs=[
            pl.BlockSpec((L, Dh), lambda n, h: (n, h)),          # Q head h
            pl.BlockSpec((L, Dh), lambda n, h: (n, H + h)),      # K head h
            pl.BlockSpec((L, Dh), lambda n, h: (n, 2 * H + h)),  # V head h
        ],
        out_specs=pl.BlockSpec((L, Dh), lambda n, h: (n, h)),
        compiler_params=pltpu.CompilerParams(
            dimension_semantics=("parallel", "parallel"),
            vmem_limit_bytes=VMEM_LIMIT,
        ),
    )(qkv, qkv, qkv)


# --------------------------------------------------------------------------
# Kernel 3: tiled matmul with fused epilogue: bias + residual add + LayerNorm.
# Output tile spans the full d_model so LN stats are computed in-kernel (f32).
# --------------------------------------------------------------------------
def _linear_add_ln_kernel(x_ref, w_ref, b_ref, res_ref, g_ref, bt_ref,
                          o_ref, acc_ref, *, eps):
    k = pl.program_id(1)

    @pl.when(k == 0)
    def _():
        acc_ref[...] = jnp.zeros_like(acc_ref)

    acc_ref[...] += jnp.dot(x_ref[...], w_ref[...],
                            preferred_element_type=jnp.float32)

    @pl.when(k == pl.num_programs(1) - 1)
    def _():
        y = acc_ref[...] + b_ref[...] + res_ref[...].astype(jnp.float32)
        mu = jnp.mean(y, axis=-1, keepdims=True)
        d = y - mu
        var = jnp.mean(d * d, axis=-1, keepdims=True)      # biased, like PyTorch LN
        inv = jax.lax.rsqrt(var + eps)
        o_ref[...] = (d * inv * g_ref[...] + bt_ref[...]).astype(o_ref.dtype)


def linear_add_layernorm(x, w, b, res, gamma, beta, eps=1e-5,
                         out_dtype=jnp.bfloat16):
    """LayerNorm(x @ w + b + res) over the last axis."""
    M, K = x.shape
    _, C = w.shape
    tm = _pick_tile(M)
    tk = _pick_tile(K)
    grid = (M // tm, K // tk)
    return pl.pallas_call(
        functools.partial(_linear_add_ln_kernel, eps=eps),
        out_shape=jax.ShapeDtypeStruct((M, C), out_dtype),
        grid_spec=pltpu.PrefetchScalarGridSpec(
            num_scalar_prefetch=0,
            grid=grid,
            in_specs=[
                pl.BlockSpec((tm, tk), lambda i, k: (i, k)),   # x
                pl.BlockSpec((tk, C), lambda i, k: (k, 0)),    # w
                pl.BlockSpec((1, C), lambda i, k: (0, 0)),     # bias
                pl.BlockSpec((tm, C), lambda i, k: (i, 0)),    # residual
                pl.BlockSpec((1, C), lambda i, k: (0, 0)),     # gamma
                pl.BlockSpec((1, C), lambda i, k: (0, 0)),     # beta
            ],
            out_specs=pl.BlockSpec((tm, C), lambda i, k: (i, 0)),
            scratch_shapes=[pltpu.VMEM((tm, C), jnp.float32)],
        ),
        compiler_params=pltpu.CompilerParams(
            dimension_semantics=("parallel", "arbitrary"),
            vmem_limit_bytes=VMEM_LIMIT,
        ),
    )(x, w, b.reshape(1, C), res, gamma.reshape(1, C), beta.reshape(1, C))


# --------------------------------------------------------------------------
# Kernel 4: fused FFN: relu(x@w1+b1)@w2 + b2 + residual -> LayerNorm.
# d_ff is the inner "arbitrary" grid axis; the (tm, C) f32 accumulator stays
# resident so the d_ff-sized intermediate never round-trips HBM.
# --------------------------------------------------------------------------
def _ffn_add_ln_kernel(x_ref, w1_ref, b1_ref, w2_ref, b2_ref, res_ref,
                       g_ref, bt_ref, o_ref, acc_ref, *, eps):
    j = pl.program_id(1)

    @pl.when(j == 0)
    def _():
        acc_ref[...] = jnp.zeros_like(acc_ref)

    h = jnp.dot(x_ref[...], w1_ref[...], preferred_element_type=jnp.float32)
    h = jnp.maximum(h + b1_ref[...], 0.0)                 # bias + ReLU in f32
    acc_ref[...] += jnp.dot(h.astype(w2_ref.dtype), w2_ref[...],
                            preferred_element_type=jnp.float32)

    @pl.when(j == pl.num_programs(1) - 1)
    def _():
        y = acc_ref[...] + b2_ref[...] + res_ref[...].astype(jnp.float32)
        mu = jnp.mean(y, axis=-1, keepdims=True)
        d = y - mu
        var = jnp.mean(d * d, axis=-1, keepdims=True)
        inv = jax.lax.rsqrt(var + eps)
        o_ref[...] = (d * inv * g_ref[...] + bt_ref[...]).astype(o_ref.dtype)


def ffn_add_layernorm(x, w1, b1, w2, b2, res, gamma, beta, eps=1e-5,
                      out_dtype=jnp.bfloat16):
    M, C = x.shape
    _, F = w1.shape
    tm = _pick_tile(M)
    tf = _pick_tile(F)
    grid = (M // tm, F // tf)
    return pl.pallas_call(
        functools.partial(_ffn_add_ln_kernel, eps=eps),
        out_shape=jax.ShapeDtypeStruct((M, C), out_dtype),
        grid_spec=pltpu.PrefetchScalarGridSpec(
            num_scalar_prefetch=0,
            grid=grid,
            in_specs=[
                pl.BlockSpec((tm, C), lambda i, j: (i, 0)),    # x
                pl.BlockSpec((C, tf), lambda i, j: (0, j)),    # w1 column tile
                pl.BlockSpec((1, tf), lambda i, j: (0, j)),    # b1 tile
                pl.BlockSpec((tf, C), lambda i, j: (j, 0)),    # w2 row tile
                pl.BlockSpec((1, C), lambda i, j: (0, 0)),     # b2
                pl.BlockSpec((tm, C), lambda i, j: (i, 0)),    # residual
                pl.BlockSpec((1, C), lambda i, j: (0, 0)),     # gamma
                pl.BlockSpec((1, C), lambda i, j: (0, 0)),     # beta
            ],
            out_specs=pl.BlockSpec((tm, C), lambda i, j: (i, 0)),
            scratch_shapes=[pltpu.VMEM((tm, C), jnp.float32)],
        ),
        compiler_params=pltpu.CompilerParams(
            dimension_semantics=("parallel", "arbitrary"),
            vmem_limit_bytes=VMEM_LIMIT,
        ),
    )(x, w1, b1.reshape(1, F), w2, b2.reshape(1, C), res,
      gamma.reshape(1, C), beta.reshape(1, C))


# --------------------------------------------------------------------------
# Kernel 5: residual-free LayerNorm (final Encoder norm), row-tiled.
# --------------------------------------------------------------------------
def _ln_kernel(x_ref, g_ref, b_ref, o_ref, *, eps):
    y = x_ref[...].astype(jnp.float32)
    mu = jnp.mean(y, axis=-1, keepdims=True)
    d = y - mu
    var = jnp.mean(d * d, axis=-1, keepdims=True)
    o_ref[...] = (d * jax.lax.rsqrt(var + eps) * g_ref[...]
                  + b_ref[...]).astype(o_ref.dtype)


def layernorm(x, gamma, beta, eps=1e-5, out_dtype=jnp.float32):
    M, C = x.shape
    tm = _pick_tile(M, (1024, 512, 256, 128))
    return pl.pallas_call(
        functools.partial(_ln_kernel, eps=eps),
        out_shape=jax.ShapeDtypeStruct((M, C), out_dtype),
        grid=(M // tm,),
        in_specs=[
            pl.BlockSpec((tm, C), lambda i: (i, 0)),
            pl.BlockSpec((1, C), lambda i: (0, 0)),
            pl.BlockSpec((1, C), lambda i: (0, 0)),
        ],
        out_specs=pl.BlockSpec((tm, C), lambda i: (i, 0)),
        compiler_params=pltpu.CompilerParams(
            dimension_semantics=("parallel",),
            vmem_limit_bytes=VMEM_LIMIT,
        ),
    )(x, gamma.reshape(1, C), beta.reshape(1, C))


# ------------------------- parameters & forward pass ------------------------

def init_params(key, num_layers, d_model, n_heads, d_ff):
    del n_heads  # head count is passed statically to the forward pass

    def w(k, shape):
        return (0.02 * jax.random.normal(k, shape, dtype=jnp.float32)
                ).astype(jnp.bfloat16)

    layers = []
    for _ in range(num_layers):
        key, *ks = jax.random.split(key, 5)
        layers.append({
            # fused Q/K/V projection weight: columns = [Q | K | V]
            "wqkv": w(ks[0], (d_model, 3 * d_model)),
            "bqkv": jnp.zeros((3 * d_model,), jnp.float32),
            "wo": w(ks[1], (d_model, d_model)),
            "bo": jnp.zeros((d_model,), jnp.float32),
            "w1": w(ks[2], (d_model, d_ff)),
            "b1": jnp.zeros((d_ff,), jnp.float32),
            "w2": w(ks[3], (d_ff, d_model)),
            "b2": jnp.zeros((d_model,), jnp.float32),
            "ln1_g": jnp.ones((d_model,), jnp.float32),
            "ln1_b": jnp.zeros((d_model,), jnp.float32),
            "ln2_g": jnp.ones((d_model,), jnp.float32),
            "ln2_b": jnp.zeros((d_model,), jnp.float32),
        })
    return {
        "layers": layers,
        "norm_g": jnp.ones((d_model,), jnp.float32),   # final nn.LayerNorm(d_model)
        "norm_b": jnp.zeros((d_model,), jnp.float32),
    }


@functools.partial(jax.jit, static_argnames=("heads",))
def encoder_forward(x, params, *, heads):
    """x: (N, L, C) float32 -> (N, L, C) float32."""
    N, L, C = x.shape
    H = heads
    Dh = C // H
    scale = 1.0 / math.sqrt(Dh)

    x2d = x.reshape(N * L, C).astype(jnp.bfloat16)     # bf16 activations, f32 acc
    for layer in params["layers"]:
        # fused QKV projection: (N*L, C) @ (C, 3C)
        qkv = linear(x2d, layer["wqkv"], layer["bqkv"])
        # per-(batch, head) attention straight off the QKV slab
        attn = attention_from_qkv(qkv, N, L, H, Dh, scale)
        # output projection + residual + LayerNorm (post-norm)
        x2d = linear_add_layernorm(attn, layer["wo"], layer["bo"], x2d,
                                   layer["ln1_g"], layer["ln1_b"])
        # fused FFN (relu MLP) + residual + LayerNorm
        x2d = ffn_add_layernorm(x2d, layer["w1"], layer["b1"],
                                layer["w2"], layer["b2"],
                                x2d, layer["ln2_g"], layer["ln2_b"])

    # final Encoder norm (self.norm is not None here), residual-free path
    out2d = layernorm(x2d, params["norm_g"], params["norm_b"],
                      out_dtype=jnp.float32)
    return out2d.reshape(N, L, C)


# ----------------------------------- main -----------------------------------

if __name__ == "__main__":
    # small, TPU-lane-aligned shapes: batch=2, seq=16, d_model=256,
    # 2 heads (head_dim=128), d_ff=512, 2 encoder layers.
    N, L, C = 2, 16, 256
    H, d_ff, num_layers = 2, 512, 2

    key = jax.random.PRNGKey(0)
    k_x, k_p = jax.random.split(key)
    x = jax.random.normal(k_x, (N, L, C), dtype=jnp.float32)
    params = init_params(k_p, num_layers, C, H, d_ff)

    out = encoder_forward(x, params, heads=H)
    out = jax.block_until_ready(out)

    assert out.shape == (N, L, C)
    assert out.dtype == jnp.float32
    assert bool(jnp.all(jnp.isfinite(out)))
    print("KERNEL_OK")
</pallas_src>

<mosaic_0001>
module attributes {stable_mosaic.version = 11 : i64} {
  func.func @_matmul_bias_kernel(%arg0: i32, %arg1: i32, %arg2: i32, %arg3: memref<32x256xbf16, #tpu.memory_space<vmem>>, %arg4: memref<256x256xbf16, #tpu.memory_space<vmem>>, %arg5: memref<1x256xf32, #tpu.memory_space<vmem>>, %arg6: memref<32x256xbf16, #tpu.memory_space<vmem>>, %arg7: memref<32x256xf32, #tpu.memory_space<vmem>>) attributes {dimension_semantics = [#tpu.dimension_semantics<parallel>, #tpu.dimension_semantics<parallel>, #tpu.dimension_semantics<arbitrary>], iteration_bounds = array<i64: 1, 3, 1>, scalar_prefetch = 0 : i64, scratch_operands = 1 : i64, tpu.core_type = #tpu.core_type<tc>, window_params = [{transform_indices = @transform_0, window_bounds = array<i64: 32, 256>}, {transform_indices = @transform_1, window_bounds = array<i64: 256, 256>}, {transform_indices = @transform_2, window_bounds = array<i64: 1, 256>}, {transform_indices = @transform_3, window_bounds = array<i64: 32, 256>}]} {
    %c0_i32 = arith.constant 0 : i32
    %0 = arith.cmpi eq, %arg2, %c0_i32 : i32
    %1 = arith.extui %0 : i1 to i32
    %c0_i32_0 = arith.constant 0 : i32
    %2 = arith.cmpi ne, %1, %c0_i32_0 : i32
    scf.if %2 {
      %cst_10 = arith.constant 0.000000e+00 : f32
      %12 = vector.broadcast %cst_10 : f32 to vector<32x256xf32>
      %c0_11 = arith.constant 0 : index
      %c0_12 = arith.constant 0 : index
      %13 = vector.load %arg7[%c0_11, %c0_12] : memref<32x256xf32, #tpu.memory_space<vmem>>, vector<32x256xf32>
      tpu.vector_store %arg7[%c0_11, %c0_12], %12 {strides = array<i32>} : memref<32x256xf32, #tpu.memory_space<vmem>>, vector<32x256xf32>,
    } else {
    }
    %c0 = arith.constant 0 : index
    %c0_1 = arith.constant 0 : index
    %3 = vector.load %arg7[%c0, %c0_1] : memref<32x256xf32, #tpu.memory_space<vmem>>, vector<32x256xf32>
    %c0_2 = arith.constant 0 : index
    %c0_3 = arith.constant 0 : index
    %4 = vector.load %arg3[%c0_2, %c0_3] : memref<32x256xbf16, #tpu.memory_space<vmem>>, vector<32x256xbf16>
    %c0_4 = arith.constant 0 : index
    %c0_5 = arith.constant 0 : index
    %5 = vector.load %arg4[%c0_4, %c0_5] : memref<256x256xbf16, #tpu.memory_space<vmem>>, vector<256x256xbf16>
    %cst = arith.constant dense<0.000000e+00> : vector<32x256xf32>
    %6 = tpu.matmul %4, %5, %cst {dimension_numbers = #tpu.dot_dimension_numbers<[1], [0], [0], [1], [0, 0, 1, 1], [], []>} : vector<32x256xbf16>, vector<256x256xbf16>, vector<32x256xf32> -> vector<32x256xf32>
    %7 = arith.addf %3, %6 : vector<32x256xf32>
    %c0_6 = arith.constant 0 : index
    %c0_7 = arith.constant 0 : index
    %8 = vector.load %arg7[%c0_6, %c0_7] : memref<32x256xf32, #tpu.memory_space<vmem>>, vector<32x256xf32>
    tpu.vector_store %arg7[%c0_6, %c0_7], %7 {strides = array<i32>} : memref<32x256xf32, #tpu.memory_space<vmem>>, vector<32x256xf32>,
    %c0_i32_8 = arith.constant 0 : i32
    %9 = arith.cmpi eq, %arg2, %c0_i32_8 : i32
    %10 = arith.extui %9 : i1 to i32
    %c0_i32_9 = arith.constant 0 : i32
    %11 = arith.cmpi ne, %10, %c0_i32_9 : i32
    scf.if %11 {
      %c0_10 = arith.constant 0 : index
      %c0_11 = arith.constant 0 : index
      %12 = vector.load %arg7[%c0_10, %c0_11] : memref<32x256xf32, #tpu.memory_space<vmem>>, vector<32x256xf32>
      %c0_12 = arith.constant 0 : index
      %c0_13 = arith.constant 0 : index
      %13 = vector.load %arg5[%c0_12, %c0_13] : memref<1x256xf32, #tpu.memory_space<vmem>>, vector<1x256xf32>
      %14 = vector.broadcast %13 : vector<1x256xf32> to vector<32x256xf32>
      %15 = arith.addf %12, %14 : vector<32x256xf32>
      %16 = arith.truncf %15 : vector<32x256xf32> to vector<32x256xbf16>
      %c0_14 = arith.constant 0 : index
      %c0_15 = arith.constant 0 : index
      %17 = vector.load %arg6[%c0_14, %c0_15] : memref<32x256xbf16, #tpu.memory_space<vmem>>, vector<32x256xbf16>
      tpu.vector_store %arg6[%c0_14, %c0_15], %16 {strides = array<i32>} : memref<32x256xbf16, #tpu.memory_space<vmem>>, vector<32x256xbf16>,
    } else {
    }
    return
  }
  func.func @transform_0(%arg0: i32, %arg1: i32, %arg2: i32) -> (i32, i32) {
    %c0_i32 = arith.constant 0 : i32
    return %arg0, %arg2 : i32, i32
  }
  func.func @transform_1(%arg0: i32, %arg1: i32, %arg2: i32) -> (i32, i32) {
    %c0_i32 = arith.constant 0 : i32
    return %arg2, %arg1 : i32, i32
  }
  func.func @transform_2(%arg0: i32, %arg1: i32, %arg2: i32) -> (i32, i32) {
    %c0_i32 = arith.constant 0 : i32
    %c0_i32_0 = arith.constant 0 : i32
    return %c0_i32, %arg1 : i32, i32
  }
  func.func @transform_3(%arg0: i32, %arg1: i32, %arg2: i32) -> (i32, i32) {
    %c0_i32 = arith.constant 0 : i32
    return %arg0, %arg1 : i32, i32
  }
}

module attributes {stable_mosaic.version = 11 : i64} {
  func.func @_attn_kernel(%arg0: i32, %arg1: i32, %arg2: memref<16x128xbf16, #tpu.memory_space<vmem>>, %arg3: memref<16x128xbf16, #tpu.memory_space<vmem>>, %arg4: memref<16x128xbf16, #tpu.memory_space<vmem>>, %arg5: memref<16x128xbf16, #tpu.memory_space<vmem>>) attributes {dimension_semantics = [#tpu.dimension_semantics<parallel>, #tpu.dimension_semantics<parallel>], iteration_bounds = array<i64: 2, 2>, scalar_prefetch = 0 : i64, scratch_operands = 0 : i64, tpu.core_type = #tpu.core_type<tc>, window_params = [{transform_indices = @transform_0, window_bounds = array<i64: 16, 128>}, {transform_indices = @transform_1, window_bounds = array<i64: 16, 128>}, {transform_indices = @transform_2, window_bounds = array<i64: 16, 128>}, {transform_indices = @transform_3, window_bounds = array<i64: 16, 128>}]} {
    %c0 = arith.constant 0 : index
    %c0_0 = arith.constant 0 : index
    %0 = vector.load %arg2[%c0, %c0_0] : memref<16x128xbf16, #tpu.memory_space<vmem>>, vector<16x128xbf16>
    %c0_1 = arith.constant 0 : index
    %c0_2 = arith.constant 0 : index
    %1 = vector.load %arg3[%c0_1, %c0_2] : memref<16x128xbf16, #tpu.memory_space<vmem>>, vector<16x128xbf16>
    %c0_3 = arith.constant 0 : index
    %c0_4 = arith.constant 0 : index
    %2 = vector.load %arg4[%c0_3, %c0_4] : memref<16x128xbf16, #tpu.memory_space<vmem>>, vector<16x128xbf16>
    %cst = arith.constant dense<0.000000e+00> : vector<16x16xf32>
    %3 = tpu.matmul %0, %1, %cst {dimension_numbers = #tpu.dot_dimension_numbers<[1], [1], [0], [0], [0, 0, 1, 0], [], []>} : vector<16x128xbf16>, vector<16x128xbf16>, vector<16x16xf32> -> vector<16x16xf32>
    %cst_5 = arith.constant 0.0883883461 : f32
    %4 = vector.broadcast %cst_5 : f32 to vector<16x16xf32>
    %5 = arith.mulf %3, %4 : vector<16x16xf32>
    %cst_6 = arith.constant dense<0xFF800000> : vector<16xf32>
    %6 = vector.multi_reduction <maximumf>, %5, %cst_6 [1] : vector<16x16xf32> to vector<16xf32>
    %7 = vector.shape_cast %6 : vector<16xf32> to vector<16x1xf32>
    %8 = vector.broadcast %7 : vector<16x1xf32> to vector<16x16xf32>
    %9 = arith.subf %5, %8 : vector<16x16xf32>
    %10 = math.exp %9 : vector<16x16xf32>
    %cst_7 = arith.constant dense<0.000000e+00> : vector<16xf32>
    %11 = vector.multi_reduction <add>, %10, %cst_7 [1] : vector<16x16xf32> to vector<16xf32>
    %12 = vector.shape_cast %11 : vector<16xf32> to vector<16x1xf32>
    %13 = tpu.reciprocal %12 {approx = true} : vector<16x1xf32> -> vector<16x1xf32>
    %14 = vector.broadcast %13 : vector<16x1xf32> to vector<16x16xf32>
    %15 = arith.mulf %10, %14 : vector<16x16xf32>
    %16 = arith.truncf %15 : vector<16x16xf32> to vector<16x16xbf16>
    %cst_8 = arith.constant dense<0.000000e+00> : vector<16x128xf32>
    %17 = tpu.matmul %16, %2, %cst_8 {dimension_numbers = #tpu.dot_dimension_numbers<[1], [0], [0], [1], [0, 0, 1, 1], [], []>} : vector<16x16xbf16>, vector<16x128xbf16>, vector<16x128xf32> -> vector<16x128xf32>
    %18 = arith.truncf %17 : vector<16x128xf32> to vector<16x128xbf16>
    %c0_9 = arith.constant 0 : index
    %c0_10 = arith.constant 0 : index
    %19 = vector.load %arg5[%c0_9, %c0_10] : memref<16x128xbf16, #tpu.memory_space<vmem>>, vector<16x128xbf16>
    tpu.vector_store %arg5[%c0_9, %c0_10], %18 {strides = array<i32>} : memref<16x128xbf16, #tpu.memory_space<vmem>>, vector<16x128xbf16>,
    return
  }
  func.func @transform_0(%arg0: i32, %arg1: i32) -> (i32, i32) {
    %c0_i32 = arith.constant 0 : i32
    return %arg0, %arg1 : i32, i32
  }
  func.func @transform_1(%arg0: i32, %arg1: i32) -> (i32, i32) {
    %c2_i32 = arith.constant 2 : i32
    %0 = arith.addi %c2_i32, %arg1 : i32
    %c0_i32 = arith.constant 0 : i32
    return %arg0, %0 : i32, i32
  }
  func.func @transform_2(%arg0: i32, %arg1: i32) -> (i32, i32) {
    %c4_i32 = arith.constant 4 : i32
    %0 = arith.addi %c4_i32, %arg1 : i32
    %c0_i32 = arith.constant 0 : i32
    return %arg0, %0 : i32, i32
  }
  func.func @transform_3(%arg0: i32, %arg1: i32) -> (i32, i32) {
    %c0_i32 = arith.constant 0 : i32
    return %arg0, %arg1 : i32, i32
  }
}

module attributes {stable_mosaic.version = 11 : i64} {
  func.func @_ffn_add_ln_kernel(%arg0: i32, %arg1: i32, %arg2: memref<32x256xbf16, #tpu.memory_space<vmem>>, %arg3: memref<256x512xbf16, #tpu.memory_space<vmem>>, %arg4: memref<1x512xf32, #tpu.memory_space<vmem>>, %arg5: memref<512x256xbf16, #tpu.memory_space<vmem>>, %arg6: memref<1x256xf32, #tpu.memory_space<vmem>>, %arg7: memref<32x256xbf16, #tpu.memory_space<vmem>>, %arg8: memref<1x256xf32, #tpu.memory_space<vmem>>, %arg9: memref<1x256xf32, #tpu.memory_space<vmem>>, %arg10: memref<32x256xbf16, #tpu.memory_space<vmem>>, %arg11: memref<32x256xf32, #tpu.memory_space<vmem>>) attributes {dimension_semantics = [#tpu.dimension_semantics<parallel>, #tpu.dimension_semantics<arbitrary>], iteration_bounds = array<i64: 1, 1>, scalar_prefetch = 0 : i64, scratch_operands = 1 : i64, tpu.core_type = #tpu.core_type<tc>, window_params = [{transform_indices = @transform_0, window_bounds = array<i64: 32, 256>}, {transform_indices = @transform_1, window_bounds = array<i64: 256, 512>}, {transform_indices = @transform_2, window_bounds = array<i64: 1, 512>}, {transform_indices = @transform_3, window_bounds = array<i64: 512, 256>}, {pipeline_mode = #tpu.pipeline_mode<synchronous>, transform_indices = @transform_4, window_bounds = array<i64: 1, 256>}, {transform_indices = @transform_5, window_bounds = array<i64: 32, 256>}, {pipeline_mode = #tpu.pipeline_mode<synchronous>, transform_indices = @transform_6, window_bounds = array<i64: 1, 256>}, {pipeline_mode = #tpu.pipeline_mode<synchronous>, transform_indices = @transform_7, window_bounds = array<i64: 1, 256>}, {transform_indices = @transform_8, window_bounds = array<i64: 32, 256>}]} {
    %c0_i32 = arith.constant 0 : i32
    %0 = arith.cmpi eq, %arg1, %c0_i32 : i32
    %1 = arith.extui %0 : i1 to i32
    %c0_i32_0 = arith.constant 0 : i32
    %2 = arith.cmpi ne, %1, %c0_i32_0 : i32
    scf.if %2 {
      %cst_16 = arith.constant 0.000000e+00 : f32
      %20 = vector.broadcast %cst_16 : f32 to vector<32x256xf32>
      %c0_17 = arith.constant 0 : index
      %c0_18 = arith.constant 0 : index
      %21 = vector.load %arg11[%c0_17, %c0_18] : memref<32x256xf32, #tpu.memory_space<vmem>>, vector<32x256xf32>
      tpu.vector_store %arg11[%c0_17, %c0_18], %20 {strides = array<i32>} : memref<32x256xf32, #tpu.memory_space<vmem>>, vector<32x256xf32>,
    } else {
    }
    %c0 = arith.constant 0 : index
    %c0_1 = arith.constant 0 : index
    %3 = vector.load %arg2[%c0, %c0_1] : memref<32x256xbf16, #tpu.memory_space<vmem>>, vector<32x256xbf16>
    %c0_2 = arith.constant 0 : index
    %c0_3 = arith.constant 0 : index
    %4 = vector.load %arg3[%c0_2, %c0_3] : memref<256x512xbf16, #tpu.memory_space<vmem>>, vector<256x512xbf16>
    %cst = arith.constant dense<0.000000e+00> : vector<32x512xf32>
    %5 = tpu.matmul %3, %4, %cst {dimension_numbers = #tpu.dot_dimension_numbers<[1], [0], [0], [1], [0, 0, 1, 1], [], []>} : vector<32x256xbf16>, vector<256x512xbf16>, vector<32x512xf32> -> vector<32x512xf32>
    %c0_4 = arith.constant 0 : index
    %c0_5 = arith.constant 0 : index
    %6 = vector.load %arg4[%c0_4, %c0_5] : memref<1x512xf32, #tpu.memory_space<vmem>>, vector<1x512xf32>
    %7 = vector.broadcast %6 : vector<1x512xf32> to vector<32x512xf32>
    %8 = arith.addf %5, %7 : vector<32x512xf32>
    %cst_6 = arith.constant 0.000000e+00 : f32
    %9 = vector.broadcast %cst_6 : f32 to vector<32x512xf32>
    %10 = arith.maximumf %8, %9 : vector<32x512xf32>
    %c0_7 = arith.constant 0 : index
    %c0_8 = arith.constant 0 : index
    %11 = vector.load %arg11[%c0_7, %c0_8] : memref<32x256xf32, #tpu.memory_space<vmem>>, vector<32x256xf32>
    %12 = arith.truncf %10 : vector<32x512xf32> to vector<32x512xbf16>
    %c0_9 = arith.constant 0 : index
    %c0_10 = arith.constant 0 : index
    %13 = vector.load %arg5[%c0_9, %c0_10] : memref<512x256xbf16, #tpu.memory_space<vmem>>, vector<512x256xbf16>
    %cst_11 = arith.constant dense<0.000000e+00> : vector<32x256xf32>
    %14 = tpu.matmul %12, %13, %cst_11 {dimension_numbers = #tpu.dot_dimension_numbers<[1], [0], [0], [1], [0, 0, 1, 1], [], []>} : vector<32x512xbf16>, vector<512x256xbf16>, vector<32x256xf32> -> vector<32x256xf32>
    %15 = arith.addf %11, %14 : vector<32x256xf32>
    %c0_12 = arith.constant 0 : index
    %c0_13 = arith.constant 0 : index
    %16 = vector.load %arg11[%c0_12, %c0_13] : memref<32x256xf32, #tpu.memory_space<vmem>>, vector<32x256xf32>
    tpu.vector_store %arg11[%c0_12, %c0_13], %15 {strides = array<i32>} : memref<32x256xf32, #tpu.memory_space<vmem>>, vector<32x256xf32>,
    %c0_i32_14 = arith.constant 0 : i32
    %17 = arith.cmpi eq, %arg1, %c0_i32_14 : i32
    %18 = arith.extui %17 : i1 to i32
    %c0_i32_15 = arith.constant 0 : i32
    %19 = arith.cmpi ne, %18, %c0_i32_15 : i32
    scf.if %19 {
      %c0_16 = arith.constant 0 : index
      %c0_17 = arith.constant 0 : index
      %20 = vector.load %arg11[%c0_16, %c0_17] : memref<32x256xf32, #tpu.memory_space<vmem>>, vector<32x256xf32>
      %c0_18 = arith.constant 0 : index
      %c0_19 = arith.constant 0 : index
      %21 = vector.load %arg6[%c0_18, %c0_19] : memref<1x256xf32, #tpu.memory_space<vmem>>, vector<1x256xf32>
      %22 = vector.broadcast %21 : vector<1x256xf32> to vector<32x256xf32>
      %23 = arith.addf %20, %22 : vector<32x256xf32>
      %c0_20 = arith.constant 0 : index
      %c0_21 = arith.constant 0 : index
      %24 = vector.load %arg7[%c0_20, %c0_21] : memref<32x256xbf16, #tpu.memory_space<vmem>>, vector<32x256xbf16>
      %25 = arith.extf %24 : vector<32x256xbf16> to vector<32x256xf32>
      %26 = arith.addf %23, %25 : vector<32x256xf32>
      %cst_22 = arith.constant dense<0.000000e+00> : vector<32xf32>
      %27 = vector.multi_reduction <add>, %26, %cst_22 [1] : vector<32x256xf32> to vector<32xf32>
      %28 = vector.shape_cast %27 : vector<32xf32> to vector<32x1xf32>
      %cst_23 = arith.constant 2.560000e+02 : f32
      %29 = vector.broadcast %cst_23 : f32 to vector<32x1xf32>
      %30 = arith.divf %28, %29 : vector<32x1xf32>
      %31 = vector.broadcast %30 : vector<32x1xf32> to vector<32x256xf32>
      %32 = arith.subf %26, %31 : vector<32x256xf32>
      %33 = arith.mulf %32, %32 : vector<32x256xf32>
      %cst_24 = arith.constant dense<0.000000e+00> : vector<32xf32>
      %34 = vector.multi_reduction <add>, %33, %cst_24 [1] : vector<32x256xf32> to vector<32xf32>
      %35 = vector.shape_cast %34 : vector<32xf32> to vector<32x1xf32>
      %cst_25 = arith.constant 2.560000e+02 : f32
      %36 = vector.broadcast %cst_25 : f32 to vector<32x1xf32>
      %37 = arith.divf %35, %36 : vector<32x1xf32>
      %cst_26 = arith.constant 9.99999974E-6 : f32
      %38 = vector.broadcast %cst_26 : f32 to vector<32x1xf32>
      %39 = arith.addf %37, %38 : vector<32x1xf32>
      %40 = math.rsqrt %39 : vector<32x1xf32>
      %41 = vector.broadcast %40 : vector<32x1xf32> to vector<32x256xf32>
      %42 = arith.mulf %32, %41 : vector<32x256xf32>
      %c0_27 = arith.constant 0 : index
      %c0_28 = arith.constant 0 : index
      %43 = vector.load %arg8[%c0_27, %c0_28] : memref<1x256xf32, #tpu.memory_space<vmem>>, vector<1x256xf32>
      %44 = vector.broadcast %43 : vector<1x256xf32> to vector<32x256xf32>
      %45 = arith.mulf %42, %44 : vector<32x256xf32>
      %c0_29 = arith.constant 0 : index
      %c0_30 = arith.constant 0 : index
      %46 = vector.load %arg9[%c0_29, %c0_30] : memref<1x256xf32, #tpu.memory_space<vmem>>, vector<1x256xf32>
      %47 = vector.broadcast %46 : vector<1x256xf32> to vector<32x256xf32>
      %48 = arith.addf %45, %47 : vector<32x256xf32>
      %49 = arith.truncf %48 : vector<32x256xf32> to vector<32x256xbf16>
      %c0_31 = arith.constant 0 : index
      %c0_32 = arith.constant 0 : index
      %50 = vector.load %arg10[%c0_31, %c0_32] : memref<32x256xbf16, #tpu.memory_space<vmem>>, vector<32x256xbf16>
      tpu.vector_store %arg10[%c0_31, %c0_32], %49 {strides = array<i32>} : memref<32x256xbf16, #tpu.memory_space<vmem>>, vector<32x256xbf16>,
    } else {
    }
    return
  }
  func.func @transform_0(%arg0: i32, %arg1: i32) -> (i32, i32) {
    %c0_i32 = arith.constant 0 : i32
    %c0_i32_0 = arith.constant 0 : i32
    return %arg0, %c0_i32 : i32, i32
  }
  func.func @transform_1(%arg0: i32, %arg1: i32) -> (i32, i32) {
    %c0_i32 = arith.constant 0 : i32
    %c0_i32_0 = arith.constant 0 : i32
    return %c0_i32, %arg1 : i32, i32
  }
  func.func @transform_2(%arg0: i32, %arg1: i32) -> (i32, i32) {
    %c0_i32 = arith.constant 0 : i32
    %c0_i32_0 = arith.constant 0 : i32
    return %c0_i32, %arg1 : i32, i32
  }
  func.func @transform_3(%arg0: i32, %arg1: i32) -> (i32, i32) {
    %c0_i32 = arith.constant 0 : i32
    %c0_i32_0 = arith.constant 0 : i32
    return %arg1, %c0_i32 : i32, i32
  }
  func.func @transform_4(%arg0: i32, %arg1: i32) -> (i32, i32) {
    %c0_i32 = arith.constant 0 : i32
    %c0_i32_0 = arith.constant 0 : i32
    %c0_i32_1 = arith.constant 0 : i32
    return %c0_i32, %c0_i32_0 : i32, i32
  }
  func.func @transform_5(%arg0: i32, %arg1: i32) -> (i32, i32) {
    %c0_i32 = arith.constant 0 : i32
    %c0_i32_0 = arith.constant 0 : i32
    return %arg0, %c0_i32 : i32, i32
  }
  func.func @transform_6(%arg0: i32, %arg1: i32) -> (i32, i32) {
    %c0_i32 = arith.constant 0 : i32
    %c0_i32_0 = arith.constant 0 : i32
    %c0_i32_1 = arith.constant 0 : i32
    return %c0_i32, %c0_i32_0 : i32, i32
  }
  func.func @transform_7(%arg0: i32, %arg1: i32) -> (i32, i32) {
    %c0_i32 = arith.constant 0 : i32
    %c0_i32_0 = arith.constant 0 : i32
    %c0_i32_1 = arith.constant 0 : i32
    return %c0_i32, %c0_i32_0 : i32, i32
  }
  func.func @transform_8(%arg0: i32, %arg1: i32) -> (i32, i32) {
    %c0_i32 = arith.constant 0 : i32
    %c0_i32_0 = arith.constant 0 : i32
    return %arg0, %c0_i32 : i32, i32
  }
}

module attributes {stable_mosaic.version = 11 : i64} {
  func.func @_linear_add_ln_kernel(%arg0: i32, %arg1: i32, %arg2: memref<32x256xbf16, #tpu.memory_space<vmem>>, %arg3: memref<256x256xbf16, #tpu.memory_space<vmem>>, %arg4: memref<1x256xf32, #tpu.memory_space<vmem>>, %arg5: memref<32x256xbf16, #tpu.memory_space<vmem>>, %arg6: memref<1x256xf32, #tpu.memory_space<vmem>>, %arg7: memref<1x256xf32, #tpu.memory_space<vmem>>, %arg8: memref<32x256xbf16, #tpu.memory_space<vmem>>, %arg9: memref<32x256xf32, #tpu.memory_space<vmem>>) attributes {dimension_semantics = [#tpu.dimension_semantics<parallel>, #tpu.dimension_semantics<arbitrary>], iteration_bounds = array<i64: 1, 1>, scalar_prefetch = 0 : i64, scratch_operands = 1 : i64, tpu.core_type = #tpu.core_type<tc>, window_params = [{transform_indices = @transform_0, window_bounds = array<i64: 32, 256>}, {transform_indices = @transform_1, window_bounds = array<i64: 256, 256>}, {pipeline_mode = #tpu.pipeline_mode<synchronous>, transform_indices = @transform_2, window_bounds = array<i64: 1, 256>}, {transform_indices = @transform_3, window_bounds = array<i64: 32, 256>}, {pipeline_mode = #tpu.pipeline_mode<synchronous>, transform_indices = @transform_4, window_bounds = array<i64: 1, 256>}, {pipeline_mode = #tpu.pipeline_mode<synchronous>, transform_indices = @transform_5, window_bounds = array<i64: 1, 256>}, {transform_indices = @transform_6, window_bounds = array<i64: 32, 256>}]} {
    %c0_i32 = arith.constant 0 : i32
    %0 = arith.cmpi eq, %arg1, %c0_i32 : i32
    %1 = arith.extui %0 : i1 to i32
    %c0_i32_0 = arith.constant 0 : i32
    %2 = arith.cmpi ne, %1, %c0_i32_0 : i32
    scf.if %2 {
      %cst_10 = arith.constant 0.000000e+00 : f32
      %12 = vector.broadcast %cst_10 : f32 to vector<32x256xf32>
      %c0_11 = arith.constant 0 : index
      %c0_12 = arith.constant 0 : index
      %13 = vector.load %arg9[%c0_11, %c0_12] : memref<32x256xf32, #tpu.memory_space<vmem>>, vector<32x256xf32>
      tpu.vector_store %arg9[%c0_11, %c0_12], %12 {strides = array<i32>} : memref<32x256xf32, #tpu.memory_space<vmem>>, vector<32x256xf32>,
    } else {
    }
    %c0 = arith.constant 0 : index
    %c0_1 = arith.constant 0 : index
    %3 = vector.load %arg9[%c0, %c0_1] : memref<32x256xf32, #tpu.memory_space<vmem>>, vector<32x256xf32>
    %c0_2 = arith.constant 0 : index
    %c0_3 = arith.constant 0 : index
    %4 = vector.load %arg2[%c0_2, %c0_3] : memref<32x256xbf16, #tpu.memory_space<vmem>>, vector<32x256xbf16>
    %c0_4 = arith.constant 0 : index
    %c0_5 = arith.constant 0 : index
    %5 = vector.load %arg3[%c0_4, %c0_5] : memref<256x256xbf16, #tpu.memory_space<vmem>>, vector<256x256xbf16>
    %cst = arith.constant dense<0.000000e+00> : vector<32x256xf32>
    %6 = tpu.matmul %4, %5, %cst {dimension_numbers = #tpu.dot_dimension_numbers<[1], [0], [0], [1], [0, 0, 1, 1], [], []>} : vector<32x256xbf16>, vector<256x256xbf16>, vector<32x256xf32> -> vector<32x256xf32>
    %7 = arith.addf %3, %6 : vector<32x256xf32>
    %c0_6 = arith.constant 0 : index
    %c0_7 = arith.constant 0 : index
    %8 = vector.load %arg9[%c0_6, %c0_7] : memref<32x256xf32, #tpu.memory_space<vmem>>, vector<32x256xf32>
    tpu.vector_store %arg9[%c0_6, %c0_7], %7 {strides = array<i32>} : memref<32x256xf32, #tpu.memory_space<vmem>>, vector<32x256xf32>,
    %c0_i32_8 = arith.constant 0 : i32
    %9 = arith.cmpi eq, %arg1, %c0_i32_8 : i32
    %10 = arith.extui %9 : i1 to i32
    %c0_i32_9 = arith.constant 0 : i32
    %11 = arith.cmpi ne, %10, %c0_i32_9 : i32
    scf.if %11 {
      %c0_10 = arith.constant 0 : index
      %c0_11 = arith.constant 0 : index
      %12 = vector.load %arg9[%c0_10, %c0_11] : memref<32x256xf32, #tpu.memory_space<vmem>>, vector<32x256xf32>
      %c0_12 = arith.constant 0 : index
      %c0_13 = arith.constant 0 : index
      %13 = vector.load %arg4[%c0_12, %c0_13] : memref<1x256xf32, #tpu.memory_space<vmem>>, vector<1x256xf32>
      %14 = vector.broadcast %13 : vector<1x256xf32> to vector<32x256xf32>
      %15 = arith.addf %12, %14 : vector<32x256xf32>
      %c0_14 = arith.constant 0 : index
      %c0_15 = arith.constant 0 : index
      %16 = vector.load %arg5[%c0_14, %c0_15] : memref<32x256xbf16, #tpu.memory_space<vmem>>, vector<32x256xbf16>
      %17 = arith.extf %16 : vector<32x256xbf16> to vector<32x256xf32>
      %18 = arith.addf %15, %17 : vector<32x256xf32>
      %cst_16 = arith.constant dense<0.000000e+00> : vector<32xf32>
      %19 = vector.multi_reduction <add>, %18, %cst_16 [1] : vector<32x256xf32> to vector<32xf32>
      %20 = vector.shape_cast %19 : vector<32xf32> to vector<32x1xf32>
      %cst_17 = arith.constant 2.560000e+02 : f32
      %21 = vector.broadcast %cst_17 : f32 to vector<32x1xf32>
      %22 = arith.divf %20, %21 : vector<32x1xf32>
      %23 = vector.broadcast %22 : vector<32x1xf32> to vector<32x256xf32>
      %24 = arith.subf %18, %23 : vector<32x256xf32>
      %25 = arith.mulf %24, %24 : vector<32x256xf32>
      %cst_18 = arith.constant dense<0.000000e+00> : vector<32xf32>
      %26 = vector.multi_reduction <add>, %25, %cst_18 [1] : vector<32x256xf32> to vector<32xf32>
      %27 = vector.shape_cast %26 : vector<32xf32> to vector<32x1xf32>
      %cst_19 = arith.constant 2.560000e+02 : f32
      %28 = vector.broadcast %cst_19 : f32 to vector<32x1xf32>
      %29 = arith.divf %27, %28 : vector<32x1xf32>
      %cst_20 = arith.constant 9.99999974E-6 : f32
      %30 = vector.broadcast %cst_20 : f32 to vector<32x1xf32>
      %31 = arith.addf %29, %30 : vector<32x1xf32>
      %32 = math.rsqrt %31 : vector<32x1xf32>
      %33 = vector.broadcast %32 : vector<32x1xf32> to vector<32x256xf32>
      %34 = arith.mulf %24, %33 : vector<32x256xf32>
      %c0_21 = arith.constant 0 : index
      %c0_22 = arith.constant 0 : index
      %35 = vector.load %arg6[%c0_21, %c0_22] : memref<1x256xf32, #tpu.memory_space<vmem>>, vector<1x256xf32>
      %36 = vector.broadcast %35 : vector<1x256xf32> to vector<32x256xf32>
      %37 = arith.mulf %34, %36 : vector<32x256xf32>
      %c0_23 = arith.constant 0 : index
      %c0_24 = arith.constant 0 : index
      %38 = vector.load %arg7[%c0_23, %c0_24] : memref<1x256xf32, #tpu.memory_space<vmem>>, vector<1x256xf32>
      %39 = vector.broadcast %38 : vector<1x256xf32> to vector<32x256xf32>
      %40 = arith.addf %37, %39 : vector<32x256xf32>
      %41 = arith.truncf %40 : vector<32x256xf32> to vector<32x256xbf16>
      %c0_25 = arith.constant 0 : index
      %c0_26 = arith.constant 0 : index
      %42 = vector.load %arg8[%c0_25, %c0_26] : memref<32x256xbf16, #tpu.memory_space<vmem>>, vector<32x256xbf16>
      tpu.vector_store %arg8[%c0_25, %c0_26], %41 {strides = array<i32>} : memref<32x256xbf16, #tpu.memory_space<vmem>>, vector<32x256xbf16>,
    } else {
    }
    return
  }
  func.func @transform_0(%arg0: i32, %arg1: i32) -> (i32, i32) {
    %c0_i32 = arith.constant 0 : i32
    return %arg0, %arg1 : i32, i32
  }
  func.func @transform_1(%arg0: i32, %arg1: i32) -> (i32, i32) {
    %c0_i32 = arith.constant 0 : i32
    %c0_i32_0 = arith.constant 0 : i32
    return %arg1, %c0_i32 : i32, i32
  }
  func.func @transform_2(%arg0: i32, %arg1: i32) -> (i32, i32) {
    %c0_i32 = arith.constant 0 : i32
    %c0_i32_0 = arith.constant 0 : i32
    %c0_i32_1 = arith.constant 0 : i32
    return %c0_i32, %c0_i32_0 : i32, i32
  }
  func.func @transform_3(%arg0: i32, %arg1: i32) -> (i32, i32) {
    %c0_i32 = arith.constant 0 : i32
    %c0_i32_0 = arith.constant 0 : i32
    return %arg0, %c0_i32 : i32, i32
  }
  func.func @transform_4(%arg0: i32, %arg1: i32) -> (i32, i32) {
    %c0_i32 = arith.constant 0 : i32
    %c0_i32_0 = arith.constant 0 : i32
    %c0_i32_1 = arith.constant 0 : i32
    return %c0_i32, %c0_i32_0 : i32, i32
  }
  func.func @transform_5(%arg0: i32, %arg1: i32) -> (i32, i32) {
    %c0_i32 = arith.constant 0 : i32
    %c0_i32_0 = arith.constant 0 : i32
    %c0_i32_1 = arith.constant 0 : i32
    return %c0_i32, %c0_i32_0 : i32, i32
  }
  func.func @transform_6(%arg0: i32, %arg1: i32) -> (i32, i32) {
    %c0_i32 = arith.constant 0 : i32
    %c0_i32_0 = arith.constant 0 : i32
    return %arg0, %c0_i32 : i32, i32
  }
}

module attributes {stable_mosaic.version = 11 : i64} {
  func.func @_ln_kernel(%arg0: i32, %arg1: memref<32x256xbf16, #tpu.memory_space<vmem>>, %arg2: memref<1x256xf32, #tpu.memory_space<vmem>>, %arg3: memref<1x256xf32, #tpu.memory_space<vmem>>, %arg4: memref<32x256xf32, #tpu.memory_space<vmem>>) attributes {dimension_semantics = [#tpu.dimension_semantics<parallel>], iteration_bounds = array<i64: 1>, scalar_prefetch = 0 : i64, scratch_operands = 0 : i64, tpu.core_type = #tpu.core_type<tc>, window_params = [{transform_indices = @transform_0, window_bounds = array<i64: 32, 256>}, {pipeline_mode = #tpu.pipeline_mode<synchronous>, transform_indices = @transform_1, window_bounds = array<i64: 1, 256>}, {pipeline_mode = #tpu.pipeline_mode<synchronous>, transform_indices = @transform_2, window_bounds = array<i64: 1, 256>}, {transform_indices = @transform_3, window_bounds = array<i64: 32, 256>}]} {
    %c0 = arith.constant 0 : index
    %c0_0 = arith.constant 0 : index
    %0 = vector.load %arg1[%c0, %c0_0] : memref<32x256xbf16, #tpu.memory_space<vmem>>, vector<32x256xbf16>
    %1 = arith.extf %0 : vector<32x256xbf16> to vector<32x256xf32>
    %cst = arith.constant dense<0.000000e+00> : vector<32xf32>
    %2 = vector.multi_reduction <add>, %1, %cst [1] : vector<32x256xf32> to vector<32xf32>
    %3 = vector.shape_cast %2 : vector<32xf32> to vector<32x1xf32>
    %cst_1 = arith.constant 2.560000e+02 : f32
    %4 = vector.broadcast %cst_1 : f32 to vector<32x1xf32>
    %5 = arith.divf %3, %4 : vector<32x1xf32>
    %6 = vector.broadcast %5 : vector<32x1xf32> to vector<32x256xf32>
    %7 = arith.subf %1, %6 : vector<32x256xf32>
    %8 = arith.mulf %7, %7 : vector<32x256xf32>
    %cst_2 = arith.constant dense<0.000000e+00> : vector<32xf32>
    %9 = vector.multi_reduction <add>, %8, %cst_2 [1] : vector<32x256xf32> to vector<32xf32>
    %10 = vector.shape_cast %9 : vector<32xf32> to vector<32x1xf32>
    %cst_3 = arith.constant 2.560000e+02 : f32
    %11 = vector.broadcast %cst_3 : f32 to vector<32x1xf32>
    %12 = arith.divf %10, %11 : vector<32x1xf32>
    %cst_4 = arith.constant 9.99999974E-6 : f32
    %13 = vector.broadcast %cst_4 : f32 to vector<32x1xf32>
    %14 = arith.addf %12, %13 : vector<32x1xf32>
    %15 = math.rsqrt %14 : vector<32x1xf32>
    %16 = vector.broadcast %15 : vector<32x1xf32> to vector<32x256xf32>
    %17 = arith.mulf %7, %16 : vector<32x256xf32>
    %c0_5 = arith.constant 0 : index
    %c0_6 = arith.constant 0 : index
    %18 = vector.load %arg2[%c0_5, %c0_6] : memref<1x256xf32, #tpu.memory_space<vmem>>, vector<1x256xf32>
    %19 = vector.broadcast %18 : vector<1x256xf32> to vector<32x256xf32>
    %20 = arith.mulf %17, %19 : vector<32x256xf32>
    %c0_7 = arith.constant 0 : index
    %c0_8 = arith.constant 0 : index
    %21 = vector.load %arg3[%c0_7, %c0_8] : memref<1x256xf32, #tpu.memory_space<vmem>>, vector<1x256xf32>
    %22 = vector.broadcast %21 : vector<1x256xf32> to vector<32x256xf32>
    %23 = arith.addf %20, %22 : vector<32x256xf32>
    %c0_9 = arith.constant 0 : index
    %c0_10 = arith.constant 0 : index
    %24 = vector.load %arg4[%c0_9, %c0_10] : memref<32x256xf32, #tpu.memory_space<vmem>>, vector<32x256xf32>
    tpu.vector_store %arg4[%c0_9, %c0_10], %23 {strides = array<i32>} : memref<32x256xf32, #tpu.memory_space<vmem>>, vector<32x256xf32>,
    return
  }
  func.func @transform_0(%arg0: i32) -> (i32, i32) {
    %c0_i32 = arith.constant 0 : i32
    %c0_i32_0 = arith.constant 0 : i32
    return %arg0, %c0_i32 : i32, i32
  }
  func.func @transform_1(%arg0: i32) -> (i32, i32) {
    %c0_i32 = arith.constant 0 : i32
    %c0_i32_0 = arith.constant 0 : i32
    %c0_i32_1 = arith.constant 0 : i32
    return %c0_i32, %c0_i32_0 : i32, i32
  }
  func.func @transform_2(%arg0: i32) -> (i32, i32) {
    %c0_i32 = arith.constant 0 : i32
    %c0_i32_0 = arith.constant 0 : i32
    %c0_i32_1 = arith.constant 0 : i32
    return %c0_i32, %c0_i32_0 : i32, i32
  }
  func.func @transform_3(%arg0: i32) -> (i32, i32) {
    %c0_i32 = arith.constant 0 : i32
    %c0_i32_0 = arith.constant 0 : i32
    return %arg0, %c0_i32 : i32, i32
  }
}

module attributes {stable_mosaic.version = 11 : i64} {
  func.func @_matmul_bias_kernel(%arg0: i32, %arg1: i32, %arg2: i32, %arg3: memref<32x256xbf16, #tpu.memory_space<vmem>>, %arg4: memref<256x256xbf16, #tpu.memory_space<vmem>>, %arg5: memref<1x256xf32, #tpu.memory_space<vmem>>, %arg6: memref<32x256xbf16, #tpu.memory_space<vmem>>, %arg7: memref<32x256xf32, #tpu.memory_space<vmem>>) attributes {dimension_semantics = [#tpu.dimension_semantics<parallel>, #tpu.dimension_semantics<parallel>, #tpu.dimension_semantics<arbitrary>], iteration_bounds = array<i64: 1, 3, 1>, scalar_prefetch = 0 : i64, scratch_operands = 1 : i64, tpu.core_type = #tpu.core_type<tc>, window_params = [{transform_indices = @transform_0, window_bounds = array<i64: 32, 256>}, {transform_indices = @transform_1, window_bounds = array<i64: 256, 256>}, {transform_indices = @transform_2, window_bounds = array<i64: 1, 256>}, {transform_indices = @transform_3, window_bounds = array<i64: 32, 256>}]} {
    %c0_i32 = arith.constant 0 : i32
    %0 = arith.cmpi eq, %arg2, %c0_i32 : i32
    %1 = arith.extui %0 : i1 to i32
    %c0_i32_0 = arith.constant 0 : i32
    %2 = arith.cmpi ne, %1, %c0_i32_0 : i32
    scf.if %2 {
      %cst_10 = arith.constant 0.000000e+00 : f32
      %12 = vector.broadcast %cst_10 : f32 to vector<32x256xf32>
      %c0_11 = arith.constant 0 : index
      %c0_12 = arith.constant 0 : index
      %13 = vector.load %arg7[%c0_11, %c0_12] : memref<32x256xf32, #tpu.memory_space<vmem>>, vector<32x256xf32>
      tpu.vector_store %arg7[%c0_11, %c0_12], %12 {strides = array<i32>} : memref<32x256xf32, #tpu.memory_space<vmem>>, vector<32x256xf32>,
    } else {
    }
    %c0 = arith.constant 0 : index
    %c0_1 = arith.constant 0 : index
    %3 = vector.load %arg7[%c0, %c0_1] : memref<32x256xf32, #tpu.memory_space<vmem>>, vector<32x256xf32>
    %c0_2 = arith.constant 0 : index
    %c0_3 = arith.constant 0 : index
    %4 = vector.load %arg3[%c0_2, %c0_3] : memref<32x256xbf16, #tpu.memory_space<vmem>>, vector<32x256xbf16>
    %c0_4 = arith.constant 0 : index
    %c0_5 = arith.constant 0 : index
    %5 = vector.load %arg4[%c0_4, %c0_5] : memref<256x256xbf16, #tpu.memory_space<vmem>>, vector<256x256xbf16>
    %cst = arith.constant dense<0.000000e+00> : vector<32x256xf32>
    %6 = tpu.matmul %4, %5, %cst {dimension_numbers = #tpu.dot_dimension_numbers<[1], [0], [0], [1], [0, 0, 1, 1], [], []>} : vector<32x256xbf16>, vector<256x256xbf16>, vector<32x256xf32> -> vector<32x256xf32>
    %7 = arith.addf %3, %6 : vector<32x256xf32>
    %c0_6 = arith.constant 0 : index
    %c0_7 = arith.constant 0 : index
    %8 = vector.load %arg7[%c0_6, %c0_7] : memref<32x256xf32, #tpu.memory_space<vmem>>, vector<32x256xf32>
    tpu.vector_store %arg7[%c0_6, %c0_7], %7 {strides = array<i32>} : memref<32x256xf32, #tpu.memory_space<vmem>>, vector<32x256xf32>,
    %c0_i32_8 = arith.constant 0 : i32
    %9 = arith.cmpi eq, %arg2, %c0_i32_8 : i32
    %10 = arith.extui %9 : i1 to i32
    %c0_i32_9 = arith.constant 0 : i32
    %11 = arith.cmpi ne, %10, %c0_i32_9 : i32
    scf.if %11 {
      %c0_10 = arith.constant 0 : index
      %c0_11 = arith.constant 0 : index
      %12 = vector.load %arg7[%c0_10, %c0_11] : memref<32x256xf32, #tpu.memory_space<vmem>>, vector<32x256xf32>
      %c0_12 = arith.constant 0 : index
      %c0_13 = arith.constant 0 : index
      %13 = vector.load %arg5[%c0_12, %c0_13] : memref<1x256xf32, #tpu.memory_space<vmem>>, vector<1x256xf32>
      %14 = vector.broadcast %13 : vector<1x256xf32> to vector<32x256xf32>
      %15 = arith.addf %12, %14 : vector<32x256xf32>
      %16 = arith.truncf %15 : vector<32x256xf32> to vector<32x256xbf16>
      %c0_14 = arith.constant 0 : index
      %c0_15 = arith.constant 0 : index
      %17 = vector.load %arg6[%c0_14, %c0_15] : memref<32x256xbf16, #tpu.memory_space<vmem>>, vector<32x256xbf16>
      tpu.vector_store %arg6[%c0_14, %c0_15], %16 {strides = array<i32>} : memref<32x256xbf16, #tpu.memory_space<vmem>>, vector<32x256xbf16>,
    } else {
    }
    return
  }
  func.func @transform_0(%arg0: i32, %arg1: i32, %arg2: i32) -> (i32, i32) {
    %c0_i32 = arith.constant 0 : i32
    return %arg0, %arg2 : i32, i32
  }
  func.func @transform_1(%arg0: i32, %arg1: i32, %arg2: i32) -> (i32, i32) {
    %c0_i32 = arith.constant 0 : i32
    return %arg2, %arg1 : i32, i32
  }
  func.func @transform_2(%arg0: i32, %arg1: i32, %arg2: i32) -> (i32, i32) {
    %c0_i32 = arith.constant 0 : i32
    %c0_i32_0 = arith.constant 0 : i32
    return %c0_i32, %arg1 : i32, i32
  }
  func.func @transform_3(%arg0: i32, %arg1: i32, %arg2: i32) -> (i32, i32) {
    %c0_i32 = arith.constant 0 : i32
    return %arg0, %arg1 : i32, i32
  }
}

</mosaic_0001>

<bundles_post_ra>
// kernel: encoder_forward.10
= control target key start
LH: loop header
LB: loop body
LE: loop exit
PB: predicated region body
PF: predicated region fallthrough
CT: control target
= control target key end

     0   :  { %s1164_s0 = inlined_call_operand.vmem [shape: bf16[32,768], index: 0, kind: input, shape index: {}, may-alias: {0,1,2}]   ;;  %s1165_s1 = inlined_call_operand.vmem [shape: bf16[32,768], index: 1, kind: input, shape index: {}, may-alias: {0,1,2}]   ;;  %s1166_s2 = inlined_call_operand.vmem [shape: bf16[32,768], index: 2, kind: input, shape index: {}, may-alias: {0,1,2}]   ;;  %s1167_s3 = inlined_call_operand.vmem [shape: bf16[32,256], index: 3, kind: output, shape index: {}]  }
   0x1   :  { %1170 = sst [smem:[#allocation9_spill]] %s1167_s3 }
   0x2   :  { %s965_s12 = smov 0   ;;  %s967_s13 = smov 0  }
   0x3   :  { %s969_s14 = smov 0   ;;  %s971_s15 = smov 0  }
   0x4   :  { %s973_s16 = smov 0   ;;  %s975_s17 = smov 0  }
   0x5   :  { %s977_s18 = smov 0   ;;  %s979_s19 = smov 0  }
   0x6   :  { %s981_s20 = smov 0   ;;  %s983_s21 = smov 0  }
   0x7   :  { %s985_s22 = smov 0  }
   0x8 LB: > { %s22_s24 = sadd.s32 1, %s933_s20  ;;  %s25_s25 = sadd.s32 1, %s937_s21  ;;  %s941_s22 = sphi %s985_s22, %s13_s22   ;;  %s937_s21 = sphi %s983_s21, %s1192_s21   ;;  %s933_s20 = sphi %s981_s20, %s1191_s20   ;;  %s929_s19 = sphi %s979_s19, %s1190_s19   ;;  %s925_s18 = sphi %s977_s18, %s1189_s18   ;;  %s921_s17 = sphi %s975_s17, %s1188_s17   ;;  %s917_s16 = sphi %s973_s16, %s1187_s16   ;;  %s913_s15 = sphi %s971_s15, %s1186_s15   ;;  %s909_s14 = sphi %s969_s14, %s1185_s14   ;;  %s905_s13 = sphi %s967_s13, %s1184_s13   ;;  %s901_s12 = sphi %s965_s12, %s1183_s12  }
   0x9   : > { %p23_p0 = scmp.ge.s32.totalorder %s22_s24, 2  ;;  %s34_s26 = sadd.s32 1, %s921_s17 }
   0xa   : > { %p41_p1 = scmp.ne.s32.totalorder %s921_s17, %s917_s16  ;;  %p42_p2 = scmp.eq.s32.totalorder %s941_s22, 0 }
   0xb   : > { %s1194_s24 = smov (%p23_p0, %s22_s24), 0  ;;  %s1196_s25 = smov (!%p23_p0, %s25_s25), %s937_s21 }
   0xc   : > { %1171 = sst [smem:[#allocation6_spill]] %s1194_s24  ;;  %s30_s27 = ssub.s32 %s933_s20, %s1194_s24 }
   0xd   : > { %p27_p3 = scmp.ge.s32.totalorder %s1196_s25, 2  ;;  %s57_s28 = sadd.s32 2, %s933_s20 }
   0xe   : > { %p1038_p4 = por %p42_p2, %p41_p1  ;;  %s58_s30 = sadd.s32 2, %s1194_s24 }
   0xf   : > { %s1198_s25 = smov (%p27_p3, %s1196_s25), 0  ;;  %s60_s4 = ssub.s32 %s57_s28, %s58_s30 }
  0x10   : > { %1173 = sst [smem:[#allocation7_spill]] %s1198_s25  ;;  %s64_s5 = sadd.s32 1, %s913_s15 }
  0x11   : > { %s29_s6 = ssub.s32 %s937_s21, %s1198_s25  ;;  %p71_p5 = scmp.ne.s32.totalorder %s913_s15, %s909_s14 }
  0x12   : > { %s31_s7 = sor.u32 %s30_s27, %s29_s6  ;;  %s61_s8 = sor.u32 %s60_s4, %s29_s6 }
  0x13   : > { %p32_p6 = scmp.eq.s32.totalorder %s31_s7, 0  ;;  %p62_p7 = scmp.eq.s32.totalorder %s61_s8, 0 }
  0x14   : > { %p1052_p8 = por %p71_p5, %p42_p2  ;;  %s87_s10 = sadd.s32 4, %s933_s20 }
  0x15   : > { %s1058_s11 = scalar_select %p32_p6, %s921_s17, %s34_s26  }
  0x16   : > { %s1061_s28 = scalar_select %p62_p7, %s913_s15, %s64_s5  }
  0x17   : > { %1175 = sst [smem:[#allocation8_spill]] %s1058_s11  ;;  %s88_s30 = sadd.s32 4, %s1194_s24 }
  0x18   : > { %s94_s23 = sadd.s32 1, %s905_s13  ;;  %s90_s25 = ssub.s32 %s87_s10, %s88_s30 }
  0x19   : > { %p101_p9 = scmp.ne.s32.totalorder %s905_s13, %s901_s12  ;;  %s91_s27 = sor.u32 %s90_s25, %s29_s6 }
  0x1a   : > { %s1176_s3 = sadd.s32 4294967295, %s941_s22   ;;  %p92_p11 = scmp.eq.s32.totalorder %s91_s27, 0 }
  0x1b   : > { %p133_p10 = scmp.eq.s32.totalorder %s1176_s3, 3  ;;  %p1071_p12 = por %p101_p9, %p42_p2 }
  0x1c   : > { %s1083_s26 = scalar_select %p92_p11, %s905_s13, %s94_s23  }
  0x1d   : > { %p1078_p13 = por %p133_p10, %p41_p1  ;;  %p699_p0 = scmp.ge.s32.totalorder %s941_s22, 4 }
  0x1f   : > { %155 = sbr.rel (%p699_p0) target bundleno = 62 (0x3e), region = 16 }
  0x26   : > { %158 = sbr.rel (!%p1038_p4) target bundleno = 46 (0x2e), region = 20  ;;  %s160_s3 = sand.u32 (%p1038_p4), 1, %s921_s17  }
  0x27   : > { %s753_s25 = smul.u32 (%p1038_p4), 12, %s937_s21  ;;  %s700_s5 = sshll.u32 (%p1038_p4), %s160_s3, 3 }
  0x28   : > { %s162_s23 = scalar_lea.vmem (%p1038_p4), [#allocation2], %s700_s5 }
  0x29   : > { %s165_s6 = sadd.s32 (%p1038_p4), %s933_s20, %s753_s25 }
  0x2a   : > { %s703_s8 = sshll.u32 (%p1038_p4), %s165_s6, 2 }
  0x2b   : > { %s167_s27 = scalar_lea.vmem (%p1038_p4), %s1164_s0, %s703_s8 }
  0x2c   : > { %v183_v0 = vld [vmem:[%s167_s27] sm:$0xf] (%p1038_p4)  ;;  %v185_v1 = vld [vmem:[%s167_s27 + $0x18] sm:$0xf] (%p1038_p4) }
  0x2d   : > { %184 = vst [vmem:[%s162_s23] sm:$0xf] %v183_v0  ;;  %186 = vst [vmem:[%s162_s23 + $0x4] sm:$0xf] %v185_v1 }
  0x2e PF: > { %213 = sbr.rel (!%p1052_p8) target bundleno = 54 (0x36), region = 61  ;;  %s215_s29 = sand.u32 (%p1052_p8), 1, %s913_s15  }
  0x2f   : > { %s602_s3 = smul.u32 (%p1052_p8), 12, %s937_s21  ;;  %s704_s25 = sshll.u32 (%p1052_p8), %s215_s29, 3 }
  0x30   : > { %s217_s5 = scalar_lea.vmem (%p1052_p8), [#allocation3], %s704_s25 }
  0x31   : > { %s603_s6 = sadd.s32 (%p1052_p8), %s933_s20, %s602_s3 }
  0x32   : > { %s705_s24 = sshll.u32 (%p1052_p8), %s603_s6, 2 }
  0x33   : > { %s605_s8 = scalar_lea.vmem (%p1052_p8), %s1165_s1, %s705_s24 }
  0x34   : > { %v706_v2 = vld [vmem:[%s605_s8 + $0x8] sm:$0xf] (%p1052_p8)  ;;  %v707_v3 = vld [vmem:[%s605_s8 + $0x20] sm:$0xf] (%p1052_p8) }
  0x35   : > { %240 = vst [vmem:[%s217_s5] sm:$0xf] %v706_v2  ;;  %242 = vst [vmem:[%s217_s5 + $0x4] sm:$0xf] %v707_v3 }
  0x36 PF: > { %269 = sbr.rel (!%p1071_p12) target bundleno = 62 (0x3e), region = 102  ;;  %s271_s9 = sand.u32 (%p1071_p12), 1, %s905_s13  }
  0x37   : > { %s609_s30 = smul.u32 (%p1071_p12), 12, %s937_s21  ;;  %s708_s27 = sshll.u32 (%p1071_p12), %s271_s9, 3 }
  0x38   : > { %s273_s25 = scalar_lea.vmem (%p1071_p12), [#allocation4], %s708_s27 }
  0x39   : > { %s610_s23 = sadd.s32 (%p1071_p12), %s933_s20, %s609_s30 }
  0x3a   : > { %s709_s29 = sshll.u32 (%p1071_p12), %s610_s23, 2 }
  0x3b   : > { %s612_s24 = scalar_lea.vmem (%p1071_p12), %s1166_s2, %s709_s29 }
  0x3c   : > { %v710_v4 = vld [vmem:[%s612_s24 + $0x10] sm:$0xf] (%p1071_p12)  ;;  %v711_v5 = vld [vmem:[%s612_s24 + $0x28] sm:$0xf] (%p1071_p12) }
  0x3d   : > { %296 = vst [vmem:[%s273_s25] sm:$0xf] %v710_v4  ;;  %298 = vst [vmem:[%s273_s25 + $0x4] sm:$0xf] %v711_v5 }
  0x3e PF: > { %p712_p1 = scmp.ge.s32.totalorder %s941_s22, 1  ;;  %p324_p2 = scmp.lt.s32.totalorder %s941_s22, 5 }
  0x40   : > { %p325_p3 = pnand %p712_p1, %p324_p2 }
  0x41   : > { %s338_s4 = sand.u32 (!%p325_p3), 1, %s909_s14   ;;  %s331_s6 = sand.u32 (!%p325_p3), 1, %s917_s16   ;;  %v943_v6 = vmov (!%p325_p3), 0.0   ;;  %vm944_vm0 = vmmov (!%p325_p3), 0   ;;  %vm443_vm1 = vcmask (!%p325_p3), 130048  }
  0x42   : > { %328 = sbr.rel (%p325_p3) target bundleno = 835 (0x343), region = 143  ;;  %741 = vmatprep.subr.bf16.mxu0 (!%p325_p3), %v943_v6  ;;  %s714_s10 = sshll.u32 (!%p325_p3), %s338_s4, 3  ;;  %743 = vmatprep.mubr.msk.bf16.mxu0 (!%p325_p3), %vm944_vm0, %v943_v6 }
  0x43   : > { %s1114_s8 = sshll.u32 (!%p325_p3), %s331_s6, 3  ;;  %747 = vmatprep.subr.bf16.mxu1 (!%p325_p3), %v943_v6  ;;  %749 = vmatprep.mubr.msk.bf16.mxu1 (!%p325_p3), %vm944_vm0, %v943_v6  ;;  %s340_s5 = scalar_lea.vmem (!%p325_p3), [#allocation3], %s714_s10 }
  0x44   : > { %v844_v7 = vld [vmem:[%s340_s5] sm:$0xff] (!%p325_p3)   ;;  %s333_s9 = scalar_lea.vmem (!%p325_p3), [#allocation2], %s1114_s8  ;;  %s345_s14 = sand.u32 (!%p325_p3), 1, %s901_s12  }
  0x45   : > { %742 = vmatpush3.bf16.xpose.msra.mxu0 (!%p325_p3), %v844_v7  ;;  %v845_v8 = vld [vmem:[%s333_s9] sm:$0xff] (!%p325_p3)   ;;  %s715_s16 = sshll.u32 (!%p325_p3), %s345_s14, 3  ;;  %s374_s12 = scalar_lea.vmem (!%p325_p3), [#allocation5], %s1114_s8 }
  0x46   : > { %s347_s30 = scalar_lea.vmem (!%p325_p3), [#allocation4], %s715_s16 }
  0x47   : > { %v846_v27 = vld [vmem:[%s347_s30] sm:$0xff] (!%p325_p3)  }
  0x48   : > { %748 = vmatpush3.bf16.msra.mxu1 (!%p325_p3), %v846_v27 }
  0x49   : > { %s731_s27 = sshll.u32 (%p1078_p13), %s929_s19, 2  ;;  %s1179_s24 = sld [smem:[#allocation9_spill]] (%p1078_p13) }
  0x4a   : > { %s536_s23 = sadd.s32 (%p1078_p13), %s925_s18, %s731_s27 }
  0x4b   : > { %s726_s29 = sshll.u32 (%p1078_p13), %s536_s23, 2 }
  0x4c   : > { %744 = vmatmul.mubr.bf16.vlgmr.msra.gmra.mrb[0].mxu0 %v845_v8 }
  0x4f   : > { %s538_s25 = scalar_lea.vmem (%p1078_p13), %s1179_s24, %s726_s29 }
 0x11f   : > { %v434_v9 = vpop.f32.mrb[0].mxu0 }
 0x120   : > { %v441_v10 = vmul.f32 0.088388346, %v434_v9  ;;  %v745_v11 = vpop.f32.mrb[1].mxu0 }
 0x121   : > { %v437_v12 = vpop.f32.mrb[2].mxu0 }
 0x122   : > { %v442_v13 = vmul.f32 0.088388346, %v437_v12  ;;  %v746_v14 = vpop.f32.mrb[3].mxu0  ;;  %v444_v15 = vsel %vm443_vm1, %v441_v10, -inf }
 0x123   : > { %445 = vmax.xlane.f32.xlu0 %v444_v15 }
 0x124   : > { %v447_v16 = vsel %vm443_vm1, %v442_v13, -inf }
 0x127   : > { %448 = vmax.xlane.f32.xlu0 %v447_v16 }
 0x1b0   : > { %v446_v17 = vpop.xlane.xlu0 %445 }
 0x1b1   : > { %v450_v18 = vsub.f32 %v441_v10, %v446_v17 }
 0x1b3   : > { %v452_v19 = vmul.f32 1.442695, %v450_v18 }
 0x1b4   : > { %v449_v20 = vpop.xlane.xlu0 %448 }
 0x1b5   : > { %847 = vpow2.f32 %v452_v19  ;;  %v451_v21 = vsub.f32 %v442_v13, %v449_v20 }
 0x1b7   : > { %v454_v22 = vmul.f32 1.442695, %v451_v21 }
 0x1b9   : > { %849 = vpow2.f32 %v454_v22 }
 0x1bf   : > { %v848_v23 = vpop.eup %847 }
 0x1c0   : > { %v456_v24 = vsel %vm443_vm1, %v848_v23, 0.0 }
 0x1c1   : > { %457 = vadd.xlane.f32.xlu1 %v456_v24 }
 0x1c3   : > { %v850_v25 = vpop.eup %849 }
 0x1c4   : > { %v459_v26 = vsel %vm443_vm1, %v850_v25, 0.0 }
 0x1c5   : > { %460 = vadd.xlane.f32.xlu1 %v459_v26 }
 0x24e   : > { %v458_v28 = vpop.xlane.xlu1 %457 }
 0x24f   : > { %851 = vrcp.f32 %v458_v28 }
 0x252   : > { %v461_v29 = vpop.xlane.xlu1 %460 }
 0x253   : > { %853 = vrcp.f32 %v461_v29 }
 0x259   : > { %v852_v30 = vpop.eup %851 }
 0x25a   : > { %v464_v32 = vmul.f32 %v852_v30, %v848_v23 }
 0x25d   : > { %v854_v31 = vpop.eup %853 }
 0x25e   : > { %v465_v33 = vmul.f32 %v854_v31, %v850_v25 }
 0x260   : > { %v466_v34 = vpack.c.bf16 %v465_v33, %v464_v32 }
 0x262   : > { %750 = vmatmul.mubr.msk.bf16.vlgmr.msra.gmra.mrb[0].mxu1 %vm443_vm1, %v466_v34 }
 0x334   : > { %533 = sbr.rel (!%p1078_p13) target bundleno = 835 (0x343), region = 159 }
 0x335   : > { %v510_v35 = vpop.f32.mrb[0].mxu1 }
 0x336   : > { %v751_v36 = vpop.f32.mrb[1].mxu1 }
 0x337   : > { %v513_v37 = vpop.f32.mrb[2].mxu1 }
 0x338   : > { %v735_v38 = vpack.c.bf16 %v513_v37, %v510_v35  ;;  %v752_v39 = vpop.f32.mrb[3].mxu1 }
 0x33a   : > { %736 = vst [vmem:[%s374_s12] sm:$0xff] %v735_v38  }
 0x341   : > { %v554_v40 = vld [vmem:[%s374_s12] sm:$0xf]  ;;  %v556_v41 = vld [vmem:[%s374_s12 + $0x4] sm:$0xf] }
 0x342   : > { %555 = vst [vmem:[%s538_s25] sm:$0xf] %v554_v40  ;;  %557 = vst [vmem:[%s538_s25 + $0x8] sm:$0xf] %v556_v41 }
 0x343 PF: > { %s13_s22 = sadd.s32 1, %s941_s22   ;;  %s1180_s18 = sld [smem:[#allocation8_spill]] }
 0x344   : > { %p10_p4 = scmp.ge.s32.totalorder %s13_s22, 6   ;;  %s1181_s7 = sld [smem:[#allocation6_spill]] }
 0x345   : > { %s1182_s4 = sld [smem:[#allocation7_spill]]  ;;  %s1183_s12 = smov %s905_s13 }
 0x346   : > { %s1184_s13 = smov %s1083_s26  ;;  %s1185_s14 = smov %s913_s15 }
 0x347   : > { %s1186_s15 = smov %s1061_s28  ;;  %s1187_s16 = smov %s921_s17 }
 0x348   : > { %s1190_s19 = smov %s937_s21  ;;  %12 = sbr.rel (!%p10_p4) target bundleno = 8 (0x8), region = 247 }
 0x349   : > { %s1188_s17 = smov %s1180_s18  ;;  %s1189_s18 = smov %s933_s20 }
 0x34a   : > { %s1191_s20 = smov %s1181_s7 }
 0x34b   : > { %s1192_s21 = smov %s1182_s4 }

// kernel: encoder_forward.9
= control target key start
LH: loop header
LB: loop body
LE: loop exit
PB: predicated region body
PF: predicated region fallthrough
CT: control target
= control target key end

     0   :  { %8 = vsyncpa [#allocation4], 0  ;;  %s1304_s0 = inlined_call_operand.vmem [shape: bf16[32,256], index: 0, kind: input, shape index: {}]   ;;  %s1305_s1 = inlined_call_operand.hbm [shape: bf16[256,768], index: 1, kind: input, shape index: {}]   ;;  %s1306_s2 = inlined_call_operand.vmem [shape: f32[1,768], index: 2, kind: input, shape index: {}]   ;;  %s1307_s3 = inlined_call_operand.vmem [shape: bf16[32,768], index: 3, kind: output, shape index: {}]  }
   0x1   :  { %10 = vsyncpa [#allocation4 + $0x1], 0  ;;  %s1118_s12 = smov 0   ;;  %s1120_s13 = smov 0  }
   0x2   :  { %s1122_s14 = smov 0   ;;  %s1124_s15 = smov 0  }
   0x3   :  { %s1126_s16 = smov 0   ;;  %s1128_s17 = smov 0  }
   0x4 LB: > { %s805_s18 = sadd.s32 4294967295, %s1092_s17   ;;  %s31_s19 = sadd.s32 1, %s1088_s16  ;;  %s1092_s17 = sphi %s1128_s17, %s16_s17   ;;  %s1088_s16 = sphi %s1126_s16, %s1318_s16   ;;  %s1084_s15 = sphi %s1124_s15, %s1317_s15   ;;  %s1080_s14 = sphi %s1122_s14, %s1316_s14   ;;  %s1076_s13 = sphi %s1120_s13, %s1315_s13   ;;  %s1072_s12 = sphi %s1118_s12, %s1314_s12  }
   0x5   : > { %p33_p0 = scmp.ge.s32.totalorder %s31_s19, 3  ;;  %s72_s20 = sadd.s32 1, %s1080_s14 }
   0x6   : > { %p79_p1 = scmp.ne.s32.totalorder %s1080_s14, %s1076_s13  ;;  %p80_p2 = scmp.eq.s32.totalorder %s1092_s17, 0 }
   0x7   : > { %s1320_s19 = smov (%p33_p0, %s31_s19), 0  ;;  %p85_p4 = scmp.ne.s32.totalorder %s1076_s13, %s1072_s12 }
   0x8   : > { %p1154_p3 = por %p80_p2, %p79_p1  ;;  %s68_s22 = ssub.s32 %s1088_s16, %s1320_s19 }
   0x9   : > { %p86_p5 = scmp.eq.s32.totalorder %s805_s18, 0  ;;  %p70_p6 = scmp.eq.s32.totalorder %s68_s22, 0 }
   0xa   : > { %p137_p7 = scmp.eq.s32.totalorder %s805_s18, 2  ;;  %p906_p10 = scmp.lt.s32.totalorder %s1092_s17, 3 }
   0xb   : > { %p1161_p8 = por %p86_p5, %p85_p4  ;;  %s178_s26 = sand.u32 1, %s1080_s14  }
   0xc   : > { %s1166_s24 = scalar_select %p70_p6, %s1080_s14, %s72_s20  }
   0xd   : > { %p1168_p9 = por %p137_p7, %p79_p1  ;;  %s862_s27 = sshll.u32 %s1088_s16, 7 }
   0xe   : > { %s810_s28 = sshll.u32 %s178_s26, 8  ;;  %s1178_s4 = scalar_lea.hbm %s1305_s1, %s862_s27 }
   0xf   : > { %s1310_s25 = scalar_select %p1168_p9, 1, 0 }
  0x10   : > { %s182_s5 = scalar_lea.vmem [#allocation3], %s810_s28  ;;  %p1182_p11 = pnand %p906_p10, %p1154_p3 }
  0x11   : > { %s192_s6 = sshll.u32 %s182_s5, 4  ;;  %s1189_s8 = scalar_lea.sflag [#allocation4], %s178_s26  ;;  %s1186_s6 = int_to_ptr.vmem [resolvable:$true] %s192_s6 }
  0x12   : > { %s1012_s9 = scalar_lea.hbm %s1178_s4, 4096  ;;  %p1014_p0 = pneg %p1182_p11 }
  0x13   : > { %p1013_p13 = scmp.ne.s32.totalorder %s1178_s4, %s1012_s9  ;;  %s1017_s12 = scalar_lea.hbm %s1305_s1, 12288 }
  0x14   : > { %p1018_p3 = scmp.lt.u32.totalorder %s1178_s4, %s1305_s1  ;;  %p1019_p4 = scmp.lt.u32.totalorder %s1017_s12, %s1012_s9 }
  0x15   : > { %p1015_p1 = pnand %p1014_p0, %p1013_p13  ;;  %p1021_p6 = scmp.lt.u32.totalorder %s1012_s9, %s1178_s4 }
  0x16   : > { %p1020_p5 = por %p1019_p4, %p1018_p3 }
  0x17   : > { %p1016_p2 = pneg %p1015_p1 }
  0x18   : > { %p1022_p7 = por %p1021_p6, %p1020_p5 }
  0x1a   : > { %p1023_p10 = pnand %p1022_p7, %p1016_p2 }
  0x1c   : > { %1026 = shalt.err (!%p1023_p10)
}
  0x1d   : > { %s1027_s21 = scalar_lea.vmem %s1186_s6, 4096  ;;  %s1094_s22 = smov [#allocation3]  }
  0x1e   : > { %p1028_p13 = scmp.ne.s32.totalorder %s1186_s6, %s1027_s21  ;;  %s1032_s26 = sshll.u32 %s1094_s22, 4  ;;  %s1033_s26 = int_to_ptr.vmem [resolvable:$false] %s1032_s26 }
  0x1f   : > { %s1034_s27 = scalar_lea.vmem %s1033_s26, 8192  ;;  %p1035_p9 = scmp.lt.s32.totalorder %s1186_s6, %s1033_s26 }
  0x20   : > { %p1030_p1 = pnand %p1028_p13, %p1014_p0  ;;  %p1036_p3 = scmp.lt.s32.totalorder %s1034_s27, %s1027_s21 }
  0x22   : > { %p1031_p12 = pneg %p1030_p1  ;;  %p1037_p4 = por %p1036_p3, %p1035_p9 }
  0x24   : > { %p1038_p5 = pnand %p1037_p4, %p1031_p12 }
  0x26   : > { %1041 = shalt.err (!%p1038_p5)
}
  0x27   : > { %s1095_s28 = smov 384   ;;  %s1096_s29 = smov 128  }
  0x28   : > { %s1097_s30 = smov 8   ;;  %p208_p0 = scmp.lt.s32.totalorder %s1092_s17, 4 }
  0x29   : > { %905 = dma.hbm_to_vmem [thread:$0]  (!%p1182_p11), %s1178_s4, 4096, %s1186_s6, %s1189_s8, %s1095_s28, %s1096_s29, %s1097_s30  }
  0x2a   : > { %p1312_p2 = scmp.ge.s32.totalorder %s1092_s17, 1 }
  0x2c   : > { %p209_p6 = pnand %p1312_p2, %p208_p0 }
  0x2d   : > { %s1221_s5 = sand.u32 (!%p209_p6), 1, %s1076_s13  }
  0x2e   : > { %212 = sbr.rel (%p209_p6) target bundleno = 347 (0x15b), region = 32  ;;  %s814_s9 = sshll.u32 (!%p209_p6), %s1221_s5, 8 }
  0x2f   : > { %s215_s10 = scalar_lea.sflag (!%p209_p6), [#allocation4], %s1221_s5  ;;  %s1225_s11 = scalar_lea.vmem (!%p209_p6), [#allocation3], %s814_s9 }
  0x35   : > { %1067 = dma.done.wait (%p1161_p8), %s215_s10, 4096  }
  0x36   : > { %1069 = vsyncadd (%p1161_p8), %s215_s10, 4294963200  ;;  %v958_v0 = vld [vmem:[%s1225_s11 + $0x4] ss:$8 sps:$4 sm:$0xff]   ;;  %v960_v1 = vld [vmem:[%s1225_s11] ss:$8 sps:$4 sm:$0xff]   ;;  %s816_s21 = sshll.u32 %s1084_s15, 1  ;;  %v593_v36 = vlaneseq }
  0x37   : > { %511 = vmatprep.subr.bf16.mxu0 %v958_v0  ;;  %868 = vmatprep.subr.bf16.mxu1 %v958_v0  ;;  %v961_v2 = vld [vmem:[%s1225_s11 + $0x14] ss:$8 sps:$4 sm:$0xff]   ;;  %v963_v3 = vld [vmem:[%s1225_s11 + $0x10] ss:$8 sps:$4 sm:$0xff]   ;;  %v964_v4 = vld [vmem:[%s1225_s11 + $0x24] ss:$8 sps:$4 sm:$0xff]  }
  0x38   : > { %512 = vmatpush1.bf16.msra.mxu0 %v960_v1  ;;  %884 = vmatpush1.bf16.msra.mxu1 %v960_v1  ;;  %v966_v5 = vld [vmem:[%s1225_s11 + $0x20] ss:$8 sps:$4 sm:$0xff]   ;;  %v967_v6 = vld [vmem:[%s1225_s11 + $0x34] ss:$8 sps:$4 sm:$0xff]   ;;  %v969_v7 = vld [vmem:[%s1225_s11 + $0x30] ss:$8 sps:$4 sm:$0xff]  }
  0x39   : > { %513 = vmatprep.subr.bf16.mxu0 %v961_v2  ;;  %869 = vmatprep.subr.bf16.mxu1 %v961_v2  ;;  %v970_v8 = vld [vmem:[%s1225_s11 + $0x44] ss:$8 sps:$4 sm:$0xff]   ;;  %v972_v9 = vld [vmem:[%s1225_s11 + $0x40] ss:$8 sps:$4 sm:$0xff]   ;;  %v973_v10 = vld [vmem:[%s1225_s11 + $0x54] ss:$8 sps:$4 sm:$0xff]  }
  0x3a   : > { %v975_v11 = vld [vmem:[%s1225_s11 + $0x50] ss:$8 sps:$4 sm:$0xff]   ;;  %v976_v12 = vld [vmem:[%s1225_s11 + $0x64] ss:$8 sps:$4 sm:$0xff]   ;;  %v978_v14 = vld [vmem:[%s1225_s11 + $0x60] ss:$8 sps:$4 sm:$0xff]  }
  0x3b   : > { %v1008_v13 = vld [vmem:[%s1304_s0 + $0x4] ss:$8 sps:$4 sm:$0xff]   ;;  %v1011_v15 = vld [vmem:[%s1304_s0 + $0x14] ss:$8 sps:$4 sm:$0xff]   ;;  %v981_v17 = vld [vmem:[%s1225_s11 + $0x70] ss:$8 sps:$4 sm:$0xff]  }
  0x3c   : > { %514 = vmatpush1.bf16.msra.mxu0 %v963_v3  ;;  %885 = vmatpush1.bf16.msra.mxu1 %v963_v3  ;;  %v979_v16 = vld [vmem:[%s1225_s11 + $0x74] ss:$8 sps:$4 sm:$0xff]   ;;  %v982_v18 = vld [vmem:[%s1225_s11 + $0x84] ss:$8 sps:$4 sm:$0xff]   ;;  %v984_v19 = vld [vmem:[%s1225_s11 + $0x80] ss:$8 sps:$4 sm:$0xff]  }
  0x3d   : > { %515 = vmatprep.subr.bf16.mxu0 %v964_v4  ;;  %870 = vmatprep.subr.bf16.mxu1 %v964_v4  ;;  %v985_v20 = vld [vmem:[%s1225_s11 + $0x94] ss:$8 sps:$4 sm:$0xff]   ;;  %v987_v21 = vld [vmem:[%s1225_s11 + $0x90] ss:$8 sps:$4 sm:$0xff]   ;;  %v988_v22 = vld [vmem:[%s1225_s11 + $0xa4] ss:$8 sps:$4 sm:$0xff]  }
  0x3e   : > { %543 = vmatprep.mubr.bf16.mxu0 %v1008_v13  ;;  %553 = vmatprep.mubr.bf16.mxu1 %v1011_v15  ;;  %v990_v23 = vld [vmem:[%s1225_s11 + $0xa0] ss:$8 sps:$4 sm:$0xff]   ;;  %v991_v24 = vld [vmem:[%s1225_s11 + $0xb4] ss:$8 sps:$4 sm:$0xff]   ;;  %v993_v25 = vld [vmem:[%s1225_s11 + $0xb0] ss:$8 sps:$4 sm:$0xff]  }
  0x3f   : > { %v994_v26 = vld [vmem:[%s1225_s11 + $0xc4] ss:$8 sps:$4 sm:$0xff]   ;;  %v996_v27 = vld [vmem:[%s1225_s11 + $0xc0] ss:$8 sps:$4 sm:$0xff]   ;;  %v997_v28 = vld [vmem:[%s1225_s11 + $0xd4] ss:$8 sps:$4 sm:$0xff]  }
  0x40   : > { %516 = vmatpush1.bf16.msra.mxu0 %v966_v5  ;;  %886 = vmatpush1.bf16.msra.mxu1 %v966_v5  ;;  %v999_v29 = vld [vmem:[%s1225_s11 + $0xd0] ss:$8 sps:$4 sm:$0xff]   ;;  %v1000_v30 = vld [vmem:[%s1225_s11 + $0xe4] ss:$8 sps:$4 sm:$0xff]   ;;  %v1002_v31 = vld [vmem:[%s1225_s11 + $0xe0] ss:$8 sps:$4 sm:$0xff]  }
  0x41   : > { %517 = vmatprep.subr.bf16.mxu0 %v967_v6  ;;  %871 = vmatprep.subr.bf16.mxu1 %v967_v6  ;;  %v1003_v32 = vld [vmem:[%s1225_s11 + $0xf4] ss:$8 sps:$4 sm:$0xff]   ;;  %v1005_v33 = vld [vmem:[%s1225_s11 + $0xf0] ss:$8 sps:$4 sm:$0xff]   ;;  %v1006_v34 = vld [vmem:[%s1304_s0] ss:$8 sps:$4 sm:$0xff]  }
  0x42   : > { %v1009_v35 = vld [vmem:[%s1304_s0 + $0x10] ss:$8 sps:$4 sm:$0xff]   ;;  %p269_p8 = scmp.lt.s32.totalorder %s816_s21, 5  ;;  %v594_v37 = vshrl.u32 %v593_v36, 7  ;;  %s815_s28 = sshll.u32 %s1221_s5, 5 }
  0x43   : > { %s253_s29 = scalar_lea.vmem [#allocation5], %s815_s28  ;;  %p1313_p9 = scmp.ne.s32.totalorder %s1310_s25, 0 }
  0x44   : > { %518 = vmatpush1.bf16.msra.mxu0 %v969_v7  ;;  %887 = vmatpush1.bf16.msra.mxu1 %v969_v7  ;;  %s1322_s21 = smov (!%p269_p8, %s816_s21), 5  ;;  %v595_v38 = vsub.s32 0, %v594_v37  ;;  %v599_v40 = vsub.s32 1, %v594_v37  ;;  %s867_s30 = sshll.u32 (%p1313_p9), %s1084_s15, 3 }
  0x45   : > { %519 = vmatprep.subr.bf16.mxu0 %v970_v8  ;;  %872 = vmatprep.subr.bf16.mxu1 %v970_v8  ;;  %s271_s27 = scalar_lea.vmem %s1306_s2, %s1322_s21  ;;  %s651_s10 = scalar_lea.vmem (%p1313_p9), %s1307_s3, %s867_s30 }
  0x46   : > { %v591_v39 = vld [vmem:[%s271_s27] sm:$0x3] }
  0x47   : > { %v596_v41 = vrot.slane %v591_v39, %v595_v38  ;;  %v600_v42 = vrot.slane %v591_v39, %v599_v40 }
  0x48   : > { %520 = vmatpush1.bf16.msra.mxu0 %v972_v9  ;;  %888 = vmatpush1.bf16.msra.mxu1 %v972_v9 }
  0x49   : > { %521 = vmatprep.subr.bf16.mxu0 %v973_v10  ;;  %873 = vmatprep.subr.bf16.mxu1 %v973_v10 }
  0x4c   : > { %522 = vmatpush1.bf16.msra.mxu0 %v975_v11  ;;  %889 = vmatpush1.bf16.msra.mxu1 %v975_v11 }
  0x4d   : > { %523 = vmatprep.subr.bf16.mxu0 %v976_v12  ;;  %874 = vmatprep.subr.bf16.mxu1 %v976_v12 }
  0x50   : > { %524 = vmatpush1.bf16.msra.mxu0 %v978_v14  ;;  %890 = vmatpush1.bf16.msra.mxu1 %v978_v14 }
  0x51   : > { %525 = vmatprep.subr.bf16.mxu0 %v979_v16  ;;  %875 = vmatprep.subr.bf16.mxu1 %v979_v16 }
  0x54   : > { %526 = vmatpush1.bf16.msra.mxu0 %v981_v17  ;;  %891 = vmatpush1.bf16.msra.mxu1 %v981_v17 }
  0x55   : > { %527 = vmatprep.subr.bf16.mxu0 %v982_v18  ;;  %876 = vmatprep.subr.bf16.mxu1 %v982_v18 }
  0x58   : > { %528 = vmatpush1.bf16.msra.mxu0 %v984_v19  ;;  %892 = vmatpush1.bf16.msra.mxu1 %v984_v19 }
  0x59   : > { %529 = vmatprep.subr.bf16.mxu0 %v985_v20  ;;  %877 = vmatprep.subr.bf16.mxu1 %v985_v20 }
  0x5c   : > { %530 = vmatpush1.bf16.msra.mxu0 %v987_v21  ;;  %893 = vmatpush1.bf16.msra.mxu1 %v987_v21 }
  0x5d   : > { %531 = vmatprep.subr.bf16.mxu0 %v988_v22  ;;  %878 = vmatprep.subr.bf16.mxu1 %v988_v22 }
  0x60   : > { %532 = vmatpush1.bf16.msra.mxu0 %v990_v23  ;;  %894 = vmatpush1.bf16.msra.mxu1 %v990_v23 }
  0x61   : > { %533 = vmatprep.subr.bf16.mxu0 %v991_v24  ;;  %879 = vmatprep.subr.bf16.mxu1 %v991_v24 }
  0x64   : > { %534 = vmatpush1.bf16.msra.mxu0 %v993_v25  ;;  %895 = vmatpush1.bf16.msra.mxu1 %v993_v25 }
  0x65   : > { %535 = vmatprep.subr.bf16.mxu0 %v994_v26  ;;  %880 = vmatprep.subr.bf16.mxu1 %v994_v26 }
  0x68   : > { %536 = vmatpush1.bf16.msra.mxu0 %v996_v27  ;;  %896 = vmatpush1.bf16.msra.mxu1 %v996_v27 }
  0x69   : > { %537 = vmatprep.subr.bf16.mxu0 %v997_v28  ;;  %881 = vmatprep.subr.bf16.mxu1 %v997_v28 }
  0x6c   : > { %538 = vmatpush1.bf16.msra.mxu0 %v999_v29  ;;  %897 = vmatpush1.bf16.msra.mxu1 %v999_v29 }
  0x6d   : > { %539 = vmatprep.subr.bf16.mxu0 %v1000_v30  ;;  %882 = vmatprep.subr.bf16.mxu1 %v1000_v30 }
  0x70   : > { %540 = vmatpush1.bf16.msra.mxu0 %v1002_v31  ;;  %898 = vmatpush1.bf16.msra.mxu1 %v1002_v31 }
  0x71   : > { %541 = vmatprep.subr.bf16.mxu0 %v1003_v32  ;;  %883 = vmatprep.subr.bf16.mxu1 %v1003_v32 }
  0x74   : > { %542 = vmatpush1.bf16.msra.mxu0 %v1005_v33  ;;  %899 = vmatpush1.bf16.msra.mxu1 %v1005_v33 }
  0x77   : > { %544 = vmatmul.mubr.bf16.vlgmr.msra.gmra.mrb[0].mxu0 %v1006_v34  ;;  %554 = vmatmul.mubr.bf16.vlgmr.msra.gmra.mrb[0].mxu1 %v1009_v35 }
 0x14a   : > { %v545_v43 = vpop.f32.mrb[0].mxu0  ;;  %v555_v44 = vpop.f32.mrb[0].mxu1 }
 0x14b   : > { %v603_v45 = vadd.f32 %v596_v41, %v545_v43  ;;  %v607_v46 = vadd.f32 %v596_v41, %v555_v44  ;;  %v547_v47 = vpop.f32.mrb[1].mxu0  ;;  %v557_v48 = vpop.f32.mrb[1].mxu1 }
 0x14c   : > { %v604_v49 = vadd.f32 %v600_v42, %v547_v47  ;;  %v608_v50 = vadd.f32 %v600_v42, %v557_v48  ;;  %v549_v51 = vpop.f32.mrb[2].mxu0  ;;  %v559_v52 = vpop.f32.mrb[2].mxu1  ;;  %645 = sbr.rel (!%p1313_p9) target bundleno = 347 (0x15b), region = 48 }
 0x14d   : > { %v605_v53 = vadd.f32 %v596_v41, %v549_v51  ;;  %v609_v54 = vadd.f32 %v596_v41, %v559_v52  ;;  %v551_v55 = vpop.f32.mrb[3].mxu0  ;;  %v561_v56 = vpop.f32.mrb[3].mxu1 }
 0x14e   : > { %v863_v57 = vpack.c.bf16 %v604_v49, %v603_v45  ;;  %v865_v58 = vpack.c.bf16 %v608_v50, %v607_v46  ;;  %v606_v59 = vadd.f32 %v600_v42, %v551_v55  ;;  %v610_v60 = vadd.f32 %v600_v42, %v561_v56 }
 0x150   : > { %635 = vst [vmem:[%s253_s29] sm:$0xff] %v863_v57  ;;  %637 = vst [vmem:[%s253_s29 + $0x10] sm:$0xff] %v865_v58  ;;  %v864_v61 = vpack.c.bf16 %v606_v59, %v605_v53  ;;  %v866_v62 = vpack.c.bf16 %v610_v60, %v609_v54 }
 0x152   : > { %636 = vst [vmem:[%s253_s29 + $0x8] sm:$0xff] %v864_v61  ;;  %638 = vst [vmem:[%s253_s29 + $0x18] sm:$0xff] %v866_v62 }
 0x157   : > { %v685_v63 = vld [vmem:[%s253_s29] sm:$0xff]  ;;  %v689_v1 = vld [vmem:[%s253_s29 + $0x10] sm:$0xff] }
 0x158   : > { %686 = vst [vmem:[%s651_s10] sm:$0xff] %v685_v63  ;;  %690 = vst [vmem:[%s651_s10 + $0x30] sm:$0xff] %v689_v1 }
 0x159   : > { %v687_v0 = vld [vmem:[%s253_s29 + $0x8] sm:$0xff]  ;;  %v691_v2 = vld [vmem:[%s253_s29 + $0x18] sm:$0xff] }
 0x15a   : > { %688 = vst [vmem:[%s651_s10 + $0x18] sm:$0xff] %v687_v0  ;;  %692 = vst [vmem:[%s651_s10 + $0x48] sm:$0xff] %v691_v2 }
 0x15b PF: > { %s16_s17 = sadd.s32 1, %s1092_s17   ;;  %s1314_s12 = smov %s1076_s13 }
 0x15c   : > { %p13_p11 = scmp.ge.s32.totalorder %s16_s17, 5   ;;  %s1315_s13 = smov %s1080_s14 }
 0x15d   : > { %s1316_s14 = smov %s1166_s24  ;;  %s1317_s15 = smov %s1088_s16 }
 0x15e   : > { %s1318_s16 = smov %s1320_s19  ;;  %15 = sbr.rel (!%p13_p11) target bundleno = 4 (0x4), region = 124 }
 0x165   :  { %708 = vsyncpa [#allocation4], 1 }
 0x166   :  { %710 = vsyncpa [#allocation4 + $0x1], 1 }

// kernel: encoder_forward.11
= control target key start
LH: loop header
LB: loop body
LE: loop exit
PB: predicated region body
PF: predicated region fallthrough
CT: control target
= control target key end

     0   :  { %v341_v36 = vlaneseq  ;;  %s850_s1 = inlined_call_operand.vmem [shape: bf16[256,256], index: 1, kind: input, shape index: {}]   ;;  %s851_s0 = inlined_call_operand.vmem [shape: bf16[32,256], index: 0, kind: input, shape index: {}]   ;;  %s852_s2 = inlined_call_operand.vmem [shape: f32[1,256], index: 2, kind: input, shape index: {}]   ;;  %s853_s3 = inlined_call_operand.vmem [shape: bf16[32,256], index: 3, kind: input, shape index: {}]   ;;  %s854_s4 = inlined_call_operand.vmem [shape: f32[1,256], index: 4, kind: input, shape index: {}]   ;;  %s855_s5 = inlined_call_operand.vmem [shape: f32[1,256], index: 5, kind: input, shape index: {}]   ;;  %s856_s6 = inlined_call_operand.vmem [shape: bf16[32,256], index: 6, kind: output, shape index: {}]  }
   0x1   :  { %v592_v0 = vld [vmem:[%s850_s1 + $0x4] ss:$8 sps:$4 sm:$0xff]   ;;  %v594_v1 = vld [vmem:[%s850_s1] ss:$8 sps:$4 sm:$0xff]   ;;  %v595_v2 = vld [vmem:[%s850_s1 + $0x14] ss:$8 sps:$4 sm:$0xff]  }
   0x2   :  { %259 = vmatprep.subr.bf16.mxu0 %v592_v0  ;;  %560 = vmatprep.subr.bf16.mxu1 %v592_v0  ;;  %v597_v3 = vld [vmem:[%s850_s1 + $0x10] ss:$8 sps:$4 sm:$0xff]   ;;  %v598_v4 = vld [vmem:[%s850_s1 + $0x24] ss:$8 sps:$4 sm:$0xff]   ;;  %v600_v5 = vld [vmem:[%s850_s1 + $0x20] ss:$8 sps:$4 sm:$0xff]  }
   0x3   :  { %260 = vmatpush1.bf16.msra.mxu0 %v594_v1  ;;  %576 = vmatpush1.bf16.msra.mxu1 %v594_v1  ;;  %v601_v6 = vld [vmem:[%s850_s1 + $0x34] ss:$8 sps:$4 sm:$0xff]   ;;  %v603_v7 = vld [vmem:[%s850_s1 + $0x30] ss:$8 sps:$4 sm:$0xff]   ;;  %v604_v8 = vld [vmem:[%s850_s1 + $0x44] ss:$8 sps:$4 sm:$0xff]  }
   0x4   :  { %261 = vmatprep.subr.bf16.mxu0 %v595_v2  ;;  %561 = vmatprep.subr.bf16.mxu1 %v595_v2  ;;  %v606_v9 = vld [vmem:[%s850_s1 + $0x40] ss:$8 sps:$4 sm:$0xff]   ;;  %v607_v10 = vld [vmem:[%s850_s1 + $0x54] ss:$8 sps:$4 sm:$0xff]   ;;  %v609_v11 = vld [vmem:[%s850_s1 + $0x50] ss:$8 sps:$4 sm:$0xff]  }
   0x5   :  { %v610_v12 = vld [vmem:[%s850_s1 + $0x64] ss:$8 sps:$4 sm:$0xff]   ;;  %v612_v14 = vld [vmem:[%s850_s1 + $0x60] ss:$8 sps:$4 sm:$0xff]   ;;  %v645_v15 = vld [vmem:[%s851_s0 + $0x14] ss:$8 sps:$4 sm:$0xff]  }
   0x6   :  { %v642_v13 = vld [vmem:[%s851_s0 + $0x4] ss:$8 sps:$4 sm:$0xff]   ;;  %v613_v16 = vld [vmem:[%s850_s1 + $0x74] ss:$8 sps:$4 sm:$0xff]   ;;  %301 = vmatprep.mubr.bf16.mxu1 %v645_v15  ;;  %v615_v17 = vld [vmem:[%s850_s1 + $0x70] ss:$8 sps:$4 sm:$0xff]  }
   0x7   :  { %262 = vmatpush1.bf16.msra.mxu0 %v597_v3  ;;  %577 = vmatpush1.bf16.msra.mxu1 %v597_v3  ;;  %v616_v18 = vld [vmem:[%s850_s1 + $0x84] ss:$8 sps:$4 sm:$0xff]   ;;  %v618_v19 = vld [vmem:[%s850_s1 + $0x80] ss:$8 sps:$4 sm:$0xff]   ;;  %v619_v20 = vld [vmem:[%s850_s1 + $0x94] ss:$8 sps:$4 sm:$0xff]  }
   0x8   :  { %263 = vmatprep.subr.bf16.mxu0 %v598_v4  ;;  %562 = vmatprep.subr.bf16.mxu1 %v598_v4  ;;  %v621_v21 = vld [vmem:[%s850_s1 + $0x90] ss:$8 sps:$4 sm:$0xff]   ;;  %v622_v22 = vld [vmem:[%s850_s1 + $0xa4] ss:$8 sps:$4 sm:$0xff]   ;;  %v624_v23 = vld [vmem:[%s850_s1 + $0xa0] ss:$8 sps:$4 sm:$0xff]  }
   0x9   :  { %291 = vmatprep.mubr.bf16.mxu0 %v642_v13  ;;  %v625_v24 = vld [vmem:[%s850_s1 + $0xb4] ss:$8 sps:$4 sm:$0xff]   ;;  %v627_v25 = vld [vmem:[%s850_s1 + $0xb0] ss:$8 sps:$4 sm:$0xff]   ;;  %v628_v26 = vld [vmem:[%s850_s1 + $0xc4] ss:$8 sps:$4 sm:$0xff]  }
   0xa   :  { %v630_v27 = vld [vmem:[%s850_s1 + $0xc0] ss:$8 sps:$4 sm:$0xff]   ;;  %v631_v28 = vld [vmem:[%s850_s1 + $0xd4] ss:$8 sps:$4 sm:$0xff]   ;;  %v633_v29 = vld [vmem:[%s850_s1 + $0xd0] ss:$8 sps:$4 sm:$0xff]  }
   0xb   :  { %264 = vmatpush1.bf16.msra.mxu0 %v600_v5  ;;  %578 = vmatpush1.bf16.msra.mxu1 %v600_v5  ;;  %v634_v30 = vld [vmem:[%s850_s1 + $0xe4] ss:$8 sps:$4 sm:$0xff]   ;;  %v636_v31 = vld [vmem:[%s850_s1 + $0xe0] ss:$8 sps:$4 sm:$0xff]   ;;  %v637_v32 = vld [vmem:[%s850_s1 + $0xf4] ss:$8 sps:$4 sm:$0xff]  }
   0xc   :  { %265 = vmatprep.subr.bf16.mxu0 %v601_v6  ;;  %563 = vmatprep.subr.bf16.mxu1 %v601_v6  ;;  %v639_v33 = vld [vmem:[%s850_s1 + $0xf0] ss:$8 sps:$4 sm:$0xff]   ;;  %v640_v34 = vld [vmem:[%s851_s0] ss:$8 sps:$4 sm:$0xff]   ;;  %v342_v37 = vshrl.u32 %v341_v36, 7 }
   0xd   :  { %v643_v35 = vld [vmem:[%s851_s0 + $0x10] ss:$8 sps:$4 sm:$0xff]   ;;  %v339_v39 = vld [vmem:[%s852_s2] sm:$0x3]  ;;  %v360_v45 = vld [vmem:[%s853_s3 + $0x8] sm:$0xff] }
   0xe   :  { %v797_v38 = vsub.s32 0, %v342_v37  ;;  %v802_v40 = vsub.s32 1, %v342_v37  ;;  %v361_v41 = vld [vmem:[%s853_s3 + $0x10] sm:$0xff]  ;;  %v359_v42 = vld [vmem:[%s853_s3] sm:$0xff]  ;;  %v362_v46 = vld [vmem:[%s853_s3 + $0x18] sm:$0xff]  ;;  %v365_v57 = vunpack.c.l.bf16 %v360_v45  ;;  %v366_v62 = vunpack.c.h.bf16 %v360_v45 }
   0xf   :  { %266 = vmatpush1.bf16.msra.mxu0 %v603_v7  ;;  %579 = vmatpush1.bf16.msra.mxu1 %v603_v7  ;;  %v367_v47 = vunpack.c.l.bf16 %v361_v41  ;;  %v363_v48 = vunpack.c.l.bf16 %v359_v42  ;;  %v368_v51 = vunpack.c.h.bf16 %v361_v41  ;;  %v364_v52 = vunpack.c.h.bf16 %v359_v42 }
  0x10   :  { %267 = vmatprep.subr.bf16.mxu0 %v604_v8  ;;  %564 = vmatprep.subr.bf16.mxu1 %v604_v8  ;;  %v344_v43 = vrot.slane %v339_v39, %v797_v38  ;;  %v348_v44 = vrot.slane %v339_v39, %v802_v40  ;;  %v369_v58 = vunpack.c.l.bf16 %v362_v46  ;;  %v370_v0 = vunpack.c.h.bf16 %v362_v46 }
  0x13   :  { %268 = vmatpush1.bf16.msra.mxu0 %v606_v9  ;;  %580 = vmatpush1.bf16.msra.mxu1 %v606_v9 }
  0x14   :  { %269 = vmatprep.subr.bf16.mxu0 %v607_v10  ;;  %565 = vmatprep.subr.bf16.mxu1 %v607_v10 }
  0x17   :  { %270 = vmatpush1.bf16.msra.mxu0 %v609_v11  ;;  %581 = vmatpush1.bf16.msra.mxu1 %v609_v11 }
  0x18   :  { %271 = vmatprep.subr.bf16.mxu0 %v610_v12  ;;  %566 = vmatprep.subr.bf16.mxu1 %v610_v12 }
  0x1b   :  { %272 = vmatpush1.bf16.msra.mxu0 %v612_v14  ;;  %582 = vmatpush1.bf16.msra.mxu1 %v612_v14 }
  0x1c   :  { %273 = vmatprep.subr.bf16.mxu0 %v613_v16  ;;  %567 = vmatprep.subr.bf16.mxu1 %v613_v16 }
  0x1f   :  { %274 = vmatpush1.bf16.msra.mxu0 %v615_v17  ;;  %583 = vmatpush1.bf16.msra.mxu1 %v615_v17 }
  0x20   :  { %275 = vmatprep.subr.bf16.mxu0 %v616_v18  ;;  %568 = vmatprep.subr.bf16.mxu1 %v616_v18 }
  0x23   :  { %276 = vmatpush1.bf16.msra.mxu0 %v618_v19  ;;  %584 = vmatpush1.bf16.msra.mxu1 %v618_v19 }
  0x24   :  { %277 = vmatprep.subr.bf16.mxu0 %v619_v20  ;;  %569 = vmatprep.subr.bf16.mxu1 %v619_v20 }
  0x27   :  { %278 = vmatpush1.bf16.msra.mxu0 %v621_v21  ;;  %585 = vmatpush1.bf16.msra.mxu1 %v621_v21 }
  0x28   :  { %279 = vmatprep.subr.bf16.mxu0 %v622_v22  ;;  %570 = vmatprep.subr.bf16.mxu1 %v622_v22 }
  0x2b   :  { %280 = vmatpush1.bf16.msra.mxu0 %v624_v23  ;;  %586 = vmatpush1.bf16.msra.mxu1 %v624_v23 }
  0x2c   :  { %281 = vmatprep.subr.bf16.mxu0 %v625_v24  ;;  %571 = vmatprep.subr.bf16.mxu1 %v625_v24 }
  0x2f   :  { %282 = vmatpush1.bf16.msra.mxu0 %v627_v25  ;;  %587 = vmatpush1.bf16.msra.mxu1 %v627_v25 }
  0x30   :  { %283 = vmatprep.subr.bf16.mxu0 %v628_v26  ;;  %572 = vmatprep.subr.bf16.mxu1 %v628_v26 }
  0x33   :  { %284 = vmatpush1.bf16.msra.mxu0 %v630_v27  ;;  %588 = vmatpush1.bf16.msra.mxu1 %v630_v27 }
  0x34   :  { %285 = vmatprep.subr.bf16.mxu0 %v631_v28  ;;  %573 = vmatprep.subr.bf16.mxu1 %v631_v28 }
  0x37   :  { %286 = vmatpush1.bf16.msra.mxu0 %v633_v29  ;;  %589 = vmatpush1.bf16.msra.mxu1 %v633_v29 }
  0x38   :  { %287 = vmatprep.subr.bf16.mxu0 %v634_v30  ;;  %574 = vmatprep.subr.bf16.mxu1 %v634_v30 }
  0x3b   :  { %288 = vmatpush1.bf16.msra.mxu0 %v636_v31  ;;  %590 = vmatpush1.bf16.msra.mxu1 %v636_v31 }
  0x3c   :  { %289 = vmatprep.subr.bf16.mxu0 %v637_v32  ;;  %575 = vmatprep.subr.bf16.mxu1 %v637_v32 }
  0x3f   :  { %290 = vmatpush1.bf16.msra.mxu0 %v639_v33  ;;  %591 = vmatpush1.bf16.msra.mxu1 %v639_v33 }
  0x42   :  { %292 = vmatmul.mubr.bf16.vlgmr.msra.gmra.mrb[0].mxu0 %v640_v34  ;;  %302 = vmatmul.mubr.bf16.vlgmr.msra.gmra.mrb[0].mxu1 %v643_v35 }
 0x115   :  { %v293_v49 = vpop.f32.mrb[0].mxu0  ;;  %v303_v50 = vpop.f32.mrb[0].mxu1 }
 0x116   :  { %v351_v53 = vadd.f32 %v344_v43, %v293_v49  ;;  %v355_v54 = vadd.f32 %v344_v43, %v303_v50  ;;  %v295_v55 = vpop.f32.mrb[1].mxu0  ;;  %v305_v56 = vpop.f32.mrb[1].mxu1 }
 0x117   :  { %v352_v59 = vadd.f32 %v348_v44, %v295_v55  ;;  %v356_v60 = vadd.f32 %v348_v44, %v305_v56  ;;  %v297_v61 = vpop.f32.mrb[2].mxu0  ;;  %v307_v63 = vpop.f32.mrb[2].mxu1 }
 0x118   :  { %v353_v1 = vadd.f32 %v344_v43, %v297_v61  ;;  %v299_v2 = vpop.f32.mrb[3].mxu0  ;;  %v357_v3 = vadd.f32 %v344_v43, %v307_v63  ;;  %v309_v4 = vpop.f32.mrb[3].mxu1  ;;  %v375_v5 = vadd.f32 %v367_v47, %v355_v54  ;;  %v371_v6 = vadd.f32 %v363_v48, %v351_v53  ;;  %v444_v61 = vld [vmem:[%s854_s4] sm:$0x3] }
 0x119   :  { %v354_v7 = vadd.f32 %v348_v44, %v299_v2  ;;  %v358_v8 = vadd.f32 %v348_v44, %v309_v4  ;;  %v376_v9 = vadd.f32 %v368_v51, %v356_v60  ;;  %v372_v10 = vadd.f32 %v364_v52, %v352_v59 }
 0x11a   :  { %v373_v11 = vadd.f32 %v365_v57, %v353_v1  ;;  %v377_v12 = vadd.f32 %v369_v58, %v357_v3  ;;  %v449_v63 = vrot.slane %v444_v61, %v797_v38 }
 0x11b   :  { %v374_v13 = vadd.f32 %v366_v62, %v354_v7  ;;  %v378_v14 = vadd.f32 %v370_v0, %v358_v8  ;;  %v385_v15 = vadd.f32 %v376_v9, %v375_v5  ;;  %v379_v16 = vadd.f32 %v372_v10, %v371_v6  ;;  %v464_v62 = vld [vmem:[%s855_s5] sm:$0x3] }
 0x11c   :  { %v453_v0 = vrot.slane %v444_v61, %v802_v40  ;;  %v469_v2 = vrot.slane %v464_v62, %v797_v38  ;;  %v473_v3 = vrot.slane %v464_v62, %v802_v40 }
 0x11d   :  { %386 = vadd.xlane.f32.xlu1 %v385_v15  ;;  %380 = vadd.xlane.f32.xlu0 %v379_v16  ;;  %v388_v17 = vadd.f32 %v378_v14, %v377_v12  ;;  %v382_v18 = vadd.f32 %v374_v13, %v373_v11 }
 0x121   :  { %389 = vadd.xlane.f32.xlu1 %v388_v17  ;;  %383 = vadd.xlane.f32.xlu0 %v382_v18 }
 0x1aa   :  { %v387_v19 = vpop.xlane.xlu1 %386  ;;  %v381_v20 = vpop.xlane.xlu0 %380 }
 0x1ab   :  { %v394_v21 = vmul.f32 0.00390625, %v387_v19  ;;  %v392_v22 = vmul.f32 0.00390625, %v381_v20 }
 0x1ad   :  { %v396_v23 = vsub.f32 %v371_v6, %v392_v22  ;;  %v397_v24 = vsub.f32 %v372_v10, %v392_v22  ;;  %v400_v25 = vsub.f32 %v375_v5, %v394_v21  ;;  %v401_v26 = vsub.f32 %v376_v9, %v394_v21 }
 0x1ae   :  { %v390_v27 = vpop.xlane.xlu1 %389  ;;  %v384_v28 = vpop.xlane.xlu0 %383 }
 0x1af   :  { %v395_v29 = vmul.f32 0.00390625, %v390_v27  ;;  %v393_v30 = vmul.f32 0.00390625, %v384_v28  ;;  %v404_v31 = vmul.f32 %v396_v23, %v396_v23  ;;  %v405_v32 = vmul.f32 %v397_v24, %v397_v24 }
 0x1b0   :  { %v408_v39 = vmul.f32 %v400_v25, %v400_v25  ;;  %v409_v41 = vmul.f32 %v401_v26, %v401_v26 }
 0x1b1   :  { %v818_v33 = vsub.f32 %v377_v12, %v395_v29  ;;  %v820_v34 = vsub.f32 %v378_v14, %v395_v29  ;;  %v398_v35 = vsub.f32 %v373_v11, %v393_v30  ;;  %v399_v36 = vsub.f32 %v374_v13, %v393_v30 }
 0x1b2   :  { %v412_v37 = vadd.f32 %v405_v32, %v404_v31  ;;  %v418_v47 = vadd.f32 %v409_v41, %v408_v39 }
 0x1b3   :  { %v406_v42 = vmul.f32 %v398_v35, %v398_v35  ;;  %v407_v43 = vmul.f32 %v399_v36, %v399_v36  ;;  %v410_v45 = vmul.f32 %v818_v33, %v818_v33  ;;  %v411_v46 = vmul.f32 %v820_v34, %v820_v34 }
 0x1b4   :  { %413 = vadd.xlane.f32.xlu0 %v412_v37 }
 0x1b5   :  { %v415_v44 = vadd.f32 %v407_v43, %v406_v42  ;;  %v421_v48 = vadd.f32 %v411_v46, %v410_v45 }
 0x1b7   :  { %416 = vadd.xlane.f32.xlu1 %v415_v44 }
 0x1b8   :  { %419 = vadd.xlane.f32.xlu0 %v418_v47 }
 0x1bb   :  { %422 = vadd.xlane.f32.xlu1 %v421_v48 }
 0x241   :  { %v414_v49 = vpop.xlane.xlu0 %413 }
 0x242   :  { %v424_v50 = vmul.f32 0.00390625, %v414_v49 }
 0x244   :  { %v428_v51 = vadd.f32 1e-05, %v424_v50  ;;  %v417_v52 = vpop.xlane.xlu1 %416 }
 0x245   :  { %v425_v53 = vmul.f32 0.00390625, %v417_v52  ;;  %v420_v54 = vpop.xlane.xlu0 %419 }
 0x246   :  { %646 = vrsqrt.f32 %v428_v51  ;;  %v426_v55 = vmul.f32 0.00390625, %v420_v54 }
 0x247   :  { %v429_v56 = vadd.f32 1e-05, %v425_v53 }
 0x248   :  { %v430_v57 = vadd.f32 1e-05, %v426_v55  ;;  %v423_v58 = vpop.xlane.xlu1 %422 }
 0x249   :  { %648 = vrsqrt.f32 %v429_v56  ;;  %v427_v59 = vmul.f32 0.00390625, %v423_v58 }
 0x24a   :  { %650 = vrsqrt.f32 %v430_v57 }
 0x24b   :  { %v431_v60 = vadd.f32 1e-05, %v427_v59 }
 0x24d   :  { %652 = vrsqrt.f32 %v431_v60 }
 0x250   :  { %v647_v1 = vpop.eup %646 }
 0x251   :  { %v436_v4 = vmul.f32 %v647_v1, %v396_v23  ;;  %v437_v5 = vmul.f32 %v647_v1, %v397_v24 }
 0x253   :  { %v649_v6 = vpop.eup %648  ;;  %v456_v7 = vmul.f32 %v449_v63, %v436_v4  ;;  %v457_v8 = vmul.f32 %v453_v0, %v437_v5 }
 0x254   :  { %v651_v9 = vpop.eup %650  ;;  %v438_v10 = vmul.f32 %v649_v6, %v398_v35  ;;  %v439_v11 = vmul.f32 %v649_v6, %v399_v36 }
 0x255   :  { %v476_v12 = vadd.f32 %v469_v2, %v456_v7  ;;  %v477_v13 = vadd.f32 %v473_v3, %v457_v8  ;;  %v440_v14 = vmul.f32 %v651_v9, %v400_v25  ;;  %v441_v15 = vmul.f32 %v651_v9, %v401_v26 }
 0x256   :  { %v458_v16 = vmul.f32 %v449_v63, %v438_v10  ;;  %v459_v17 = vmul.f32 %v453_v0, %v439_v11 }
 0x257   :  { %v653_v18 = vpop.eup %652  ;;  %v556_v19 = vpack.c.bf16 %v477_v13, %v476_v12  ;;  %v460_v20 = vmul.f32 %v449_v63, %v440_v14  ;;  %v461_v38 = vmul.f32 %v453_v0, %v441_v15 }
 0x258   :  { %v478_v21 = vadd.f32 %v469_v2, %v458_v16  ;;  %v479_v40 = vadd.f32 %v473_v3, %v459_v17  ;;  %v442_v22 = vmul.f32 %v653_v18, %v818_v33  ;;  %v443_v23 = vmul.f32 %v653_v18, %v820_v34 }
 0x259   :  { %508 = vst [vmem:[%s856_s6] sm:$0xff] %v556_v19  ;;  %v480_v24 = vadd.f32 %v469_v2, %v460_v20  ;;  %v481_v27 = vadd.f32 %v473_v3, %v461_v38 }
 0x25a   :  { %v557_v25 = vpack.c.bf16 %v479_v40, %v478_v21  ;;  %v462_v26 = vmul.f32 %v449_v63, %v442_v22  ;;  %v463_v28 = vmul.f32 %v453_v0, %v443_v23 }
 0x25b   :  { %v558_v29 = vpack.c.bf16 %v481_v27, %v480_v24 }
 0x25c   :  { %509 = vst [vmem:[%s856_s6 + $0x8] sm:$0xff] %v557_v25  ;;  %v482_v30 = vadd.f32 %v469_v2, %v462_v26  ;;  %v483_v31 = vadd.f32 %v473_v3, %v463_v28 }
 0x25d   :  { %510 = vst [vmem:[%s856_s6 + $0x10] sm:$0xff] %v558_v29 }
 0x25e   :  { %v559_v32 = vpack.c.bf16 %v483_v31, %v482_v30 }
 0x260   :  { %511 = vst [vmem:[%s856_s6 + $0x18] sm:$0xff] %v559_v32 }

// kernel: encoder_forward.17
= control target key start
LH: loop header
LB: loop body
LE: loop exit
PB: predicated region body
PF: predicated region fallthrough
CT: control target
= control target key end

     0   :  { %s254_s0 = inlined_call_operand.vmem [shape: bf16[32,256], index: 0, kind: input, shape index: {}]   ;;  %s255_s1 = inlined_call_operand.vmem [shape: f32[1,256], index: 1, kind: input, shape index: {}]   ;;  %s256_s2 = inlined_call_operand.vmem [shape: f32[1,256], index: 2, kind: input, shape index: {}]   ;;  %s257_s3 = inlined_call_operand.hbm [shape: f32[32,256], index: 3, kind: output, shape index: {}]  }
   0x1   :  { %v15_v0 = vld [vmem:[%s254_s0] sm:$0xff]  ;;  %v17_v1 = vld [vmem:[%s254_s0 + $0x10] sm:$0xff]  ;;  %v16_v2 = vld [vmem:[%s254_s0 + $0x8] sm:$0xff] }
   0x2   :  { %v19_v3 = vunpack.c.l.bf16 %v15_v0  ;;  %v20_v4 = vunpack.c.h.bf16 %v15_v0  ;;  %v23_v5 = vunpack.c.l.bf16 %v17_v1  ;;  %v24_v6 = vunpack.c.h.bf16 %v17_v1  ;;  %v18_v7 = vld [vmem:[%s254_s0 + $0x18] sm:$0xff] }
   0x3   :  { %8 = vsyncpa [#allocation3], 0  ;;  %v21_v8 = vunpack.c.l.bf16 %v16_v2  ;;  %v22_v9 = vunpack.c.h.bf16 %v16_v2  ;;  %v25_v10 = vunpack.c.l.bf16 %v18_v7  ;;  %v26_v11 = vunpack.c.h.bf16 %v18_v7  ;;  %v92_v60 = vld [vmem:[%s255_s1] sm:$0x3]  ;;  %s191_s1 = smov [#allocation2]  }
   0x4   :  { %v27_v12 = vadd.f32 %v20_v4, %v19_v3  ;;  %v33_v13 = vadd.f32 %v24_v6, %v23_v5  ;;  %v94_v46 = vlaneseq  ;;  %v112_v61 = vld [vmem:[%s256_s2] sm:$0x3]  ;;  %s145_s2 = sshll.u32 %s191_s1, 4  ;;  %s146_s2 = int_to_ptr.vmem [resolvable:$true] %s145_s2 }
   0x5   :  { %v30_v14 = vadd.f32 %v22_v9, %v21_v8  ;;  %v36_v15 = vadd.f32 %v26_v11, %v25_v10  ;;  %s167_s23 = scalar_lea.vmem %s146_s2, 1024  ;;  %p172_p1 = scmp.lt.s32.totalorder %s146_s2, %s146_s2 }
   0x6   :  { %28 = vadd.xlane.f32.xlu0 %v27_v12  ;;  %34 = vadd.xlane.f32.xlu1 %v33_v13  ;;  %v95_v52 = vshrl.u32 %v94_v46, 7  ;;  %p168_p0 = scmp.ne.s32.totalorder %s146_s2, %s167_s23  ;;  %p173_p2 = scmp.lt.s32.totalorder %s167_s23, %s167_s23 }
   0x8   :  { %v96_v57 = vsub.s32 0, %v95_v52  ;;  %v100_v58 = vsub.s32 1, %v95_v52  ;;  %p174_p3 = por %p173_p2, %p172_p1 }
   0xa   :  { %31 = vadd.xlane.f32.xlu0 %v30_v14  ;;  %37 = vadd.xlane.f32.xlu1 %v36_v15  ;;  %v97_v62 = vrot.slane %v92_v60, %v96_v57  ;;  %v101_v63 = vrot.slane %v92_v60, %v100_v58  ;;  %v117_v1 = vrot.slane %v112_v61, %v96_v57  ;;  %p175_p4 = pnand %p174_p3, %p168_p0 }
   0xb   :  { %v121_v2 = vrot.slane %v112_v61, %v100_v58 }
  0x93   :  { %v29_v16 = vpop.xlane.xlu0 %28  ;;  %v35_v17 = vpop.xlane.xlu1 %34 }
  0x94   :  { %v40_v18 = vmul.f32 0.00390625, %v29_v16  ;;  %v42_v19 = vmul.f32 0.00390625, %v35_v17 }
  0x96   :  { %v44_v20 = vsub.f32 %v19_v3, %v40_v18  ;;  %v45_v21 = vsub.f32 %v20_v4, %v40_v18  ;;  %v226_v22 = vsub.f32 %v23_v5, %v42_v19  ;;  %v228_v23 = vsub.f32 %v24_v6, %v42_v19 }
  0x97   :  { %v32_v24 = vpop.xlane.xlu0 %31  ;;  %v38_v25 = vpop.xlane.xlu1 %37 }
  0x98   :  { %v41_v26 = vmul.f32 0.00390625, %v32_v24  ;;  %v43_v27 = vmul.f32 0.00390625, %v38_v25  ;;  %v52_v28 = vmul.f32 %v44_v20, %v44_v20  ;;  %v53_v29 = vmul.f32 %v45_v21, %v45_v21 }
  0x99   :  { %v56_v30 = vmul.f32 %v226_v22, %v226_v22  ;;  %v57_v31 = vmul.f32 %v228_v23, %v228_v23 }
  0x9a   :  { %v46_v32 = vsub.f32 %v21_v8, %v41_v26  ;;  %v47_v33 = vsub.f32 %v22_v9, %v41_v26  ;;  %v50_v34 = vsub.f32 %v25_v10, %v43_v27  ;;  %v51_v35 = vsub.f32 %v26_v11, %v43_v27 }
  0x9b   :  { %v60_v36 = vadd.f32 %v53_v29, %v52_v28  ;;  %v66_v41 = vadd.f32 %v57_v31, %v56_v30 }
  0x9c   :  { %v54_v37 = vmul.f32 %v46_v32, %v46_v32  ;;  %v55_v38 = vmul.f32 %v47_v33, %v47_v33  ;;  %v58_v39 = vmul.f32 %v50_v34, %v50_v34  ;;  %v59_v40 = vmul.f32 %v51_v35, %v51_v35 }
  0x9d   :  { %61 = vadd.xlane.f32.xlu0 %v60_v36 }
  0x9e   :  { %v63_v42 = vadd.f32 %v55_v38, %v54_v37  ;;  %v69_v43 = vadd.f32 %v59_v40, %v58_v39 }
  0xa0   :  { %64 = vadd.xlane.f32.xlu1 %v63_v42 }
  0xa1   :  { %67 = vadd.xlane.f32.xlu0 %v66_v41 }
  0xa4   :  { %70 = vadd.xlane.f32.xlu1 %v69_v43 }
 0x12a   :  { %v62_v44 = vpop.xlane.xlu0 %61 }
 0x12b   :  { %v72_v45 = vmul.f32 0.00390625, %v62_v44 }
 0x12d   :  { %v76_v47 = vadd.f32 1e-05, %v72_v45  ;;  %v65_v48 = vpop.xlane.xlu1 %64 }
 0x12e   :  { %v73_v49 = vmul.f32 0.00390625, %v65_v48  ;;  %v68_v50 = vpop.xlane.xlu0 %67 }
 0x12f   :  { %159 = vrsqrt.f32 %v76_v47  ;;  %v74_v51 = vmul.f32 0.00390625, %v68_v50 }
 0x130   :  { %v77_v53 = vadd.f32 1e-05, %v73_v49 }
 0x131   :  { %v78_v54 = vadd.f32 1e-05, %v74_v51  ;;  %v71_v55 = vpop.xlane.xlu1 %70 }
 0x132   :  { %161 = vrsqrt.f32 %v77_v53  ;;  %v75_v56 = vmul.f32 0.00390625, %v71_v55 }
 0x133   :  { %163 = vrsqrt.f32 %v78_v54 }
 0x134   :  { %v79_v59 = vadd.f32 1e-05, %v75_v56 }
 0x136   :  { %165 = vrsqrt.f32 %v79_v59 }
 0x139   :  { %v160_v0 = vpop.eup %159 }
 0x13a   :  { %v84_v3 = vmul.f32 %v160_v0, %v44_v20  ;;  %v85_v4 = vmul.f32 %v160_v0, %v45_v21 }
 0x13c   :  { %v162_v5 = vpop.eup %161  ;;  %v104_v6 = vmul.f32 %v97_v62, %v84_v3  ;;  %v105_v7 = vmul.f32 %v101_v63, %v85_v4 }
 0x13d   :  { %v164_v8 = vpop.eup %163  ;;  %v86_v9 = vmul.f32 %v162_v5, %v46_v32  ;;  %v87_v10 = vmul.f32 %v162_v5, %v47_v33 }
 0x13e   :  { %v124_v11 = vadd.f32 %v117_v1, %v104_v6  ;;  %v125_v12 = vadd.f32 %v121_v2, %v105_v7  ;;  %v88_v13 = vmul.f32 %v164_v8, %v226_v22  ;;  %v89_v14 = vmul.f32 %v164_v8, %v228_v23 }
 0x13f   :  { %v106_v15 = vmul.f32 %v97_v62, %v86_v9  ;;  %v107_v16 = vmul.f32 %v101_v63, %v87_v10 }
 0x140   :  { %v166_v17 = vpop.eup %165  ;;  %132 = vst [vmem:[#allocation2] sm:$0xff] %v124_v11  ;;  %133 = vst [vmem:[#allocation2 + $0x8] sm:$0xff] %v125_v12  ;;  %v108_v18 = vmul.f32 %v97_v62, %v88_v13  ;;  %v109_v19 = vmul.f32 %v101_v63, %v89_v14 }
 0x141   :  { %v126_v20 = vadd.f32 %v117_v1, %v106_v15  ;;  %v127_v21 = vadd.f32 %v121_v2, %v107_v16  ;;  %v90_v24 = vmul.f32 %v166_v17, %v50_v34  ;;  %v91_v25 = vmul.f32 %v166_v17, %v51_v35 }
 0x142   :  { %v128_v26 = vadd.f32 %v117_v1, %v108_v18  ;;  %v129_v27 = vadd.f32 %v121_v2, %v109_v19 }
 0x143   :  { %134 = vst [vmem:[#allocation2 + $0x10] sm:$0xff] %v126_v20  ;;  %135 = vst [vmem:[#allocation2 + $0x18] sm:$0xff] %v127_v21  ;;  %v110_v22 = vmul.f32 %v97_v62, %v90_v24  ;;  %v111_v28 = vmul.f32 %v101_v63, %v91_v25 }
 0x144   :  { %136 = vst [vmem:[#allocation2 + $0x20] sm:$0xff] %v128_v26  ;;  %137 = vst [vmem:[#allocation2 + $0x28] sm:$0xff] %v129_v27 }
 0x145   :  { %v130_v23 = vadd.f32 %v117_v1, %v110_v22  ;;  %v131_v29 = vadd.f32 %v121_v2, %v111_v28 }
 0x147   :  { %138 = vst [vmem:[#allocation2 + $0x30] sm:$0xff] %v130_v23  ;;  %139 = vst [vmem:[#allocation2 + $0x38] sm:$0xff] %v131_v29 }
 0x148   :  { %178 = shalt.err (!%p175_p4)
}
 0x149   :  { %s179_s26 = scalar_lea.hbm %s257_s3, 1024 }
 0x14a   :  { %p180_p5 = scmp.ne.s32.totalorder %s257_s3, %s179_s26  ;;  %p183_p6 = scmp.lt.u32.totalorder %s179_s26, %s257_s3 }
 0x14c   :  { %p185_p7 = pnand %p183_p6, %p180_p5 }
 0x14e   :  { %188 = shalt.err (!%p185_p7)
}
 0x14f   :  { %s192_s4 = smov 256   ;;  %s193_s5 = smov 16  }
 0x150   :  { %151 = dma.vmem_to_hbm [thread:$0]  %s146_s2, 1024, %s257_s3, [#allocation3], %s192_s4, %s192_s4, %s193_s5  }
 0x151   :  { %189 = dma.done.wait [#allocation3], 1024  }
 0x152   :  { %190 = vsyncadd [#allocation3], 4294966272 }
 0x153   :  { %155 = vsyncpa [#allocation3], 1 }

// kernel: encoder_forward.12
= control target key start
LH: loop header
LB: loop body
LE: loop exit
PB: predicated region body
PF: predicated region fallthrough
CT: control target
= control target key end

     0   :  { %s2174_s1 = inlined_call_operand.vmem [shape: bf16[256,512], index: 1, kind: input, shape index: {}]   ;;  %s2175_s0 = inlined_call_operand.vmem [shape: bf16[32,256], index: 0, kind: input, shape index: {}, may-alias: {0,5}]   ;;  %s2176_s3 = inlined_call_operand.vmem [shape: bf16[512,256], index: 3, kind: input, shape index: {}]   ;;  %s2177_s2 = inlined_call_operand.vmem [shape: f32[1,512], index: 2, kind: input, shape index: {}]   ;;  %s2178_s4 = inlined_call_operand.vmem [shape: f32[1,256], index: 4, kind: input, shape index: {}]   ;;  %s2179_s5 = inlined_call_operand.vmem [shape: bf16[32,256], index: 5, kind: input, shape index: {}, may-alias: {0,5}]   ;;  %s2180_s6 = inlined_call_operand.vmem [shape: f32[1,256], index: 6, kind: input, shape index: {}]   ;;  %s2181_s7 = inlined_call_operand.vmem [shape: f32[1,256], index: 7, kind: input, shape index: {}]   ;;  %s2182_s8 = inlined_call_operand.vmem [shape: bf16[32,256], index: 8, kind: output, shape index: {}]  }
   0x1   :  { %v1451_v0 = vld [vmem:[%s2174_s1 + $0x4] ss:$16 sps:$4 sm:$0xff]   ;;  %v1453_v1 = vld [vmem:[%s2174_s1] ss:$16 sps:$4 sm:$0xff]   ;;  %v1504_v43 = vld [vmem:[%s2174_s1 + $0xc] ss:$16 sps:$4 sm:$0xff]  }
   0x2   :  { %471 = vmatprep.subr.bf16.mxu1 %v1451_v0  ;;  %v1454_v2 = vld [vmem:[%s2174_s1 + $0x24] ss:$16 sps:$4 sm:$0xff]   ;;  %v1456_v3 = vld [vmem:[%s2174_s1 + $0x20] ss:$16 sps:$4 sm:$0xff]   ;;  %v1502_v44 = vld [vmem:[%s2174_s1 + $0x8] ss:$16 sps:$4 sm:$0xff]  }
   0x3   :  { %472 = vmatpush1.bf16.msra.mxu1 %v1453_v1  ;;  %v1457_v4 = vld [vmem:[%s2174_s1 + $0x44] ss:$16 sps:$4 sm:$0xff]   ;;  %v1459_v5 = vld [vmem:[%s2174_s1 + $0x40] ss:$16 sps:$4 sm:$0xff]   ;;  %v1507_v46 = vld [vmem:[%s2174_s1 + $0x2c] ss:$16 sps:$4 sm:$0xff]  }
   0x4   :  { %473 = vmatprep.subr.bf16.mxu1 %v1454_v2  ;;  %v1460_v6 = vld [vmem:[%s2174_s1 + $0x64] ss:$16 sps:$4 sm:$0xff]   ;;  %v1462_v7 = vld [vmem:[%s2174_s1 + $0x60] ss:$16 sps:$4 sm:$0xff]   ;;  %v1505_v51 = vld [vmem:[%s2174_s1 + $0x28] ss:$16 sps:$4 sm:$0xff]  }
   0x5   :  { %v1463_v8 = vld [vmem:[%s2174_s1 + $0x84] ss:$16 sps:$4 sm:$0xff]   ;;  %v1465_v9 = vld [vmem:[%s2174_s1 + $0x80] ss:$16 sps:$4 sm:$0xff]   ;;  %v1510_v52 = vld [vmem:[%s2174_s1 + $0x4c] ss:$16 sps:$4 sm:$0xff]  }
   0x6   :  { %v1466_v10 = vld [vmem:[%s2174_s1 + $0xa4] ss:$16 sps:$4 sm:$0xff]   ;;  %v1468_v11 = vld [vmem:[%s2174_s1 + $0xa0] ss:$16 sps:$4 sm:$0xff]   ;;  %v1508_v56 = vld [vmem:[%s2174_s1 + $0x48] ss:$16 sps:$4 sm:$0xff]  }
   0x7   :  { %474 = vmatpush1.bf16.msra.mxu1 %v1456_v3  ;;  %v1469_v12 = vld [vmem:[%s2174_s1 + $0xc4] ss:$16 sps:$4 sm:$0xff]   ;;  %v1471_v14 = vld [vmem:[%s2174_s1 + $0xc0] ss:$16 sps:$4 sm:$0xff]   ;;  %v1513_v57 = vld [vmem:[%s2174_s1 + $0x6c] ss:$16 sps:$4 sm:$0xff]  }
   0x8   :  { %475 = vmatprep.subr.bf16.mxu1 %v1457_v4  ;;  %v1744_v13 = vld [vmem:[%s2175_s0 + $0x4] ss:$8 sps:$4 sm:$0xff]   ;;  %v1474_v16 = vld [vmem:[%s2174_s1 + $0xe0] ss:$16 sps:$4 sm:$0xff]   ;;  %v1556_v29 = vld [vmem:[%s2176_s3 + $0x14] ss:$8 sps:$4 sm:$0xff]  }
   0x9   :  { %v1472_v15 = vld [vmem:[%s2174_s1 + $0xe4] ss:$16 sps:$4 sm:$0xff]   ;;  %503 = vmatprep.mubr.bf16.mxu1 %v1744_v13  ;;  %v1477_v18 = vld [vmem:[%s2174_s1 + $0x100] ss:$16 sps:$4 sm:$0xff]   ;;  %v1511_v60 = vld [vmem:[%s2174_s1 + $0x68] ss:$16 sps:$4 sm:$0xff]  }
   0xa   :  { %v1475_v17 = vld [vmem:[%s2174_s1 + $0x104] ss:$16 sps:$4 sm:$0xff]   ;;  %v1480_v20 = vld [vmem:[%s2174_s1 + $0x120] ss:$16 sps:$4 sm:$0xff]   ;;  %v1516_v61 = vld [vmem:[%s2174_s1 + $0x8c] ss:$16 sps:$4 sm:$0xff]  }
   0xb   :  { %476 = vmatpush1.bf16.msra.mxu1 %v1459_v5  ;;  %v1478_v19 = vld [vmem:[%s2174_s1 + $0x124] ss:$16 sps:$4 sm:$0xff]   ;;  %v1483_v22 = vld [vmem:[%s2174_s1 + $0x140] ss:$16 sps:$4 sm:$0xff]   ;;  %v1514_v0 = vld [vmem:[%s2174_s1 + $0x88] ss:$16 sps:$4 sm:$0xff]  }
   0xc   :  { %477 = vmatprep.subr.bf16.mxu1 %v1460_v6  ;;  %v1481_v21 = vld [vmem:[%s2174_s1 + $0x144] ss:$16 sps:$4 sm:$0xff]   ;;  %v1486_v24 = vld [vmem:[%s2174_s1 + $0x160] ss:$16 sps:$4 sm:$0xff]   ;;  %v1519_v1 = vld [vmem:[%s2174_s1 + $0xac] ss:$16 sps:$4 sm:$0xff]  }
   0xd   :  { %v1484_v23 = vld [vmem:[%s2174_s1 + $0x164] ss:$16 sps:$4 sm:$0xff]   ;;  %v1555_v27 = vld [vmem:[%s2176_s3] ss:$8 sps:$4 sm:$0xff]   ;;  %v1558_v31 = vld [vmem:[%s2176_s3 + $0x10] ss:$8 sps:$4 sm:$0xff]  }
   0xe   :  { %v1487_v25 = vld [vmem:[%s2174_s1 + $0x184] ss:$16 sps:$4 sm:$0xff]   ;;  %v1489_v28 = vld [vmem:[%s2174_s1 + $0x180] ss:$16 sps:$4 sm:$0xff]   ;;  %v1517_v4 = vld [vmem:[%s2174_s1 + $0xa8] ss:$16 sps:$4 sm:$0xff]  }
   0xf   :  { %478 = vmatpush1.bf16.msra.mxu1 %v1462_v7  ;;  %v1553_v26 = vld [vmem:[%s2176_s3 + $0x4] ss:$8 sps:$4 sm:$0xff]   ;;  %v1492_v33 = vld [vmem:[%s2174_s1 + $0x1a0] ss:$16 sps:$4 sm:$0xff]   ;;  %v1562_v36 = vld [vmem:[%s2176_s3 + $0x34] ss:$8 sps:$4 sm:$0xff]  }
  0x10   :  { %479 = vmatprep.subr.bf16.mxu1 %v1463_v8  ;;  %v1490_v30 = vld [vmem:[%s2174_s1 + $0x1a4] ss:$16 sps:$4 sm:$0xff]   ;;  %993 = vmatprep.subr.bf16.mxu0 %v1553_v26  ;;  %v1561_v35 = vld [vmem:[%s2176_s3 + $0x20] ss:$8 sps:$4 sm:$0xff]   ;;  %v1564_v39 = vld [vmem:[%s2176_s3 + $0x30] ss:$8 sps:$4 sm:$0xff]  }
  0x11   :  { %994 = vmatpush1.bf16.msra.mxu0 %v1555_v27  ;;  %v1559_v32 = vld [vmem:[%s2176_s3 + $0x24] ss:$8 sps:$4 sm:$0xff]   ;;  %v1495_v37 = vld [vmem:[%s2174_s1 + $0x1c0] ss:$16 sps:$4 sm:$0xff]   ;;  %v1568_v47 = vld [vmem:[%s2176_s3 + $0x54] ss:$8 sps:$4 sm:$0xff]  }
  0x12   :  { %995 = vmatprep.subr.bf16.mxu0 %v1556_v29  ;;  %v1493_v34 = vld [vmem:[%s2174_s1 + $0x1c4] ss:$16 sps:$4 sm:$0xff]   ;;  %v1498_v41 = vld [vmem:[%s2174_s1 + $0x1e0] ss:$16 sps:$4 sm:$0xff]   ;;  %v1522_v5 = vld [vmem:[%s2174_s1 + $0xcc] ss:$16 sps:$4 sm:$0xff]  }
  0x13   :  { %480 = vmatpush1.bf16.msra.mxu1 %v1465_v9  ;;  %v1496_v38 = vld [vmem:[%s2174_s1 + $0x1e4] ss:$16 sps:$4 sm:$0xff]   ;;  %v1834_v42 = vld [vmem:[%s2175_s0] ss:$8 sps:$4 sm:$0xff]   ;;  %v1570_v49 = vld [vmem:[%s2176_s3 + $0x50] ss:$8 sps:$4 sm:$0xff]  }
  0x14   :  { %481 = vmatprep.subr.bf16.mxu1 %v1466_v10  ;;  %v1565_v40 = vld [vmem:[%s2176_s3 + $0x44] ss:$8 sps:$4 sm:$0xff]   ;;  %v1567_v45 = vld [vmem:[%s2176_s3 + $0x40] ss:$8 sps:$4 sm:$0xff]   ;;  %v1854_v48 = vld [vmem:[%s2175_s0 + $0x14] ss:$8 sps:$4 sm:$0xff]  }
  0x15   :  { %996 = vmatpush1.bf16.msra.mxu0 %v1558_v31  ;;  %v1571_v50 = vld [vmem:[%s2176_s3 + $0x64] ss:$8 sps:$4 sm:$0xff]   ;;  %v1573_v53 = vld [vmem:[%s2176_s3 + $0x60] ss:$8 sps:$4 sm:$0xff]   ;;  %v1876_v54 = vld [vmem:[%s2175_s0 + $0x10] ss:$8 sps:$4 sm:$0xff]  }
  0x16   :  { %997 = vmatprep.subr.bf16.mxu0 %v1559_v32  ;;  %v1574_v55 = vld [vmem:[%s2176_s3 + $0x74] ss:$8 sps:$4 sm:$0xff]   ;;  %v1576_v58 = vld [vmem:[%s2176_s3 + $0x70] ss:$8 sps:$4 sm:$0xff]   ;;  %v1577_v59 = vld [vmem:[%s2176_s3 + $0x84] ss:$8 sps:$4 sm:$0xff]  }
  0x17   :  { %482 = vmatpush1.bf16.msra.mxu1 %v1468_v11  ;;  %v1579_v62 = vld [vmem:[%s2176_s3 + $0x80] ss:$8 sps:$4 sm:$0xff]   ;;  %v1580_v63 = vld [vmem:[%s2176_s3 + $0x94] ss:$8 sps:$4 sm:$0xff]   ;;  %v1582_v2 = vld [vmem:[%s2176_s3 + $0x90] ss:$8 sps:$4 sm:$0xff]  }
  0x18   :  { %483 = vmatprep.subr.bf16.mxu1 %v1469_v12  ;;  %v1583_v3 = vld [vmem:[%s2176_s3 + $0xa4] ss:$8 sps:$4 sm:$0xff]   ;;  %v1585_v6 = vld [vmem:[%s2176_s3 + $0xa0] ss:$8 sps:$4 sm:$0xff]   ;;  %v1586_v7 = vld [vmem:[%s2176_s3 + $0xb4] ss:$8 sps:$4 sm:$0xff]  }
  0x19   :  { %998 = vmatpush1.bf16.msra.mxu0 %v1561_v35  ;;  %v1520_v8 = vld [vmem:[%s2174_s1 + $0xc8] ss:$16 sps:$4 sm:$0xff]   ;;  %v1525_v9 = vld [vmem:[%s2174_s1 + $0xec] ss:$16 sps:$4 sm:$0xff]  }
  0x1a   :  { %999 = vmatprep.subr.bf16.mxu0 %v1562_v36  ;;  %v1588_v10 = vld [vmem:[%s2176_s3 + $0xb0] ss:$8 sps:$4 sm:$0xff]   ;;  %v1589_v11 = vld [vmem:[%s2176_s3 + $0xc4] ss:$8 sps:$4 sm:$0xff]  }
  0x1b   :  { %484 = vmatpush1.bf16.msra.mxu1 %v1471_v14  ;;  %v1523_v12 = vld [vmem:[%s2174_s1 + $0xe8] ss:$16 sps:$4 sm:$0xff]   ;;  %v1549_v27 = vld [vmem:[%s2174_s1 + $0x1cc] ss:$16 sps:$4 sm:$0xff]  }
  0x1c   :  { %485 = vmatprep.subr.bf16.mxu1 %v1472_v15  ;;  %v1591_v14 = vld [vmem:[%s2176_s3 + $0xc0] ss:$8 sps:$4 sm:$0xff]   ;;  %v1592_v15 = vld [vmem:[%s2176_s3 + $0xd4] ss:$8 sps:$4 sm:$0xff]   ;;  %v1594_v31 = vld [vmem:[%s2176_s3 + $0xd0] ss:$8 sps:$4 sm:$0xff]  }
  0x1d   :  { %1000 = vmatpush1.bf16.msra.mxu0 %v1564_v39  ;;  %v1544_v26 = vld [vmem:[%s2174_s1 + $0x1a8] ss:$16 sps:$4 sm:$0xff]   ;;  %v1552_v29 = vld [vmem:[%s2174_s1 + $0x1ec] ss:$16 sps:$4 sm:$0xff]  }
  0x1e   :  { %1001 = vmatprep.subr.bf16.mxu0 %v1565_v40  ;;  %v1595_v32 = vld [vmem:[%s2176_s3 + $0xe4] ss:$8 sps:$4 sm:$0xff]   ;;  %v1600_v35 = vld [vmem:[%s2176_s3 + $0xf0] ss:$8 sps:$4 sm:$0xff]   ;;  %v2029_v40 = vld [vmem:[%s2177_s2] sm:$0xf] }
  0x1f   :  { %486 = vmatpush1.bf16.msra.mxu1 %v1474_v16  ;;  %v1526_v16 = vld [vmem:[%s2174_s1 + $0x108] ss:$16 sps:$4 sm:$0xff]   ;;  %v1603_v36 = vld [vmem:[%s2176_s3 + $0x104] ss:$8 sps:$4 sm:$0xff]  }
  0x20   :  { %487 = vmatprep.subr.bf16.mxu1 %v1475_v17  ;;  %v1531_v17 = vld [vmem:[%s2174_s1 + $0x12c] ss:$16 sps:$4 sm:$0xff]  }
  0x21   :  { %1002 = vmatpush1.bf16.msra.mxu0 %v1567_v45 }
  0x22   :  { %1003 = vmatprep.subr.bf16.mxu0 %v1568_v47 }
  0x23   :  { %488 = vmatpush1.bf16.msra.mxu1 %v1477_v18  ;;  %v1529_v18 = vld [vmem:[%s2174_s1 + $0x128] ss:$16 sps:$4 sm:$0xff]  }
  0x24   :  { %489 = vmatprep.subr.bf16.mxu1 %v1478_v19  ;;  %v1534_v19 = vld [vmem:[%s2174_s1 + $0x14c] ss:$16 sps:$4 sm:$0xff]  }
  0x25   :  { %1004 = vmatpush1.bf16.msra.mxu0 %v1570_v49 }
  0x26   :  { %1005 = vmatprep.subr.bf16.mxu0 %v1571_v50 }
  0x27   :  { %490 = vmatpush1.bf16.msra.mxu1 %v1480_v20  ;;  %v1532_v20 = vld [vmem:[%s2174_s1 + $0x148] ss:$16 sps:$4 sm:$0xff]  }
  0x28   :  { %491 = vmatprep.subr.bf16.mxu1 %v1481_v21  ;;  %v1537_v21 = vld [vmem:[%s2174_s1 + $0x16c] ss:$16 sps:$4 sm:$0xff]  }
  0x29   :  { %1006 = vmatpush1.bf16.msra.mxu0 %v1573_v53 }
  0x2a   :  { %1007 = vmatprep.subr.bf16.mxu0 %v1574_v55 }
  0x2b   :  { %492 = vmatpush1.bf16.msra.mxu1 %v1483_v22  ;;  %v1535_v22 = vld [vmem:[%s2174_s1 + $0x168] ss:$16 sps:$4 sm:$0xff]  }
  0x2c   :  { %493 = vmatprep.subr.bf16.mxu1 %v1484_v23  ;;  %v1540_v23 = vld [vmem:[%s2174_s1 + $0x18c] ss:$16 sps:$4 sm:$0xff]  }
  0x2d   :  { %1008 = vmatpush1.bf16.msra.mxu0 %v1576_v58  ;;  %v1601_v58 = vld [vmem:[%s2176_s3 + $0x100] ss:$8 sps:$4 sm:$0xff]  }
  0x2e   :  { %1009 = vmatprep.subr.bf16.mxu0 %v1577_v59 }
  0x2f   :  { %494 = vmatpush1.bf16.msra.mxu1 %v1486_v24  ;;  %v1538_v24 = vld [vmem:[%s2174_s1 + $0x188] ss:$16 sps:$4 sm:$0xff]  }
  0x30   :  { %495 = vmatprep.subr.bf16.mxu1 %v1487_v25  ;;  %v1546_v25 = vld [vmem:[%s2174_s1 + $0x1ac] ss:$16 sps:$4 sm:$0xff]  }
  0x31   :  { %1010 = vmatpush1.bf16.msra.mxu0 %v1579_v62 }
  0x32   :  { %1011 = vmatprep.subr.bf16.mxu0 %v1580_v63 }
  0x33   :  { %496 = vmatpush1.bf16.msra.mxu1 %v1489_v28  ;;  %v1547_v28 = vld [vmem:[%s2174_s1 + $0x1c8] ss:$16 sps:$4 sm:$0xff]  }
  0x34   :  { %497 = vmatprep.subr.bf16.mxu1 %v1490_v30  ;;  %v1550_v30 = vld [vmem:[%s2174_s1 + $0x1e8] ss:$16 sps:$4 sm:$0xff]  }
  0x35   :  { %1012 = vmatpush1.bf16.msra.mxu0 %v1582_v2 }
  0x36   :  { %1013 = vmatprep.subr.bf16.mxu0 %v1583_v3 }
  0x37   :  { %498 = vmatpush1.bf16.msra.mxu1 %v1492_v33  ;;  %v1597_v33 = vld [vmem:[%s2176_s3 + $0xe0] ss:$8 sps:$4 sm:$0xff]  }
  0x38   :  { %499 = vmatprep.subr.bf16.mxu1 %v1493_v34  ;;  %v1598_v34 = vld [vmem:[%s2176_s3 + $0xf4] ss:$8 sps:$4 sm:$0xff]  }
  0x39   :  { %1014 = vmatpush1.bf16.msra.mxu0 %v1585_v6 }
  0x3a   :  { %1015 = vmatprep.subr.bf16.mxu0 %v1586_v7  ;;  %v1609_v7 = vld [vmem:[%s2176_s3 + $0x124] ss:$8 sps:$4 sm:$0xff]  }
  0x3b   :  { %500 = vmatpush1.bf16.msra.mxu1 %v1495_v37  ;;  %v111_v37 = vlaneseq }
  0x3c   :  { %501 = vmatprep.subr.bf16.mxu1 %v1496_v38 }
  0x3d   :  { %1016 = vmatpush1.bf16.msra.mxu0 %v1588_v10  ;;  %v2021_v38 = vshrl.u32 %v111_v37, 7 }
  0x3e   :  { %1017 = vmatprep.subr.bf16.mxu0 %v1589_v11  ;;  %v1607_v11 = vld [vmem:[%s2176_s3 + $0x120] ss:$8 sps:$4 sm:$0xff]  }
  0x3f   :  { %502 = vmatpush1.bf16.msra.mxu1 %v1498_v41  ;;  %v2024_v39 = vsub.s32 0, %v2021_v38  ;;  %v2032_v41 = vsub.s32 1, %v2021_v38 }
  0x40   :  { %524 = vmatprep.subr.bf16.mxu1 %v1504_v43 }
  0x41   :  { %1018 = vmatpush1.bf16.msra.mxu0 %v1591_v14  ;;  %v118_v43 = vrot.slane %v2029_v40, %v2032_v41  ;;  %v1610_v14 = vld [vmem:[%s2176_s3 + $0x130] ss:$8 sps:$4 sm:$0xff]  }
  0x42   :  { %504 = vmatmul.mubr.bf16.vlgmr.msra.gmra.mrb[0].mxu1 %v1834_v42  ;;  %1019 = vmatprep.subr.bf16.mxu0 %v1592_v15  ;;  %v1615_v15 = vld [vmem:[%s2176_s3 + $0x144] ss:$8 sps:$4 sm:$0xff]  }
  0x43   :  { %525 = vmatpush1.bf16.msra.mxu1 %v1502_v44  ;;  %513 = vmatprep.mubr.bf16.mxu1 %v1854_v48 }
  0x44   :  { %526 = vmatprep.subr.bf16.mxu1 %v1507_v46 }
  0x45   :  { %1020 = vmatpush1.bf16.msra.mxu0 %v1594_v31  ;;  %v1639_v31 = vld [vmem:[%s2176_s3 + $0x1c4] ss:$8 sps:$4 sm:$0xff]  }
  0x46   :  { %1021 = vmatprep.subr.bf16.mxu0 %v1595_v32  ;;  %v1637_v32 = vld [vmem:[%s2176_s3 + $0x1c0] ss:$8 sps:$4 sm:$0xff]  }
  0x47   :  { %527 = vmatpush1.bf16.msra.mxu1 %v1505_v51 }
  0x48   :  { %528 = vmatprep.subr.bf16.mxu1 %v1510_v52 }
  0x49   :  { %1022 = vmatpush1.bf16.msra.mxu0 %v1597_v33  ;;  %v1642_v33 = vld [vmem:[%s2176_s3 + $0x1d4] ss:$8 sps:$4 sm:$0xff]  }
  0x4a   :  { %514 = vmatmul.mubr.bf16.gmra.mrb[4].mxu1 %v1876_v54  ;;  %1023 = vmatprep.subr.bf16.mxu0 %v1598_v34  ;;  %v121_v34 = vsub.s32 2, %v2021_v38 }
  0x4b   :  { %529 = vmatpush1.bf16.msra.mxu1 %v1508_v56  ;;  %556 = vmatprep.mubr.bf16.mxu1 %v1744_v13  ;;  %v1528_v13 = vld [vmem:[%s2174_s1 + $0x10c] ss:$16 sps:$4 sm:$0xff]  }
  0x4c   :  { %530 = vmatprep.subr.bf16.mxu1 %v1513_v57  ;;  %v122_v37 = vrot.slane %v2029_v40, %v121_v34 }
  0x4d   :  { %1024 = vmatpush1.bf16.msra.mxu0 %v1600_v35  ;;  %v125_v35 = vsub.s32 3, %v2021_v38  ;;  %v1643_v38 = vld [vmem:[%s2176_s3 + $0x1e0] ss:$8 sps:$4 sm:$0xff]  }
  0x4e   :  { %1046 = vmatprep.subr.bf16.mxu0 %v1603_v36  ;;  %v1640_v36 = vld [vmem:[%s2176_s3 + $0x1d0] ss:$8 sps:$4 sm:$0xff]  }
  0x4f   :  { %531 = vmatpush1.bf16.msra.mxu1 %v1511_v60  ;;  %v1606_v60 = vld [vmem:[%s2176_s3 + $0x114] ss:$8 sps:$4 sm:$0xff]  }
  0x50   :  { %532 = vmatprep.subr.bf16.mxu1 %v1516_v61 }
  0x53   :  { %533 = vmatpush1.bf16.msra.mxu1 %v1514_v0 }
  0x54   :  { %534 = vmatprep.subr.bf16.mxu1 %v1519_v1 }
  0x57   :  { %535 = vmatpush1.bf16.msra.mxu1 %v1517_v4  ;;  %v1604_v4 = vld [vmem:[%s2176_s3 + $0x110] ss:$8 sps:$4 sm:$0xff]  }
  0x58   :  { %536 = vmatprep.subr.bf16.mxu1 %v1522_v5 }
  0x5b   :  { %537 = vmatpush1.bf16.msra.mxu1 %v1520_v8 }
  0x5c   :  { %538 = vmatprep.subr.bf16.mxu1 %v1525_v9 }
  0x5f   :  { %539 = vmatpush1.bf16.msra.mxu1 %v1523_v12 }
  0x60   :  { %540 = vmatprep.subr.bf16.mxu1 %v1528_v13  ;;  %v1612_v13 = vld [vmem:[%s2176_s3 + $0x134] ss:$8 sps:$4 sm:$0xff]  }
  0x63   :  { %541 = vmatpush1.bf16.msra.mxu1 %v1526_v16  ;;  %v1613_v16 = vld [vmem:[%s2176_s3 + $0x140] ss:$8 sps:$4 sm:$0xff]  }
  0x64   :  { %542 = vmatprep.subr.bf16.mxu1 %v1531_v17  ;;  %v1618_v17 = vld [vmem:[%s2176_s3 + $0x154] ss:$8 sps:$4 sm:$0xff]  }
  0x67   :  { %543 = vmatpush1.bf16.msra.mxu1 %v1529_v18  ;;  %v1616_v18 = vld [vmem:[%s2176_s3 + $0x150] ss:$8 sps:$4 sm:$0xff]  }
  0x68   :  { %544 = vmatprep.subr.bf16.mxu1 %v1534_v19  ;;  %v1621_v19 = vld [vmem:[%s2176_s3 + $0x164] ss:$8 sps:$4 sm:$0xff]  }
  0x6b   :  { %545 = vmatpush1.bf16.msra.mxu1 %v1532_v20  ;;  %v1619_v20 = vld [vmem:[%s2176_s3 + $0x160] ss:$8 sps:$4 sm:$0xff]  }
  0x6c   :  { %546 = vmatprep.subr.bf16.mxu1 %v1537_v21  ;;  %v1624_v21 = vld [vmem:[%s2176_s3 + $0x174] ss:$8 sps:$4 sm:$0xff]  }
  0x6f   :  { %547 = vmatpush1.bf16.msra.mxu1 %v1535_v22  ;;  %v1622_v22 = vld [vmem:[%s2176_s3 + $0x170] ss:$8 sps:$4 sm:$0xff]  }
  0x70   :  { %548 = vmatprep.subr.bf16.mxu1 %v1540_v23  ;;  %v1627_v23 = vld [vmem:[%s2176_s3 + $0x184] ss:$8 sps:$4 sm:$0xff]  }
  0x73   :  { %549 = vmatpush1.bf16.msra.mxu1 %v1538_v24  ;;  %v1625_v24 = vld [vmem:[%s2176_s3 + $0x180] ss:$8 sps:$4 sm:$0xff]  }
  0x74   :  { %550 = vmatprep.subr.bf16.mxu1 %v1546_v25  ;;  %v1630_v25 = vld [vmem:[%s2176_s3 + $0x194] ss:$8 sps:$4 sm:$0xff]  }
  0x77   :  { %551 = vmatpush1.bf16.msra.mxu1 %v1544_v26  ;;  %v1628_v26 = vld [vmem:[%s2176_s3 + $0x190] ss:$8 sps:$4 sm:$0xff]  }
  0x78   :  { %552 = vmatprep.subr.bf16.mxu1 %v1549_v27  ;;  %v1633_v27 = vld [vmem:[%s2176_s3 + $0x1a4] ss:$8 sps:$4 sm:$0xff]  }
  0x7b   :  { %553 = vmatpush1.bf16.msra.mxu1 %v1547_v28  ;;  %v1631_v28 = vld [vmem:[%s2176_s3 + $0x1a0] ss:$8 sps:$4 sm:$0xff]  }
  0x7c   :  { %554 = vmatprep.subr.bf16.mxu1 %v1552_v29  ;;  %v1636_v29 = vld [vmem:[%s2176_s3 + $0x1b4] ss:$8 sps:$4 sm:$0xff]  }
  0x7f   :  { %555 = vmatpush1.bf16.msra.mxu1 %v1550_v30  ;;  %v1634_v30 = vld [vmem:[%s2176_s3 + $0x1b0] ss:$8 sps:$4 sm:$0xff]  }
  0x82   :  { %557 = vmatmul.mubr.bf16.vlgmr.msra.gmra.mrb[8].mxu1 %v1834_v42  ;;  %v114_v42 = vrot.slane %v2029_v40, %v2024_v39 }
  0x83   :  { %566 = vmatprep.mubr.bf16.mxu1 %v1854_v48 }
  0x8a   :  { %567 = vmatmul.mubr.bf16.gmra.mrb[12].mxu1 %v1876_v54 }
 0x115   :  { %v505_v44 = vpop.f32.mrb[0].mxu1 }
 0x116   :  { %v506_v45 = vadd.f32 %v505_v44, %v114_v42  ;;  %v507_v46 = vpop.f32.mrb[1].mxu1 }
 0x117   :  { %v508_v47 = vadd.f32 %v507_v46, %v118_v43  ;;  %v509_v48 = vpop.f32.mrb[2].mxu1 }
 0x118   :  { %v577_v49 = vmax.f32 %v506_v45, 0.0  ;;  %v510_v50 = vadd.f32 %v509_v48, %v114_v42  ;;  %v511_v51 = vpop.f32.mrb[3].mxu1 }
 0x119   :  { %v512_v52 = vadd.f32 %v511_v51, %v118_v43  ;;  %v578_v54 = vmax.f32 %v508_v47, 0.0  ;;  %v1648_v47 = vld [vmem:[%s2176_s3 + $0x1f4] ss:$8 sps:$4 sm:$0xff]  }
 0x11a   :  { %v581_v53 = vmax.f32 %v510_v50, 0.0 }
 0x11b   :  { %v582_v55 = vmax.f32 %v512_v52, 0.0 }
 0x11c   :  { %v601_v56 = vpack.c.bf16 %v581_v53, %v577_v49 }
 0x11d   :  { %v602_v57 = vpack.c.bf16 %v582_v55, %v578_v54  ;;  %v515_v59 = vpop.f32.mrb[4].mxu1 }
 0x11e   :  { %v516_v61 = vadd.f32 %v515_v59, %v114_v42  ;;  %v517_v62 = vpop.f32.mrb[5].mxu1 }
 0x11f   :  { %1025 = vmatprep.mubr.bf16.mxu0 %v602_v57  ;;  %v518_v63 = vadd.f32 %v517_v62, %v118_v43  ;;  %v519_v0 = vpop.f32.mrb[6].mxu1 }
 0x120   :  { %1026 = vmatmul.mubr.bf16.vlgmr.msra.gmra.mrb[0].mxu0 %v601_v56  ;;  %v585_v1 = vmax.f32 %v516_v61, 0.0  ;;  %v520_v2 = vadd.f32 %v519_v0, %v114_v42  ;;  %v521_v3 = vpop.f32.mrb[7].mxu1  ;;  %v1645_v42 = vld [vmem:[%s2176_s3 + $0x1e4] ss:$8 sps:$4 sm:$0xff]  }
 0x121   :  { %1047 = vmatpush1.bf16.msra.mxu0 %v1601_v58  ;;  %v586_v5 = vmax.f32 %v518_v63, 0.0  ;;  %v522_v6 = vadd.f32 %v521_v3, %v118_v43  ;;  %v126_v43 = vrot.slane %v2029_v40, %v125_v35  ;;  %v1646_v40 = vld [vmem:[%s2176_s3 + $0x1f0] ss:$8 sps:$4 sm:$0xff]  }
 0x122   :  { %1048 = vmatprep.subr.bf16.mxu0 %v1606_v60  ;;  %v589_v8 = vmax.f32 %v520_v2, 0.0 }
 0x123   :  { %v590_v9 = vmax.f32 %v522_v6, 0.0 }
 0x124   :  { %v605_v10 = vpack.c.bf16 %v589_v8, %v585_v1 }
 0x125   :  { %1049 = vmatpush1.bf16.msra.mxu0 %v1604_v4  ;;  %v606_v12 = vpack.c.bf16 %v590_v9, %v586_v5  ;;  %v1126_v9 = vld [vmem:[%s2178_s4] sm:$0x3] }
 0x126   :  { %1050 = vmatprep.subr.bf16.mxu0 %v1609_v7 }
 0x127   :  { %1035 = vmatprep.mubr.bf16.mxu0 %v606_v12  ;;  %v1135_v12 = vrot.slane %v1126_v9, %v2032_v41 }
 0x128   :  { %1036 = vmatmul.mubr.bf16.gmra.mrb[4].mxu0 %v605_v10  ;;  %v1146_v10 = vld [vmem:[%s2179_s5] sm:$0xff] }
 0x129   :  { %1051 = vmatpush1.bf16.msra.mxu0 %v1607_v11  ;;  %v1131_v11 = vrot.slane %v1126_v9, %v2024_v39 }
 0x12a   :  { %1052 = vmatprep.subr.bf16.mxu0 %v1612_v13  ;;  %v1147_v13 = vld [vmem:[%s2179_s5 + $0x8] sm:$0xff] }
 0x12d   :  { %1053 = vmatpush1.bf16.msra.mxu0 %v1610_v14  ;;  %v1150_v14 = vunpack.c.l.bf16 %v1146_v10 }
 0x12e   :  { %1054 = vmatprep.subr.bf16.mxu0 %v1615_v15 }
 0x131   :  { %1055 = vmatpush1.bf16.msra.mxu0 %v1613_v16  ;;  %v1151_v16 = vunpack.c.h.bf16 %v1146_v10 }
 0x132   :  { %1056 = vmatprep.subr.bf16.mxu0 %v1618_v17 }
 0x135   :  { %1057 = vmatpush1.bf16.msra.mxu0 %v1616_v18 }
 0x136   :  { %1058 = vmatprep.subr.bf16.mxu0 %v1621_v19 }
 0x139   :  { %1059 = vmatpush1.bf16.msra.mxu0 %v1619_v20 }
 0x13a   :  { %1060 = vmatprep.subr.bf16.mxu0 %v1624_v21  ;;  %v1152_v21 = vunpack.c.l.bf16 %v1147_v13 }
 0x13d   :  { %1061 = vmatpush1.bf16.msra.mxu0 %v1622_v22  ;;  %v1153_v22 = vunpack.c.h.bf16 %v1147_v13 }
 0x13e   :  { %1062 = vmatprep.subr.bf16.mxu0 %v1627_v23 }
 0x141   :  { %1063 = vmatpush1.bf16.msra.mxu0 %v1625_v24 }
 0x142   :  { %1064 = vmatprep.subr.bf16.mxu0 %v1630_v25 }
 0x145   :  { %1065 = vmatpush1.bf16.msra.mxu0 %v1628_v26 }
 0x146   :  { %1066 = vmatprep.subr.bf16.mxu0 %v1633_v27 }
 0x149   :  { %1067 = vmatpush1.bf16.msra.mxu0 %v1631_v28  ;;  %v1148_v28 = vld [vmem:[%s2179_s5 + $0x10] sm:$0xff] }
 0x14a   :  { %1068 = vmatprep.subr.bf16.mxu0 %v1636_v29  ;;  %v1155_v35 = vunpack.c.h.bf16 %v1148_v28 }
 0x14d   :  { %1069 = vmatpush1.bf16.msra.mxu0 %v1634_v30 }
 0x14e   :  { %1070 = vmatprep.subr.bf16.mxu0 %v1639_v31 }
 0x151   :  { %1071 = vmatpush1.bf16.msra.mxu0 %v1637_v32  ;;  %v1149_v32 = vld [vmem:[%s2179_s5 + $0x18] sm:$0xff] }
 0x152   :  { %1072 = vmatprep.subr.bf16.mxu0 %v1642_v33  ;;  %v1154_v33 = vunpack.c.l.bf16 %v1148_v28 }
 0x155   :  { %v558_v44 = vpop.f32.mrb[8].mxu1  ;;  %1073 = vmatpush1.bf16.msra.mxu0 %v1640_v36 }
 0x156   :  { %v559_v45 = vadd.f32 %v558_v44, %v122_v37  ;;  %v560_v46 = vpop.f32.mrb[9].mxu1  ;;  %1074 = vmatprep.subr.bf16.mxu0 %v1645_v42  ;;  %v1156_v44 = vunpack.c.l.bf16 %v1149_v32 }
 0x157   :  { %v561_v48 = vadd.f32 %v560_v46, %v126_v43  ;;  %v562_v49 = vpop.f32.mrb[10].mxu1 }
 0x158   :  { %v563_v50 = vadd.f32 %v562_v49, %v122_v37  ;;  %v564_v51 = vpop.f32.mrb[11].mxu1  ;;  %v579_v53 = vmax.f32 %v559_v45, 0.0 }
 0x159   :  { %v565_v52 = vadd.f32 %v564_v51, %v126_v43  ;;  %1075 = vmatpush1.bf16.msra.mxu0 %v1643_v38  ;;  %v580_v55 = vmax.f32 %v561_v48, 0.0  ;;  %v1157_v38 = vunpack.c.h.bf16 %v1149_v32 }
 0x15a   :  { %v583_v54 = vmax.f32 %v563_v50, 0.0  ;;  %1076 = vmatprep.subr.bf16.mxu0 %v1648_v47 }
 0x15b   :  { %v584_v56 = vmax.f32 %v565_v52, 0.0 }
 0x15c   :  { %v603_v57 = vpack.c.bf16 %v583_v54, %v579_v53 }
 0x15d   :  { %v604_v58 = vpack.c.bf16 %v584_v56, %v580_v55  ;;  %v568_v59 = vpop.f32.mrb[12].mxu1  ;;  %1077 = vmatpush1.bf16.msra.mxu0 %v1646_v40 }
 0x15e   :  { %v569_v60 = vadd.f32 %v568_v59, %v122_v37  ;;  %v570_v61 = vpop.f32.mrb[13].mxu1 }
 0x15f   :  { %v571_v62 = vadd.f32 %v570_v61, %v126_v43  ;;  %v572_v63 = vpop.f32.mrb[14].mxu1  ;;  %1078 = vmatprep.mubr.bf16.mxu0 %v604_v58 }
 0x160   :  { %v573_v0 = vadd.f32 %v572_v63, %v122_v37  ;;  %v574_v1 = vpop.f32.mrb[15].mxu1  ;;  %1079 = vmatmul.mubr.bf16.vlgmr.msra.gmra.mrb[0].mxu0 %v603_v57  ;;  %v587_v3 = vmax.f32 %v569_v60, 0.0 }
 0x161   :  { %v575_v2 = vadd.f32 %v574_v1, %v126_v43  ;;  %v588_v5 = vmax.f32 %v571_v62, 0.0 }
 0x162   :  { %v591_v4 = vmax.f32 %v573_v0, 0.0 }
 0x163   :  { %v592_v6 = vmax.f32 %v575_v2, 0.0 }
 0x164   :  { %v607_v7 = vpack.c.bf16 %v591_v4, %v587_v3 }
 0x165   :  { %v608_v8 = vpack.c.bf16 %v592_v6, %v588_v5 }
 0x167   :  { %1088 = vmatprep.mubr.bf16.mxu0 %v608_v8 }
 0x168   :  { %1089 = vmatmul.mubr.bf16.gmra.mrb[4].mxu0 %v607_v7 }
 0x233   :  { %v1080_v15 = vpop.f32.mrb[0].mxu0 }
 0x234   :  { %v1138_v17 = vadd.f32 %v1131_v11, %v1080_v15  ;;  %v1082_v18 = vpop.f32.mrb[1].mxu0 }
 0x235   :  { %v1139_v19 = vadd.f32 %v1135_v12, %v1082_v18  ;;  %v1084_v20 = vpop.f32.mrb[2].mxu0 }
 0x236   :  { %v1140_v23 = vadd.f32 %v1131_v11, %v1084_v20  ;;  %v1086_v24 = vpop.f32.mrb[3].mxu0  ;;  %v1158_v25 = vadd.f32 %v1150_v14, %v1138_v17 }
 0x237   :  { %v1141_v26 = vadd.f32 %v1135_v12, %v1086_v24  ;;  %v1159_v27 = vadd.f32 %v1151_v16, %v1139_v19 }
 0x238   :  { %v1160_v29 = vadd.f32 %v1152_v21, %v1140_v23 }
 0x239   :  { %v1161_v30 = vadd.f32 %v1153_v22, %v1141_v26  ;;  %v1166_v31 = vadd.f32 %v1159_v27, %v1158_v25  ;;  %v1231_v26 = vld [vmem:[%s2180_s6] sm:$0x3] }
 0x23a   :  { %v1240_v32 = vrot.slane %v1231_v26, %v2032_v41 }
 0x23b   :  { %1167 = vadd.xlane.f32.xlu0 %v1166_v31  ;;  %v1090_v34 = vpop.f32.mrb[4].mxu0  ;;  %v1169_v45 = vadd.f32 %v1161_v30, %v1160_v29  ;;  %v1236_v31 = vrot.slane %v1231_v26, %v2024_v39 }
 0x23c   :  { %v1142_v36 = vadd.f32 %v1131_v11, %v1090_v34  ;;  %v1092_v37 = vpop.f32.mrb[5].mxu0 }
 0x23d   :  { %v1143_v42 = vadd.f32 %v1135_v12, %v1092_v37  ;;  %v1094_v43 = vpop.f32.mrb[6].mxu0 }
 0x23e   :  { %v1144_v46 = vadd.f32 %v1131_v11, %v1094_v43  ;;  %v1096_v47 = vpop.f32.mrb[7].mxu0  ;;  %v1162_v48 = vadd.f32 %v1154_v33, %v1142_v36 }
 0x23f   :  { %v1145_v49 = vadd.f32 %v1135_v12, %v1096_v47  ;;  %1170 = vadd.xlane.f32.xlu0 %v1169_v45  ;;  %v1163_v50 = vadd.f32 %v1155_v35, %v1143_v42 }
 0x240   :  { %v1164_v51 = vadd.f32 %v1156_v44, %v1144_v46 }
 0x241   :  { %v1165_v52 = vadd.f32 %v1157_v38, %v1145_v49  ;;  %v1172_v40 = vadd.f32 %v1163_v50, %v1162_v48 }
 0x243   :  { %1173 = vadd.xlane.f32.xlu1 %v1172_v40  ;;  %v1175_v53 = vadd.f32 %v1165_v52, %v1164_v51 }
 0x247   :  { %1176 = vadd.xlane.f32.xlu1 %v1175_v53 }
 0x2c8   :  { %v1168_v54 = vpop.xlane.xlu0 %1167 }
 0x2c9   :  { %v1179_v55 = vmul.f32 0.00390625, %v1168_v54 }
 0x2cb   :  { %v1183_v56 = vsub.f32 %v1158_v25, %v1179_v55  ;;  %v1184_v57 = vsub.f32 %v1159_v27, %v1179_v55 }
 0x2cc   :  { %v1171_v58 = vpop.xlane.xlu0 %1170 }
 0x2cd   :  { %v1180_v59 = vmul.f32 0.00390625, %v1171_v58  ;;  %v1191_v60 = vmul.f32 %v1183_v56, %v1183_v56  ;;  %v1192_v61 = vmul.f32 %v1184_v57, %v1184_v57 }
 0x2cf   :  { %v1185_v62 = vsub.f32 %v1160_v29, %v1180_v59  ;;  %v1186_v63 = vsub.f32 %v1161_v30, %v1180_v59  ;;  %v1199_v0 = vadd.f32 %v1192_v61, %v1191_v60  ;;  %v1251_v29 = vld [vmem:[%s2181_s7] sm:$0x3] }
 0x2d0   :  { %v1174_v1 = vpop.xlane.xlu1 %1173  ;;  %v1256_v35 = vrot.slane %v1251_v29, %v2024_v39  ;;  %v1260_v36 = vrot.slane %v1251_v29, %v2032_v41 }
 0x2d1   :  { %v1181_v2 = vmul.f32 0.00390625, %v1174_v1  ;;  %1200 = vadd.xlane.f32.xlu0 %v1199_v0  ;;  %v1193_v3 = vmul.f32 %v1185_v62, %v1185_v62  ;;  %v1194_v4 = vmul.f32 %v1186_v63, %v1186_v63 }
 0x2d3   :  { %v1187_v5 = vsub.f32 %v1162_v48, %v1181_v2  ;;  %v1188_v6 = vsub.f32 %v1163_v50, %v1181_v2  ;;  %v1202_v7 = vadd.f32 %v1194_v4, %v1193_v3 }
 0x2d4   :  { %v1177_v8 = vpop.xlane.xlu1 %1176 }
 0x2d5   :  { %v1182_v9 = vmul.f32 0.00390625, %v1177_v8  ;;  %1203 = vadd.xlane.f32.xlu1 %v1202_v7  ;;  %v1195_v10 = vmul.f32 %v1187_v5, %v1187_v5  ;;  %v1196_v11 = vmul.f32 %v1188_v6, %v1188_v6 }
 0x2d7   :  { %v1189_v12 = vsub.f32 %v1164_v51, %v1182_v9  ;;  %v1190_v13 = vsub.f32 %v1165_v52, %v1182_v9  ;;  %v1205_v14 = vadd.f32 %v1196_v11, %v1195_v10 }
 0x2d9   :  { %1206 = vadd.xlane.f32.xlu0 %v1205_v14  ;;  %v1197_v15 = vmul.f32 %v1189_v12, %v1189_v12  ;;  %v1198_v16 = vmul.f32 %v1190_v13, %v1190_v13 }
 0x2db   :  { %v1208_v17 = vadd.f32 %v1198_v16, %v1197_v15 }
 0x2dd   :  { %1209 = vadd.xlane.f32.xlu1 %v1208_v17 }
 0x35e   :  { %v1201_v18 = vpop.xlane.xlu0 %1200 }
 0x35f   :  { %v1211_v19 = vmul.f32 0.00390625, %v1201_v18 }
 0x361   :  { %v1215_v20 = vadd.f32 1e-05, %v1211_v19 }
 0x362   :  { %v1204_v21 = vpop.xlane.xlu1 %1203 }
 0x363   :  { %1649 = vrsqrt.f32 %v1215_v20  ;;  %v1212_v22 = vmul.f32 0.00390625, %v1204_v21 }
 0x365   :  { %v1216_v23 = vadd.f32 1e-05, %v1212_v22 }
 0x366   :  { %v1207_v24 = vpop.xlane.xlu0 %1206 }
 0x367   :  { %1651 = vrsqrt.f32 %v1216_v23  ;;  %v1213_v25 = vmul.f32 0.00390625, %v1207_v24 }
 0x369   :  { %v1217_v27 = vadd.f32 1e-05, %v1213_v25 }
 0x36a   :  { %v1210_v28 = vpop.xlane.xlu1 %1209 }
 0x36b   :  { %1653 = vrsqrt.f32 %v1217_v27  ;;  %v1214_v30 = vmul.f32 0.00390625, %v1210_v28 }
 0x36d   :  { %v1650_v33 = vpop.eup %1649  ;;  %v1218_v34 = vadd.f32 1e-05, %v1214_v30 }
 0x36e   :  { %v1223_v37 = vmul.f32 %v1650_v33, %v1183_v56  ;;  %v1224_v42 = vmul.f32 %v1650_v33, %v1184_v57 }
 0x36f   :  { %1655 = vrsqrt.f32 %v1218_v34 }
 0x370   :  { %v1243_v43 = vmul.f32 %v1236_v31, %v1223_v37  ;;  %v1244_v44 = vmul.f32 %v1240_v32, %v1224_v42 }
 0x371   :  { %v1652_v38 = vpop.eup %1651 }
 0x372   :  { %v1263_v45 = vadd.f32 %v1256_v35, %v1243_v43  ;;  %v1264_v46 = vadd.f32 %v1260_v36, %v1244_v44  ;;  %v1225_v47 = vmul.f32 %v1652_v38, %v1185_v62  ;;  %v1226_v48 = vmul.f32 %v1652_v38, %v1186_v63 }
 0x374   :  { %v1439_v49 = vpack.c.bf16 %v1264_v46, %v1263_v45  ;;  %v1245_v50 = vmul.f32 %v1236_v31, %v1225_v47  ;;  %v1246_v51 = vmul.f32 %v1240_v32, %v1226_v48 }
 0x375   :  { %v1654_v52 = vpop.eup %1653 }
 0x376   :  { %1295 = vst [vmem:[%s2182_s8] sm:$0xff] %v1439_v49  ;;  %v1265_v39 = vadd.f32 %v1256_v35, %v1245_v50  ;;  %v1266_v41 = vadd.f32 %v1260_v36, %v1246_v51  ;;  %v1227_v40 = vmul.f32 %v1654_v52, %v1187_v5  ;;  %v1228_v53 = vmul.f32 %v1654_v52, %v1188_v6 }
 0x378   :  { %v1440_v54 = vpack.c.bf16 %v1266_v41, %v1265_v39  ;;  %v1247_v55 = vmul.f32 %v1236_v31, %v1227_v40  ;;  %v1248_v56 = vmul.f32 %v1240_v32, %v1228_v53 }
 0x379   :  { %v1656_v57 = vpop.eup %1655 }
 0x37a   :  { %1296 = vst [vmem:[%s2182_s8 + $0x8] sm:$0xff] %v1440_v54  ;;  %v1267_v58 = vadd.f32 %v1256_v35, %v1247_v55  ;;  %v1268_v59 = vadd.f32 %v1260_v36, %v1248_v56  ;;  %v1229_v60 = vmul.f32 %v1656_v57, %v1189_v12  ;;  %v1230_v61 = vmul.f32 %v1656_v57, %v1190_v13 }
 0x37c   :  { %v1441_v62 = vpack.c.bf16 %v1268_v59, %v1267_v58  ;;  %v1249_v63 = vmul.f32 %v1236_v31, %v1229_v60  ;;  %v1250_v0 = vmul.f32 %v1240_v32, %v1230_v61 }
 0x37e   :  { %1297 = vst [vmem:[%s2182_s8 + $0x10] sm:$0xff] %v1441_v62  ;;  %v1269_v1 = vadd.f32 %v1256_v35, %v1249_v63  ;;  %v1270_v2 = vadd.f32 %v1260_v36, %v1250_v0 }
 0x380   :  { %v1442_v3 = vpack.c.bf16 %v1270_v2, %v1269_v1 }
 0x382   :  { %1298 = vst [vmem:[%s2182_s8 + $0x18] sm:$0xff] %v1442_v3 }

// kernel: encoder_forward.13
= control target key start
LH: loop header
LB: loop body
LE: loop exit
PB: predicated region body
PF: predicated region fallthrough
CT: control target
= control target key end

     0   :  { %s1188_s12 = smov 0   ;;  %s1190_s13 = smov 0   ;;  %s1382_s0 = inlined_call_operand.vmem [shape: bf16[32,256], index: 0, kind: input, shape index: {}]   ;;  %s1383_s1 = inlined_call_operand.vmem [shape: bf16[256,768], index: 1, kind: input, shape index: {}]   ;;  %s1384_s2 = inlined_call_operand.vmem [shape: f32[1,768], index: 2, kind: input, shape index: {}]   ;;  %s1385_s3 = inlined_call_operand.vmem [shape: bf16[32,768], index: 3, kind: output, shape index: {}]  }
   0x1   :  { %s1192_s14 = smov 0   ;;  %s1194_s15 = smov 0  }
   0x2   :  { %s1196_s16 = smov 0  }
   0x3 LB: > { %s28_s17 = sadd.s32 1, %s1162_s15  ;;  %s939_s18 = sadd.s32 4294967295, %s1166_s16   ;;  %s1166_s16 = sphi %s1196_s16, %s13_s16   ;;  %s1162_s15 = sphi %s1194_s15, %s1390_s15   ;;  %s1158_s14 = sphi %s1192_s14, %s1389_s14   ;;  %s1154_s13 = sphi %s1190_s13, %s1388_s13   ;;  %s1150_s12 = sphi %s1188_s12, %s1387_s12  }
   0x4   : > { %p30_p0 = scmp.ge.s32.totalorder %s28_s17, 3  ;;  %p76_p1 = scmp.ne.s32.totalorder %s1154_s13, %s1150_s12 }
   0x5   : > { %p77_p2 = scmp.eq.s32.totalorder %s1166_s16, 0  ;;  %p134_p4 = scmp.eq.s32.totalorder %s939_s18, 2 }
   0x6   : > { %s1392_s17 = smov (%p30_p0, %s28_s17), 0  ;;  %s69_s20 = sadd.s32 1, %s1154_s13 }
   0x7   : > { %p78_p3 = por %p77_p2, %p76_p1  ;;  %s65_s19 = ssub.s32 %s1162_s15, %s1392_s17 }
   0x8   : > { %p67_p5 = scmp.eq.s32.totalorder %s65_s19, 0  ;;  %p1223_p6 = por %p134_p4, %p76_p1 }
   0x9   : > { %p943_p7 = scmp.ge.s32.totalorder %s1166_s16, 3 }
   0xa   : > { %s1228_s22 = scalar_select %p67_p5, %s1154_s13, %s69_s20  }
   0xb   : > { %171 = sbr.rel (%p943_p7) target bundleno = 38 (0x26), region = 20 }
  0x12   : > { %174 = sbr.rel (!%p78_p3) target bundleno = 38 (0x26), region = 24  ;;  %s176_s23 = sand.u32 (%p78_p3), 1, %s1154_s13  }
  0x13   : > { %s996_s24 = sshll.u32 (%p78_p3), %s1162_s15, 3  ;;  %s944_s25 = sshll.u32 (%p78_p3), %s176_s23, 8 }
  0x14   : > { %s1236_s28 = scalar_lea.vmem (%p78_p3), %s1383_s1, %s996_s24  ;;  %s1241_s29 = scalar_lea.vmem (%p78_p3), [#allocation3], %s944_s25 }
  0x15   : > { %v274_v0 = vld [vmem:[%s1236_s28] sm:$0xff] (%p78_p3)  ;;  %v276_v1 = vld [vmem:[%s1236_s28 + $0x18] sm:$0xff] (%p78_p3)  ;;  %v278_v2 = vld [vmem:[%s1236_s28 + $0x30] sm:$0xff] (%p78_p3) }
  0x16   : > { %275 = vst [vmem:[%s1241_s29] sm:$0xff] (%p78_p3), %v274_v0  ;;  %277 = vst [vmem:[%s1241_s29 + $0x8] sm:$0xff] (%p78_p3), %v276_v1  ;;  %v280_v3 = vld [vmem:[%s1236_s28 + $0x48] sm:$0xff] (%p78_p3)  ;;  %v282_v4 = vld [vmem:[%s1236_s28 + $0x60] sm:$0xff] (%p78_p3) }
  0x17   : > { %279 = vst [vmem:[%s1241_s29 + $0x10] sm:$0xff] (%p78_p3), %v278_v2  ;;  %v284_v5 = vld [vmem:[%s1236_s28 + $0x78] sm:$0xff] (%p78_p3)  ;;  %281 = vst [vmem:[%s1241_s29 + $0x18] sm:$0xff] (%p78_p3), %v280_v3  ;;  %v286_v6 = vld [vmem:[%s1236_s28 + $0x90] sm:$0xff] (%p78_p3) }
  0x18   : > { %283 = vst [vmem:[%s1241_s29 + $0x20] sm:$0xff] (%p78_p3), %v282_v4  ;;  %285 = vst [vmem:[%s1241_s29 + $0x28] sm:$0xff] (%p78_p3), %v284_v5  ;;  %v288_v7 = vld [vmem:[%s1236_s28 + $0xa8] sm:$0xff] (%p78_p3)  ;;  %v290_v8 = vld [vmem:[%s1236_s28 + $0xc0] sm:$0xff] (%p78_p3) }
  0x19   : > { %287 = vst [vmem:[%s1241_s29 + $0x30] sm:$0xff] %v286_v6  ;;  %289 = vst [vmem:[%s1241_s29 + $0x38] sm:$0xff] %v288_v7  ;;  %v292_v9 = vld [vmem:[%s1236_s28 + $0xd8] sm:$0xff]  ;;  %v294_v10 = vld [vmem:[%s1236_s28 + $0xf0] sm:$0xff] }
  0x1a   : > { %291 = vst [vmem:[%s1241_s29 + $0x40] sm:$0xff] %v290_v8  ;;  %v296_v11 = vld [vmem:[%s1236_s28 + $0x108] sm:$0xff]  ;;  %293 = vst [vmem:[%s1241_s29 + $0x48] sm:$0xff] %v292_v9  ;;  %v298_v12 = vld [vmem:[%s1236_s28 + $0x120] sm:$0xff] }
  0x1b   : > { %295 = vst [vmem:[%s1241_s29 + $0x50] sm:$0xff] %v294_v10  ;;  %297 = vst [vmem:[%s1241_s29 + $0x58] sm:$0xff] %v296_v11  ;;  %v300_v13 = vld [vmem:[%s1236_s28 + $0x138] sm:$0xff]  ;;  %v302_v14 = vld [vmem:[%s1236_s28 + $0x150] sm:$0xff] }
  0x1c   : > { %299 = vst [vmem:[%s1241_s29 + $0x60] sm:$0xff] %v298_v12  ;;  %301 = vst [vmem:[%s1241_s29 + $0x68] sm:$0xff] %v300_v13  ;;  %v304_v15 = vld [vmem:[%s1236_s28 + $0x168] sm:$0xff]  ;;  %v306_v16 = vld [vmem:[%s1236_s28 + $0x180] sm:$0xff] }
  0x1d   : > { %303 = vst [vmem:[%s1241_s29 + $0x70] sm:$0xff] %v302_v14  ;;  %v308_v17 = vld [vmem:[%s1236_s28 + $0x198] sm:$0xff]  ;;  %305 = vst [vmem:[%s1241_s29 + $0x78] sm:$0xff] %v304_v15  ;;  %v310_v18 = vld [vmem:[%s1236_s28 + $0x1b0] sm:$0xff] }
  0x1e   : > { %307 = vst [vmem:[%s1241_s29 + $0x80] sm:$0xff] %v306_v16  ;;  %309 = vst [vmem:[%s1241_s29 + $0x88] sm:$0xff] %v308_v17  ;;  %v312_v19 = vld [vmem:[%s1236_s28 + $0x1c8] sm:$0xff]  ;;  %v314_v20 = vld [vmem:[%s1236_s28 + $0x1e0] sm:$0xff] }
  0x1f   : > { %311 = vst [vmem:[%s1241_s29 + $0x90] sm:$0xff] %v310_v18  ;;  %313 = vst [vmem:[%s1241_s29 + $0x98] sm:$0xff] %v312_v19  ;;  %v316_v21 = vld [vmem:[%s1236_s28 + $0x1f8] sm:$0xff]  ;;  %v318_v22 = vld [vmem:[%s1236_s28 + $0x210] sm:$0xff] }
  0x20   : > { %315 = vst [vmem:[%s1241_s29 + $0xa0] sm:$0xff] %v314_v20  ;;  %v320_v23 = vld [vmem:[%s1236_s28 + $0x228] sm:$0xff]  ;;  %317 = vst [vmem:[%s1241_s29 + $0xa8] sm:$0xff] %v316_v21  ;;  %v322_v24 = vld [vmem:[%s1236_s28 + $0x240] sm:$0xff] }
  0x21   : > { %319 = vst [vmem:[%s1241_s29 + $0xb0] sm:$0xff] %v318_v22  ;;  %321 = vst [vmem:[%s1241_s29 + $0xb8] sm:$0xff] %v320_v23  ;;  %v324_v25 = vld [vmem:[%s1236_s28 + $0x258] sm:$0xff]  ;;  %v326_v26 = vld [vmem:[%s1236_s28 + $0x270] sm:$0xff] }
  0x22   : > { %323 = vst [vmem:[%s1241_s29 + $0xc0] sm:$0xff] %v322_v24  ;;  %325 = vst [vmem:[%s1241_s29 + $0xc8] sm:$0xff] %v324_v25  ;;  %v328_v27 = vld [vmem:[%s1236_s28 + $0x288] sm:$0xff]  ;;  %v330_v28 = vld [vmem:[%s1236_s28 + $0x2a0] sm:$0xff] }
  0x23   : > { %327 = vst [vmem:[%s1241_s29 + $0xd0] sm:$0xff] %v326_v26  ;;  %v332_v29 = vld [vmem:[%s1236_s28 + $0x2b8] sm:$0xff]  ;;  %329 = vst [vmem:[%s1241_s29 + $0xd8] sm:$0xff] %v328_v27  ;;  %v334_v30 = vld [vmem:[%s1236_s28 + $0x2d0] sm:$0xff] }
  0x24   : > { %331 = vst [vmem:[%s1241_s29 + $0xe0] sm:$0xff] %v330_v28  ;;  %333 = vst [vmem:[%s1241_s29 + $0xe8] sm:$0xff] %v332_v29  ;;  %v336_v31 = vld [vmem:[%s1236_s28 + $0x2e8] sm:$0xff] }
  0x25   : > { %335 = vst [vmem:[%s1241_s29 + $0xf0] sm:$0xff] %v334_v30  ;;  %337 = vst [vmem:[%s1241_s29 + $0xf8] sm:$0xff] %v336_v31 }
  0x26 PF: > { %p947_p8 = scmp.ge.s32.totalorder %s1166_s16, 1  ;;  %p350_p9 = scmp.lt.s32.totalorder %s1166_s16, 4 }
  0x28   : > { %p351_p10 = pnand %p947_p8, %p350_p9 }
  0x29   : > { %s357_s30 = sand.u32 (!%p351_p10), 1, %s1150_s12   ;;  %v1124_v32 = vld [vmem:[%s1382_s0 + $0x4] ss:$8 sps:$4 sm:$0xff] (!%p351_p10)   ;;  %v1127_v33 = vld [vmem:[%s1382_s0 + $0x14] ss:$8 sps:$4 sm:$0xff] (!%p351_p10)   ;;  %s950_s20 = sshll.u32 (!%p351_p10), %s1158_s14, 1  ;;  %v732_v4 = vlaneseq (!%p351_p10) }
  0x2a   : > { %354 = sbr.rel (%p351_p10) target bundleno = 337 (0x151), region = 66  ;;  %s948_s4 = sshll.u32 (!%p351_p10), %s357_s30, 8  ;;  %682 = vmatprep.mubr.bf16.mxu0 (!%p351_p10), %v1124_v32  ;;  %692 = vmatprep.mubr.bf16.mxu1 (!%p351_p10), %v1127_v33  ;;  %v1122_v2 = vld [vmem:[%s1382_s0] ss:$8 sps:$4 sm:$0xff] (!%p351_p10)   ;;  %v1125_v3 = vld [vmem:[%s1382_s0 + $0x10] ss:$8 sps:$4 sm:$0xff] (!%p351_p10)  }
  0x2b   : > { %s1315_s9 = scalar_lea.vmem (!%p351_p10), [#allocation3], %s948_s4  ;;  %p408_p11 = scmp.lt.s32.totalorder (!%p351_p10), %s950_s20, 5  ;;  %v733_v5 = vshrl.u32 (!%p351_p10), %v732_v4, 7 }
  0x2c   : > { %v1074_v34 = vld [vmem:[%s1315_s9 + $0x4] ss:$8 sps:$4 sm:$0xff] (!%p351_p10)   ;;  %v1076_v35 = vld [vmem:[%s1315_s9] ss:$8 sps:$4 sm:$0xff] (!%p351_p10)   ;;  %v1077_v36 = vld [vmem:[%s1315_s9 + $0x14] ss:$8 sps:$4 sm:$0xff] (!%p351_p10)  }
  0x2d   : > { %650 = vmatprep.subr.bf16.mxu0 (!%p351_p10), %v1074_v34  ;;  %1002 = vmatprep.subr.bf16.mxu1 (!%p351_p10), %v1074_v34  ;;  %v1079_v37 = vld [vmem:[%s1315_s9 + $0x10] ss:$8 sps:$4 sm:$0xff] (!%p351_p10)   ;;  %v1080_v38 = vld [vmem:[%s1315_s9 + $0x24] ss:$8 sps:$4 sm:$0xff] (!%p351_p10)   ;;  %v1082_v39 = vld [vmem:[%s1315_s9 + $0x20] ss:$8 sps:$4 sm:$0xff] (!%p351_p10)  }
  0x2e   : > { %651 = vmatpush1.bf16.msra.mxu0 (!%p351_p10), %v1076_v35  ;;  %1018 = vmatpush1.bf16.msra.mxu1 (!%p351_p10), %v1076_v35  ;;  %v1083_v40 = vld [vmem:[%s1315_s9 + $0x34] ss:$8 sps:$4 sm:$0xff] (!%p351_p10)   ;;  %v1085_v41 = vld [vmem:[%s1315_s9 + $0x30] ss:$8 sps:$4 sm:$0xff] (!%p351_p10)   ;;  %v1086_v42 = vld [vmem:[%s1315_s9 + $0x44] ss:$8 sps:$4 sm:$0xff] (!%p351_p10)  }
  0x2f   : > { %652 = vmatprep.subr.bf16.mxu0 (!%p351_p10), %v1077_v36  ;;  %1003 = vmatprep.subr.bf16.mxu1 (!%p351_p10), %v1077_v36  ;;  %v1088_v43 = vld [vmem:[%s1315_s9 + $0x40] ss:$8 sps:$4 sm:$0xff] (!%p351_p10)   ;;  %v1089_v44 = vld [vmem:[%s1315_s9 + $0x54] ss:$8 sps:$4 sm:$0xff] (!%p351_p10)   ;;  %v1091_v45 = vld [vmem:[%s1315_s9 + $0x50] ss:$8 sps:$4 sm:$0xff] (!%p351_p10)  }
  0x30   : > { %v1092_v46 = vld [vmem:[%s1315_s9 + $0x64] ss:$8 sps:$4 sm:$0xff] (!%p351_p10)   ;;  %v1094_v47 = vld [vmem:[%s1315_s9 + $0x60] ss:$8 sps:$4 sm:$0xff] (!%p351_p10)   ;;  %v1095_v48 = vld [vmem:[%s1315_s9 + $0x74] ss:$8 sps:$4 sm:$0xff] (!%p351_p10)  }
  0x31   : > { %v1097_v49 = vld [vmem:[%s1315_s9 + $0x70] ss:$8 sps:$4 sm:$0xff]   ;;  %v1098_v50 = vld [vmem:[%s1315_s9 + $0x84] ss:$8 sps:$4 sm:$0xff]   ;;  %v1100_v51 = vld [vmem:[%s1315_s9 + $0x80] ss:$8 sps:$4 sm:$0xff]  }
  0x32   : > { %653 = vmatpush1.bf16.msra.mxu0 %v1079_v37  ;;  %1019 = vmatpush1.bf16.msra.mxu1 %v1079_v37  ;;  %v1101_v52 = vld [vmem:[%s1315_s9 + $0x94] ss:$8 sps:$4 sm:$0xff]   ;;  %v1103_v53 = vld [vmem:[%s1315_s9 + $0x90] ss:$8 sps:$4 sm:$0xff]   ;;  %v1104_v54 = vld [vmem:[%s1315_s9 + $0xa4] ss:$8 sps:$4 sm:$0xff]  }
  0x33   : > { %654 = vmatprep.subr.bf16.mxu0 %v1080_v38  ;;  %1004 = vmatprep.subr.bf16.mxu1 %v1080_v38  ;;  %v1106_v55 = vld [vmem:[%s1315_s9 + $0xa0] ss:$8 sps:$4 sm:$0xff]   ;;  %v1107_v56 = vld [vmem:[%s1315_s9 + $0xb4] ss:$8 sps:$4 sm:$0xff]   ;;  %v1109_v57 = vld [vmem:[%s1315_s9 + $0xb0] ss:$8 sps:$4 sm:$0xff]  }
  0x34   : > { %v1110_v58 = vld [vmem:[%s1315_s9 + $0xc4] ss:$8 sps:$4 sm:$0xff]   ;;  %v1112_v59 = vld [vmem:[%s1315_s9 + $0xc0] ss:$8 sps:$4 sm:$0xff]   ;;  %v1113_v60 = vld [vmem:[%s1315_s9 + $0xd4] ss:$8 sps:$4 sm:$0xff]  }
  0x35   : > { %v1115_v61 = vld [vmem:[%s1315_s9 + $0xd0] ss:$8 sps:$4 sm:$0xff]   ;;  %v1116_v62 = vld [vmem:[%s1315_s9 + $0xe4] ss:$8 sps:$4 sm:$0xff]   ;;  %v1118_v63 = vld [vmem:[%s1315_s9 + $0xe0] ss:$8 sps:$4 sm:$0xff]  }
  0x36   : > { %655 = vmatpush1.bf16.msra.mxu0 %v1082_v39  ;;  %1020 = vmatpush1.bf16.msra.mxu1 %v1082_v39  ;;  %v1119_v0 = vld [vmem:[%s1315_s9 + $0xf4] ss:$8 sps:$4 sm:$0xff]   ;;  %v1121_v1 = vld [vmem:[%s1315_s9 + $0xf0] ss:$8 sps:$4 sm:$0xff]   ;;  %s1394_s20 = smov (!%p408_p11, %s950_s20), 5  ;;  %v734_v6 = vsub.s32 0, %v733_v5 }
  0x37   : > { %656 = vmatprep.subr.bf16.mxu0 %v1083_v40  ;;  %1005 = vmatprep.subr.bf16.mxu1 %v1083_v40  ;;  %s410_s25 = scalar_lea.vmem %s1384_s2, %s1394_s20  ;;  %v738_v8 = vsub.s32 1, %v733_v5  ;;  %s949_s26 = sshll.u32 %s357_s30, 5 }
  0x38   : > { %v730_v7 = vld [vmem:[%s410_s25] sm:$0x3]  ;;  %s392_s27 = scalar_lea.vmem [#allocation4], %s949_s26  ;;  %s1001_s12 = sshll.u32 (%p1223_p6), %s1158_s14, 3 }
  0x39   : > { %v735_v9 = vrot.slane %v730_v7, %v734_v6  ;;  %v739_v10 = vrot.slane %v730_v7, %v738_v8  ;;  %s790_s30 = scalar_lea.vmem (%p1223_p6), %s1385_s3, %s1001_s12 }
  0x3a   : > { %657 = vmatpush1.bf16.msra.mxu0 %v1085_v41  ;;  %1021 = vmatpush1.bf16.msra.mxu1 %v1085_v41 }
  0x3b   : > { %658 = vmatprep.subr.bf16.mxu0 %v1086_v42  ;;  %1006 = vmatprep.subr.bf16.mxu1 %v1086_v42 }
  0x3e   : > { %659 = vmatpush1.bf16.msra.mxu0 %v1088_v43  ;;  %1022 = vmatpush1.bf16.msra.mxu1 %v1088_v43 }
  0x3f   : > { %660 = vmatprep.subr.bf16.mxu0 %v1089_v44  ;;  %1007 = vmatprep.subr.bf16.mxu1 %v1089_v44 }
  0x42   : > { %661 = vmatpush1.bf16.msra.mxu0 %v1091_v45  ;;  %1023 = vmatpush1.bf16.msra.mxu1 %v1091_v45 }
  0x43   : > { %662 = vmatprep.subr.bf16.mxu0 %v1092_v46  ;;  %1008 = vmatprep.subr.bf16.mxu1 %v1092_v46 }
  0x46   : > { %663 = vmatpush1.bf16.msra.mxu0 %v1094_v47  ;;  %1024 = vmatpush1.bf16.msra.mxu1 %v1094_v47 }
  0x47   : > { %664 = vmatprep.subr.bf16.mxu0 %v1095_v48  ;;  %1009 = vmatprep.subr.bf16.mxu1 %v1095_v48 }
  0x4a   : > { %665 = vmatpush1.bf16.msra.mxu0 %v1097_v49  ;;  %1025 = vmatpush1.bf16.msra.mxu1 %v1097_v49 }
  0x4b   : > { %666 = vmatprep.subr.bf16.mxu0 %v1098_v50  ;;  %1010 = vmatprep.subr.bf16.mxu1 %v1098_v50 }
  0x4e   : > { %667 = vmatpush1.bf16.msra.mxu0 %v1100_v51  ;;  %1026 = vmatpush1.bf16.msra.mxu1 %v1100_v51 }
  0x4f   : > { %668 = vmatprep.subr.bf16.mxu0 %v1101_v52  ;;  %1011 = vmatprep.subr.bf16.mxu1 %v1101_v52 }
  0x52   : > { %669 = vmatpush1.bf16.msra.mxu0 %v1103_v53  ;;  %1027 = vmatpush1.bf16.msra.mxu1 %v1103_v53 }
  0x53   : > { %670 = vmatprep.subr.bf16.mxu0 %v1104_v54  ;;  %1012 = vmatprep.subr.bf16.mxu1 %v1104_v54 }
  0x56   : > { %671 = vmatpush1.bf16.msra.mxu0 %v1106_v55  ;;  %1028 = vmatpush1.bf16.msra.mxu1 %v1106_v55 }
  0x57   : > { %672 = vmatprep.subr.bf16.mxu0 %v1107_v56  ;;  %1013 = vmatprep.subr.bf16.mxu1 %v1107_v56 }
  0x5a   : > { %673 = vmatpush1.bf16.msra.mxu0 %v1109_v57  ;;  %1029 = vmatpush1.bf16.msra.mxu1 %v1109_v57 }
  0x5b   : > { %674 = vmatprep.subr.bf16.mxu0 %v1110_v58  ;;  %1014 = vmatprep.subr.bf16.mxu1 %v1110_v58 }
  0x5e   : > { %675 = vmatpush1.bf16.msra.mxu0 %v1112_v59  ;;  %1030 = vmatpush1.bf16.msra.mxu1 %v1112_v59 }
  0x5f   : > { %676 = vmatprep.subr.bf16.mxu0 %v1113_v60  ;;  %1015 = vmatprep.subr.bf16.mxu1 %v1113_v60 }
  0x62   : > { %677 = vmatpush1.bf16.msra.mxu0 %v1115_v61  ;;  %1031 = vmatpush1.bf16.msra.mxu1 %v1115_v61 }
  0x63   : > { %678 = vmatprep.subr.bf16.mxu0 %v1116_v62  ;;  %1016 = vmatprep.subr.bf16.mxu1 %v1116_v62 }
  0x66   : > { %679 = vmatpush1.bf16.msra.mxu0 %v1118_v63  ;;  %1032 = vmatpush1.bf16.msra.mxu1 %v1118_v63 }
  0x67   : > { %680 = vmatprep.subr.bf16.mxu0 %v1119_v0  ;;  %1017 = vmatprep.subr.bf16.mxu1 %v1119_v0 }
  0x6a   : > { %681 = vmatpush1.bf16.msra.mxu0 %v1121_v1  ;;  %1033 = vmatpush1.bf16.msra.mxu1 %v1121_v1 }
  0x6d   : > { %683 = vmatmul.mubr.bf16.vlgmr.msra.gmra.mrb[0].mxu0 %v1122_v2  ;;  %693 = vmatmul.mubr.bf16.vlgmr.msra.gmra.mrb[0].mxu1 %v1125_v3 }
 0x140   : > { %v684_v11 = vpop.f32.mrb[0].mxu0  ;;  %v694_v12 = vpop.f32.mrb[0].mxu1 }
 0x141   : > { %v742_v13 = vadd.f32 %v735_v9, %v684_v11  ;;  %v746_v14 = vadd.f32 %v735_v9, %v694_v12  ;;  %v686_v15 = vpop.f32.mrb[1].mxu0  ;;  %v696_v16 = vpop.f32.mrb[1].mxu1 }
 0x142   : > { %v743_v17 = vadd.f32 %v739_v10, %v686_v15  ;;  %v747_v18 = vadd.f32 %v739_v10, %v696_v16  ;;  %v688_v19 = vpop.f32.mrb[2].mxu0  ;;  %v698_v20 = vpop.f32.mrb[2].mxu1  ;;  %784 = sbr.rel (!%p1223_p6) target bundleno = 337 (0x151), region = 82 }
 0x143   : > { %v744_v21 = vadd.f32 %v735_v9, %v688_v19  ;;  %v748_v22 = vadd.f32 %v735_v9, %v698_v20  ;;  %v690_v23 = vpop.f32.mrb[3].mxu0  ;;  %v700_v24 = vpop.f32.mrb[3].mxu1 }
 0x144   : > { %v997_v25 = vpack.c.bf16 %v743_v17, %v742_v13  ;;  %v999_v26 = vpack.c.bf16 %v747_v18, %v746_v14  ;;  %v745_v27 = vadd.f32 %v739_v10, %v690_v23  ;;  %v749_v28 = vadd.f32 %v739_v10, %v700_v24 }
 0x146   : > { %774 = vst [vmem:[%s392_s27] sm:$0xff] %v997_v25  ;;  %776 = vst [vmem:[%s392_s27 + $0x10] sm:$0xff] %v999_v26  ;;  %v998_v29 = vpack.c.bf16 %v745_v27, %v744_v21  ;;  %v1000_v30 = vpack.c.bf16 %v749_v28, %v748_v22 }
 0x148   : > { %775 = vst [vmem:[%s392_s27 + $0x8] sm:$0xff] %v998_v29  ;;  %777 = vst [vmem:[%s392_s27 + $0x18] sm:$0xff] %v1000_v30 }
 0x14d   : > { %v824_v31 = vld [vmem:[%s392_s27] sm:$0xff]  ;;  %v828_v33 = vld [vmem:[%s392_s27 + $0x10] sm:$0xff] }
 0x14e   : > { %825 = vst [vmem:[%s790_s30] sm:$0xff] %v824_v31  ;;  %829 = vst [vmem:[%s790_s30 + $0x30] sm:$0xff] %v828_v33 }
 0x14f   : > { %v826_v32 = vld [vmem:[%s392_s27 + $0x8] sm:$0xff]  ;;  %v830_v34 = vld [vmem:[%s392_s27 + $0x18] sm:$0xff] }
 0x150   : > { %827 = vst [vmem:[%s790_s30 + $0x18] sm:$0xff] %v826_v32  ;;  %831 = vst [vmem:[%s790_s30 + $0x48] sm:$0xff] %v830_v34 }
 0x151 PF: > { %s13_s16 = sadd.s32 1, %s1166_s16   ;;  %s1387_s12 = smov %s1154_s13 }
 0x152   : > { %p10_p12 = scmp.ge.s32.totalorder %s13_s16, 5   ;;  %s1388_s13 = smov %s1228_s22 }
 0x153   : > { %s1389_s14 = smov %s1162_s15  ;;  %s1390_s15 = smov %s1392_s17 }
 0x154   :  { %12 = sbr.rel (!%p10_p12) target bundleno = 3 (0x3), region = 157 }

</bundles_post_ra>
